<compile_context>
chip_gen: v5e
topology: v5e:2x2
jax: 0.10.0
libtpu: 0.0.40
codegen_flags: <defaults>
</compile_context>

<pallas_src>
import functools

import jax
import jax.numpy as jnp
from jax.experimental import pallas as pl
from jax.experimental.pallas import tpu as pltpu


def _round_up(n, m=128):
    return (n + m - 1) // m * m


def _pad_to(a, shape):
    return jnp.pad(a, [(0, s - d) for d, s in zip(a.shape, shape)])


def _vae_kernel(
    x_ref,                         # (B, IN) bf16 (unpadded K)
    w1, g1, be1,                   # encoder layer 0 (bias cancels in BN)
    w2, g2, be2,                   # encoder layer 1
    w3, g3, be3,                   # encoder layer 2
    wml, bml,                      # fused fc_mu | fc_logvar
    eps_ref,                       # (B, L_P) bf16
    wd1, bd1, m1,                  # decoder layer 0 + dropout mask
    wd2, bd2, m2,                  # decoder layer 1 + dropout mask
    wd3, bd3, m3,                  # decoder layer 2 + dropout mask
    wd4, bd4,                      # decoder output layer
    recon_ref, mulv_ref,           # outputs: (B, IN_P) f32, (B, 2*L_P) f32
):
    def linear(h, w_r, b_r=None):
        # bf16 x bf16 MXU matmul with f32 accumulation; bias add in f32.
        out = jnp.dot(h.astype(w_r.dtype), w_r[...],
                      preferred_element_type=jnp.float32)
        if b_r is not None:
            out = out + b_r[...]
        return out

    def bn_relu(h, g_r, be_r):
        # BatchNorm1d training mode (biased batch stats, eps=1e-5) folded to a
        # single per-column scale/shift.  One reduction sweep: sum and sum(h^2).
        inv_n = jnp.float32(1.0 / h.shape[0])
        mean = jnp.sum(h, axis=0, keepdims=True) * inv_n
        m2 = jnp.sum(h * h, axis=0, keepdims=True) * inv_n
        var = jnp.maximum(m2 - mean * mean, 0.0)
        scale = g_r[...] * jax.lax.rsqrt(var + 1e-5)
        shift = be_r[...] - mean * scale
        return jnp.maximum(h * scale + shift, 0.0)

    def relu_drop(h, m_r):
        # 1/keep is already folded into the NEXT layer's weights, so dropout
        # is just a 0/1 mask multiply.
        return jnp.maximum(h, 0.0) * m_r[...].astype(jnp.float32)

    # ---- encoder ----
    h = bn_relu(linear(x_ref[...], w1), g1, be1)
    h = bn_relu(linear(h, w2), g2, be2)
    h = bn_relu(linear(h, w3), g3, be3)

    # ---- fused fc_mu / fc_logvar + reparameterize ----
    mulv = linear(h, wml, bml)            # (B, 2*L_P), lane-dense
    lp = mulv.shape[1] // 2
    mu = mulv[:, :lp]
    logvar = mulv[:, lp:]
    # Padded lanes: mu/logvar are 0 there and eps pad is 0, so z pad lanes = 0.
    z = mu + jnp.exp(0.5 * logvar) * eps_ref[...].astype(jnp.float32)

    # ---- decoder ----
    d = relu_drop(linear(z, wd1, bd1), m1)
    d = relu_drop(linear(d, wd2, bd2), m2)
    d = relu_drop(linear(d, wd3, bd3), m3)
    recon_ref[...] = linear(d, wd4, bd4)
    mulv_ref[...] = mulv


def init_params(key, input_dim, hidden_dims, latent_dim):
    """Deterministic parameter init (uniform, PyTorch-style fan_in bound)."""
    params = {}

    def lin(k, fan_in, fan_out, name):
        kw, kb = jax.random.split(k)
        bound = 1.0 / jnp.sqrt(jnp.float32(fan_in))
        params[name + "_w"] = jax.random.uniform(
            kw, (fan_in, fan_out), jnp.float32, -bound, bound)
        params[name + "_b"] = jax.random.uniform(
            kb, (1, fan_out), jnp.float32, -bound, bound)

    keys = jax.random.split(key, 16)
    ki = iter(keys)

    prev = input_dim
    for i, h in enumerate(hidden_dims):
        lin(next(ki), prev, h, f"enc{i}")
        params[f"bn{i}_g"] = jnp.ones((1, h), jnp.float32)
        params[f"bn{i}_b"] = jnp.zeros((1, h), jnp.float32)
        prev = h
    lin(next(ki), prev, latent_dim, "mu")
    lin(next(ki), prev, latent_dim, "lv")

    prev = latent_dim
    for i, h in enumerate(reversed(hidden_dims)):
        lin(next(ki), prev, h, f"dec{i}")
        prev = h
    lin(next(ki), prev, input_dim, "dec_out")
    return params


def prepare_params(params, input_dim, hidden_dims, latent_dim,
                   dropout_p=0.2, weight_dtype=jnp.bfloat16):
    """Zero-pad lane (N) dims to 128, fuse mu/logvar, fold dropout 1/keep into
    the consuming layer's weights, cast weights to bf16.

    Pad lanes are exact zeros (jnp.pad), so padded columns stay inert through
    BN (gamma=0) and all matmuls.
    """
    hp = [_round_up(h) for h in hidden_dims]
    ip, lp = _round_up(input_dim), _round_up(latent_dim)
    keep = 1.0 - dropout_p
    inv_keep = 1.0 / keep
    p = {}

    # Encoder: bias omitted on purpose -- it cancels exactly in the BatchNorm
    # mean subtraction, so it never influences the output.
    prev, prev_p = input_dim, input_dim   # keep K of the first layer unpadded
    for i, (h, h_p) in enumerate(zip(hidden_dims, hp)):
        p[f"enc{i}_w"] = _pad_to(params[f"enc{i}_w"], (prev_p, h_p)).astype(weight_dtype)
        p[f"bn{i}_g"] = _pad_to(params[f"bn{i}_g"], (1, h_p))
        p[f"bn{i}_b"] = _pad_to(params[f"bn{i}_b"], (1, h_p))
        prev, prev_p = h, h_p

    # Fused [fc_mu | fc_logvar]: columns [0:L_P) = mu, [L_P:2*L_P) = logvar.
    wml = jnp.zeros((prev_p, 2 * lp), jnp.float32)
    wml = wml.at[:prev, :latent_dim].set(params["mu_w"])
    wml = wml.at[:prev, lp:lp + latent_dim].set(params["lv_w"])
    bml = jnp.zeros((1, 2 * lp), jnp.float32)
    bml = bml.at[:, :latent_dim].set(params["mu_b"][0])
    bml = bml.at[:, lp:lp + latent_dim].set(params["lv_b"][0])
    p["ml_w"] = wml.astype(weight_dtype)
    p["ml_b"] = bml

    # Decoder: layers 1, 2 and the output layer consume dropped activations,
    # so fold the 1/keep rescale into their weights (not biases).
    prev, prev_p = latent_dim, lp
    for i, (h, h_p) in enumerate(zip(reversed(hidden_dims), reversed(hp))):
        w = _pad_to(params[f"dec{i}_w"], (prev_p, h_p))
        if i > 0:
            w = w * inv_keep
        p[f"dec{i}_w"] = w.astype(weight_dtype)
        p[f"dec{i}_b"] = _pad_to(params[f"dec{i}_b"], (1, h_p))
        prev, prev_p = h, h_p
    w_out = _pad_to(params["dec_out_w"], (prev_p, ip)) * inv_keep
    p["dec_out_w"] = w_out.astype(weight_dtype)
    p["dec_out_b"] = _pad_to(params["dec_out_b"], (1, ip))
    return p


@functools.partial(jax.jit, static_argnames=("dropout_p",))
def vae_forward(x, packed, eps, dropout_key, dropout_p=0.2):
    batch, input_dim = x.shape
    latent_dim = eps.shape[1]
    ip, lp = _round_up(input_dim), _round_up(latent_dim)
    keep = 1.0 - dropout_p

    # x is passed UNPADDED (contraction dim needs no 128 padding) and both
    # activations are cast bf16 to halve/quarter input DMA bytes.
    # NOTE: the batch axis is NOT padded and NOT gridded -- BatchNorm stats
    # must be taken over exactly the logical batch in one block.
    x_in = x.astype(jnp.bfloat16)
    eps_in = _pad_to(eps, (batch, lp)).astype(jnp.bfloat16)  # pad lanes exactly 0

    # Host-side dropout masks (0/1, bf16); 1/keep already folded into weights.
    mask_widths = (packed["dec0_w"].shape[1],
                   packed["dec1_w"].shape[1],
                   packed["dec2_w"].shape[1])
    mkeys = jax.random.split(dropout_key, 3)
    masks = [jax.random.bernoulli(k, keep, (batch, w)).astype(jnp.bfloat16)
             for k, w in zip(mkeys, mask_widths)]

    inputs = [
        x_in,
        packed["enc0_w"], packed["bn0_g"], packed["bn0_b"],
        packed["enc1_w"], packed["bn1_g"], packed["bn1_b"],
        packed["enc2_w"], packed["bn2_g"], packed["bn2_b"],
        packed["ml_w"], packed["ml_b"],
        eps_in,
        packed["dec0_w"], packed["dec0_b"], masks[0],
        packed["dec1_w"], packed["dec1_b"], masks[1],
        packed["dec2_w"], packed["dec2_b"], masks[2],
        packed["dec_out_w"], packed["dec_out_b"],
    ]

    vmem_spec = pl.BlockSpec(memory_space=pltpu.MemorySpace.VMEM)
    in_specs = [vmem_spec] * len(inputs)

    out_shapes = (
        jax.ShapeDtypeStruct((batch, ip), jnp.float32),      # recon (lane-dense)
        jax.ShapeDtypeStruct((batch, 2 * lp), jnp.float32),  # [mu | logvar]
    )

    # Raise the scoped-VMEM limit above the v5e/v6e defaults (16/32 MiB) but
    # stay under v7x's 64 MiB physical VMEM per TensorCore.  Per-row resident
    # footprint is ~3 KiB, so batches up to ~10K rows fit.
    compiler_params = pltpu.CompilerParams(vmem_limit_bytes=48 * 1024 * 1024)

    recon_p, mulv = pl.pallas_call(
        _vae_kernel,
        out_shape=out_shapes,
        in_specs=in_specs,
        out_specs=(vmem_spec, vmem_spec),
        compiler_params=compiler_params,
    )(*inputs)

    recon = recon_p[:, :input_dim]
    mu = mulv[:, :latent_dim]
    logvar = mulv[:, lp:lp + latent_dim]
    return recon, mu, logvar


if __name__ == "__main__":
    # Batch >= 128 so the MXU rows are actually used; still a small problem.
    BATCH = 256
    INPUT_DIM = 32
    HIDDEN_DIMS = (256, 128, 64)
    LATENT_DIM = 20
    DROPOUT_P = 0.2

    root = jax.random.PRNGKey(0)
    k_params, k_x, k_eps, k_drop = jax.random.split(root, 4)

    params = init_params(k_params, INPUT_DIM, HIDDEN_DIMS, LATENT_DIM)
    packed = prepare_params(params, INPUT_DIM, HIDDEN_DIMS, LATENT_DIM,
                            dropout_p=DROPOUT_P)

    x = jax.random.normal(k_x, (BATCH, INPUT_DIM), jnp.float32)
    # Reparameterization noise and dropout masks are generated host-side with
    # jax.random (deterministic given the keys); pass a fresh k_drop per step.
    eps = jax.random.normal(k_eps, (BATCH, LATENT_DIM), jnp.float32)

    recon, mu, logvar = vae_forward(x, packed, eps, k_drop, dropout_p=DROPOUT_P)
    jax.block_until_ready((recon, mu, logvar))

    assert recon.shape == (BATCH, INPUT_DIM)
    assert mu.shape == (BATCH, LATENT_DIM)
    assert logvar.shape == (BATCH, LATENT_DIM)
    assert bool(jnp.all(jnp.isfinite(recon)))
    print("KERNEL_OK")
</pallas_src>

<mosaic_0001>
module attributes {stable_mosaic.version = 11 : i64} {
  func.func @_vae_kernel(%arg0: memref<256x32xbf16, #tpu.memory_space<vmem>>, %arg1: memref<32x256xbf16, #tpu.memory_space<vmem>>, %arg2: memref<1x256xf32, #tpu.memory_space<vmem>>, %arg3: memref<1x256xf32, #tpu.memory_space<vmem>>, %arg4: memref<256x128xbf16, #tpu.memory_space<vmem>>, %arg5: memref<1x128xf32, #tpu.memory_space<vmem>>, %arg6: memref<1x128xf32, #tpu.memory_space<vmem>>, %arg7: memref<128x128xbf16, #tpu.memory_space<vmem>>, %arg8: memref<1x128xf32, #tpu.memory_space<vmem>>, %arg9: memref<1x128xf32, #tpu.memory_space<vmem>>, %arg10: memref<128x256xbf16, #tpu.memory_space<vmem>>, %arg11: memref<1x256xf32, #tpu.memory_space<vmem>>, %arg12: memref<256x128xbf16, #tpu.memory_space<vmem>>, %arg13: memref<128x128xbf16, #tpu.memory_space<vmem>>, %arg14: memref<1x128xf32, #tpu.memory_space<vmem>>, %arg15: memref<256x128xbf16, #tpu.memory_space<vmem>>, %arg16: memref<128x128xbf16, #tpu.memory_space<vmem>>, %arg17: memref<1x128xf32, #tpu.memory_space<vmem>>, %arg18: memref<256x128xbf16, #tpu.memory_space<vmem>>, %arg19: memref<128x256xbf16, #tpu.memory_space<vmem>>, %arg20: memref<1x256xf32, #tpu.memory_space<vmem>>, %arg21: memref<256x256xbf16, #tpu.memory_space<vmem>>, %arg22: memref<256x128xbf16, #tpu.memory_space<vmem>>, %arg23: memref<1x128xf32, #tpu.memory_space<vmem>>, %arg24: memref<256x128xf32, #tpu.memory_space<vmem>>, %arg25: memref<256x256xf32, #tpu.memory_space<vmem>>) attributes {dimension_semantics = [], scalar_prefetch = 0 : i64, scratch_operands = 0 : i64, tpu.core_type = #tpu.core_type<tc>} {
    %c0 = arith.constant 0 : index
    %c0_0 = arith.constant 0 : index
    %0 = vector.load %arg0[%c0, %c0_0] : memref<256x32xbf16, #tpu.memory_space<vmem>>, vector<256x32xbf16>
    %c0_1 = arith.constant 0 : index
    %c0_2 = arith.constant 0 : index
    %1 = vector.load %arg1[%c0_1, %c0_2] : memref<32x256xbf16, #tpu.memory_space<vmem>>, vector<32x256xbf16>
    %cst = arith.constant dense<0.000000e+00> : vector<256x256xf32>
    %2 = tpu.matmul %0, %1, %cst {dimension_numbers = #tpu.dot_dimension_numbers<[1], [0], [0], [1], [0, 0, 1, 1], [], []>} : vector<256x32xbf16>, vector<32x256xbf16>, vector<256x256xf32> -> vector<256x256xf32>
    %cst_3 = arith.constant dense<0.000000e+00> : vector<256xf32>
    %3 = vector.multi_reduction <add>, %2, %cst_3 [0] : vector<256x256xf32> to vector<256xf32>
    %4 = vector.shape_cast %3 : vector<256xf32> to vector<1x256xf32>
    %cst_4 = arith.constant 3.906250e-03 : f32
    %5 = vector.broadcast %cst_4 : f32 to vector<1x256xf32>
    %6 = arith.mulf %4, %5 : vector<1x256xf32>
    %7 = arith.mulf %2, %2 : vector<256x256xf32>
    %cst_5 = arith.constant dense<0.000000e+00> : vector<256xf32>
    %8 = vector.multi_reduction <add>, %7, %cst_5 [0] : vector<256x256xf32> to vector<256xf32>
    %9 = vector.shape_cast %8 : vector<256xf32> to vector<1x256xf32>
    %cst_6 = arith.constant 3.906250e-03 : f32
    %10 = vector.broadcast %cst_6 : f32 to vector<1x256xf32>
    %11 = arith.mulf %9, %10 : vector<1x256xf32>
    %12 = arith.mulf %6, %6 : vector<1x256xf32>
    %13 = arith.subf %11, %12 : vector<1x256xf32>
    %cst_7 = arith.constant 0.000000e+00 : f32
    %14 = vector.broadcast %cst_7 : f32 to vector<1x256xf32>
    %15 = arith.maximumf %13, %14 : vector<1x256xf32>
    %c0_8 = arith.constant 0 : index
    %c0_9 = arith.constant 0 : index
    %16 = vector.load %arg2[%c0_8, %c0_9] : memref<1x256xf32, #tpu.memory_space<vmem>>, vector<1x256xf32>
    %cst_10 = arith.constant 9.99999974E-6 : f32
    %17 = vector.broadcast %cst_10 : f32 to vector<1x256xf32>
    %18 = arith.addf %15, %17 : vector<1x256xf32>
    %19 = math.rsqrt %18 : vector<1x256xf32>
    %20 = arith.mulf %16, %19 : vector<1x256xf32>
    %c0_11 = arith.constant 0 : index
    %c0_12 = arith.constant 0 : index
    %21 = vector.load %arg3[%c0_11, %c0_12] : memref<1x256xf32, #tpu.memory_space<vmem>>, vector<1x256xf32>
    %22 = arith.mulf %6, %20 : vector<1x256xf32>
    %23 = arith.subf %21, %22 : vector<1x256xf32>
    %24 = vector.broadcast %20 : vector<1x256xf32> to vector<256x256xf32>
    %25 = arith.mulf %2, %24 : vector<256x256xf32>
    %26 = vector.broadcast %23 : vector<1x256xf32> to vector<256x256xf32>
    %27 = arith.addf %25, %26 : vector<256x256xf32>
    %cst_13 = arith.constant 0.000000e+00 : f32
    %28 = vector.broadcast %cst_13 : f32 to vector<256x256xf32>
    %29 = arith.maximumf %27, %28 : vector<256x256xf32>
    %30 = arith.truncf %29 : vector<256x256xf32> to vector<256x256xbf16>
    %c0_14 = arith.constant 0 : index
    %c0_15 = arith.constant 0 : index
    %31 = vector.load %arg4[%c0_14, %c0_15] : memref<256x128xbf16, #tpu.memory_space<vmem>>, vector<256x128xbf16>
    %cst_16 = arith.constant dense<0.000000e+00> : vector<256x128xf32>
    %32 = tpu.matmul %30, %31, %cst_16 {dimension_numbers = #tpu.dot_dimension_numbers<[1], [0], [0], [1], [0, 0, 1, 1], [], []>} : vector<256x256xbf16>, vector<256x128xbf16>, vector<256x128xf32> -> vector<256x128xf32>
    %cst_17 = arith.constant dense<0.000000e+00> : vector<128xf32>
    %33 = vector.multi_reduction <add>, %32, %cst_17 [0] : vector<256x128xf32> to vector<128xf32>
    %34 = vector.shape_cast %33 : vector<128xf32> to vector<1x128xf32>
    %cst_18 = arith.constant 3.906250e-03 : f32
    %35 = vector.broadcast %cst_18 : f32 to vector<1x128xf32>
    %36 = arith.mulf %34, %35 : vector<1x128xf32>
    %37 = arith.mulf %32, %32 : vector<256x128xf32>
    %cst_19 = arith.constant dense<0.000000e+00> : vector<128xf32>
    %38 = vector.multi_reduction <add>, %37, %cst_19 [0] : vector<256x128xf32> to vector<128xf32>
    %39 = vector.shape_cast %38 : vector<128xf32> to vector<1x128xf32>
    %cst_20 = arith.constant 3.906250e-03 : f32
    %40 = vector.broadcast %cst_20 : f32 to vector<1x128xf32>
    %41 = arith.mulf %39, %40 : vector<1x128xf32>
    %42 = arith.mulf %36, %36 : vector<1x128xf32>
    %43 = arith.subf %41, %42 : vector<1x128xf32>
    %cst_21 = arith.constant 0.000000e+00 : f32
    %44 = vector.broadcast %cst_21 : f32 to vector<1x128xf32>
    %45 = arith.maximumf %43, %44 : vector<1x128xf32>
    %c0_22 = arith.constant 0 : index
    %c0_23 = arith.constant 0 : index
    %46 = vector.load %arg5[%c0_22, %c0_23] : memref<1x128xf32, #tpu.memory_space<vmem>>, vector<1x128xf32>
    %cst_24 = arith.constant 9.99999974E-6 : f32
    %47 = vector.broadcast %cst_24 : f32 to vector<1x128xf32>
    %48 = arith.addf %45, %47 : vector<1x128xf32>
    %49 = math.rsqrt %48 : vector<1x128xf32>
    %50 = arith.mulf %46, %49 : vector<1x128xf32>
    %c0_25 = arith.constant 0 : index
    %c0_26 = arith.constant 0 : index
    %51 = vector.load %arg6[%c0_25, %c0_26] : memref<1x128xf32, #tpu.memory_space<vmem>>, vector<1x128xf32>
    %52 = arith.mulf %36, %50 : vector<1x128xf32>
    %53 = arith.subf %51, %52 : vector<1x128xf32>
    %54 = vector.broadcast %50 : vector<1x128xf32> to vector<256x128xf32>
    %55 = arith.mulf %32, %54 : vector<256x128xf32>
    %56 = vector.broadcast %53 : vector<1x128xf32> to vector<256x128xf32>
    %57 = arith.addf %55, %56 : vector<256x128xf32>
    %cst_27 = arith.constant 0.000000e+00 : f32
    %58 = vector.broadcast %cst_27 : f32 to vector<256x128xf32>
    %59 = arith.maximumf %57, %58 : vector<256x128xf32>
    %60 = arith.truncf %59 : vector<256x128xf32> to vector<256x128xbf16>
    %c0_28 = arith.constant 0 : index
    %c0_29 = arith.constant 0 : index
    %61 = vector.load %arg7[%c0_28, %c0_29] : memref<128x128xbf16, #tpu.memory_space<vmem>>, vector<128x128xbf16>
    %cst_30 = arith.constant dense<0.000000e+00> : vector<256x128xf32>
    %62 = tpu.matmul %60, %61, %cst_30 {dimension_numbers = #tpu.dot_dimension_numbers<[1], [0], [0], [1], [0, 0, 1, 1], [], []>} : vector<256x128xbf16>, vector<128x128xbf16>, vector<256x128xf32> -> vector<256x128xf32>
    %cst_31 = arith.constant dense<0.000000e+00> : vector<128xf32>
    %63 = vector.multi_reduction <add>, %62, %cst_31 [0] : vector<256x128xf32> to vector<128xf32>
    %64 = vector.shape_cast %63 : vector<128xf32> to vector<1x128xf32>
    %cst_32 = arith.constant 3.906250e-03 : f32
    %65 = vector.broadcast %cst_32 : f32 to vector<1x128xf32>
    %66 = arith.mulf %64, %65 : vector<1x128xf32>
    %67 = arith.mulf %62, %62 : vector<256x128xf32>
    %cst_33 = arith.constant dense<0.000000e+00> : vector<128xf32>
    %68 = vector.multi_reduction <add>, %67, %cst_33 [0] : vector<256x128xf32> to vector<128xf32>
    %69 = vector.shape_cast %68 : vector<128xf32> to vector<1x128xf32>
    %cst_34 = arith.constant 3.906250e-03 : f32
    %70 = vector.broadcast %cst_34 : f32 to vector<1x128xf32>
    %71 = arith.mulf %69, %70 : vector<1x128xf32>
    %72 = arith.mulf %66, %66 : vector<1x128xf32>
    %73 = arith.subf %71, %72 : vector<1x128xf32>
    %cst_35 = arith.constant 0.000000e+00 : f32
    %74 = vector.broadcast %cst_35 : f32 to vector<1x128xf32>
    %75 = arith.maximumf %73, %74 : vector<1x128xf32>
    %c0_36 = arith.constant 0 : index
    %c0_37 = arith.constant 0 : index
    %76 = vector.load %arg8[%c0_36, %c0_37] : memref<1x128xf32, #tpu.memory_space<vmem>>, vector<1x128xf32>
    %cst_38 = arith.constant 9.99999974E-6 : f32
    %77 = vector.broadcast %cst_38 : f32 to vector<1x128xf32>
    %78 = arith.addf %75, %77 : vector<1x128xf32>
    %79 = math.rsqrt %78 : vector<1x128xf32>
    %80 = arith.mulf %76, %79 : vector<1x128xf32>
    %c0_39 = arith.constant 0 : index
    %c0_40 = arith.constant 0 : index
    %81 = vector.load %arg9[%c0_39, %c0_40] : memref<1x128xf32, #tpu.memory_space<vmem>>, vector<1x128xf32>
    %82 = arith.mulf %66, %80 : vector<1x128xf32>
    %83 = arith.subf %81, %82 : vector<1x128xf32>
    %84 = vector.broadcast %80 : vector<1x128xf32> to vector<256x128xf32>
    %85 = arith.mulf %62, %84 : vector<256x128xf32>
    %86 = vector.broadcast %83 : vector<1x128xf32> to vector<256x128xf32>
    %87 = arith.addf %85, %86 : vector<256x128xf32>
    %cst_41 = arith.constant 0.000000e+00 : f32
    %88 = vector.broadcast %cst_41 : f32 to vector<256x128xf32>
    %89 = arith.maximumf %87, %88 : vector<256x128xf32>
    %90 = arith.truncf %89 : vector<256x128xf32> to vector<256x128xbf16>
    %c0_42 = arith.constant 0 : index
    %c0_43 = arith.constant 0 : index
    %91 = vector.load %arg10[%c0_42, %c0_43] : memref<128x256xbf16, #tpu.memory_space<vmem>>, vector<128x256xbf16>
    %cst_44 = arith.constant dense<0.000000e+00> : vector<256x256xf32>
    %92 = tpu.matmul %90, %91, %cst_44 {dimension_numbers = #tpu.dot_dimension_numbers<[1], [0], [0], [1], [0, 0, 1, 1], [], []>} : vector<256x128xbf16>, vector<128x256xbf16>, vector<256x256xf32> -> vector<256x256xf32>
    %c0_45 = arith.constant 0 : index
    %c0_46 = arith.constant 0 : index
    %93 = vector.load %arg11[%c0_45, %c0_46] : memref<1x256xf32, #tpu.memory_space<vmem>>, vector<1x256xf32>
    %94 = vector.broadcast %93 : vector<1x256xf32> to vector<256x256xf32>
    %95 = arith.addf %92, %94 : vector<256x256xf32>
    %96 = vector.extract_strided_slice %95 {offsets = [0, 0], sizes = [256, 128], strides = [1, 1]} : vector<256x256xf32> to vector<256x128xf32>
    %97 = vector.extract_strided_slice %95 {offsets = [0, 128], sizes = [256, 128], strides = [1, 1]} : vector<256x256xf32> to vector<256x128xf32>
    %cst_47 = arith.constant 5.000000e-01 : f32
    %98 = vector.broadcast %cst_47 : f32 to vector<256x128xf32>
    %99 = arith.mulf %98, %97 : vector<256x128xf32>
    %100 = math.exp %99 : vector<256x128xf32>
    %c0_48 = arith.constant 0 : index
    %c0_49 = arith.constant 0 : index
    %101 = vector.load %arg12[%c0_48, %c0_49] : memref<256x128xbf16, #tpu.memory_space<vmem>>, vector<256x128xbf16>
    %102 = arith.extf %101 : vector<256x128xbf16> to vector<256x128xf32>
    %103 = arith.mulf %100, %102 : vector<256x128xf32>
    %104 = arith.addf %96, %103 : vector<256x128xf32>
    %105 = arith.truncf %104 : vector<256x128xf32> to vector<256x128xbf16>
    %c0_50 = arith.constant 0 : index
    %c0_51 = arith.constant 0 : index
    %106 = vector.load %arg13[%c0_50, %c0_51] : memref<128x128xbf16, #tpu.memory_space<vmem>>, vector<128x128xbf16>
    %cst_52 = arith.constant dense<0.000000e+00> : vector<256x128xf32>
    %107 = tpu.matmul %105, %106, %cst_52 {dimension_numbers = #tpu.dot_dimension_numbers<[1], [0], [0], [1], [0, 0, 1, 1], [], []>} : vector<256x128xbf16>, vector<128x128xbf16>, vector<256x128xf32> -> vector<256x128xf32>
    %c0_53 = arith.constant 0 : index
    %c0_54 = arith.constant 0 : index
    %108 = vector.load %arg14[%c0_53, %c0_54] : memref<1x128xf32, #tpu.memory_space<vmem>>, vector<1x128xf32>
    %109 = vector.broadcast %108 : vector<1x128xf32> to vector<256x128xf32>
    %110 = arith.addf %107, %109 : vector<256x128xf32>
    %cst_55 = arith.constant 0.000000e+00 : f32
    %111 = vector.broadcast %cst_55 : f32 to vector<256x128xf32>
    %112 = arith.maximumf %110, %111 : vector<256x128xf32>
    %c0_56 = arith.constant 0 : index
    %c0_57 = arith.constant 0 : index
    %113 = vector.load %arg15[%c0_56, %c0_57] : memref<256x128xbf16, #tpu.memory_space<vmem>>, vector<256x128xbf16>
    %114 = arith.extf %113 : vector<256x128xbf16> to vector<256x128xf32>
    %115 = arith.mulf %112, %114 : vector<256x128xf32>
    %116 = arith.truncf %115 : vector<256x128xf32> to vector<256x128xbf16>
    %c0_58 = arith.constant 0 : index
    %c0_59 = arith.constant 0 : index
    %117 = vector.load %arg16[%c0_58, %c0_59] : memref<128x128xbf16, #tpu.memory_space<vmem>>, vector<128x128xbf16>
    %cst_60 = arith.constant dense<0.000000e+00> : vector<256x128xf32>
    %118 = tpu.matmul %116, %117, %cst_60 {dimension_numbers = #tpu.dot_dimension_numbers<[1], [0], [0], [1], [0, 0, 1, 1], [], []>} : vector<256x128xbf16>, vector<128x128xbf16>, vector<256x128xf32> -> vector<256x128xf32>
    %c0_61 = arith.constant 0 : index
    %c0_62 = arith.constant 0 : index
    %119 = vector.load %arg17[%c0_61, %c0_62] : memref<1x128xf32, #tpu.memory_space<vmem>>, vector<1x128xf32>
    %120 = vector.broadcast %119 : vector<1x128xf32> to vector<256x128xf32>
    %121 = arith.addf %118, %120 : vector<256x128xf32>
    %cst_63 = arith.constant 0.000000e+00 : f32
    %122 = vector.broadcast %cst_63 : f32 to vector<256x128xf32>
    %123 = arith.maximumf %121, %122 : vector<256x128xf32>
    %c0_64 = arith.constant 0 : index
    %c0_65 = arith.constant 0 : index
    %124 = vector.load %arg18[%c0_64, %c0_65] : memref<256x128xbf16, #tpu.memory_space<vmem>>, vector<256x128xbf16>
    %125 = arith.extf %124 : vector<256x128xbf16> to vector<256x128xf32>
    %126 = arith.mulf %123, %125 : vector<256x128xf32>
    %127 = arith.truncf %126 : vector<256x128xf32> to vector<256x128xbf16>
    %c0_66 = arith.constant 0 : index
    %c0_67 = arith.constant 0 : index
    %128 = vector.load %arg19[%c0_66, %c0_67] : memref<128x256xbf16, #tpu.memory_space<vmem>>, vector<128x256xbf16>
    %cst_68 = arith.constant dense<0.000000e+00> : vector<256x256xf32>
    %129 = tpu.matmul %127, %128, %cst_68 {dimension_numbers = #tpu.dot_dimension_numbers<[1], [0], [0], [1], [0, 0, 1, 1], [], []>} : vector<256x128xbf16>, vector<128x256xbf16>, vector<256x256xf32> -> vector<256x256xf32>
    %c0_69 = arith.constant 0 : index
    %c0_70 = arith.constant 0 : index
    %130 = vector.load %arg20[%c0_69, %c0_70] : memref<1x256xf32, #tpu.memory_space<vmem>>, vector<1x256xf32>
    %131 = vector.broadcast %130 : vector<1x256xf32> to vector<256x256xf32>
    %132 = arith.addf %129, %131 : vector<256x256xf32>
    %cst_71 = arith.constant 0.000000e+00 : f32
    %133 = vector.broadcast %cst_71 : f32 to vector<256x256xf32>
    %134 = arith.maximumf %132, %133 : vector<256x256xf32>
    %c0_72 = arith.constant 0 : index
    %c0_73 = arith.constant 0 : index
    %135 = vector.load %arg21[%c0_72, %c0_73] : memref<256x256xbf16, #tpu.memory_space<vmem>>, vector<256x256xbf16>
    %136 = arith.extf %135 : vector<256x256xbf16> to vector<256x256xf32>
    %137 = arith.mulf %134, %136 : vector<256x256xf32>
    %138 = arith.truncf %137 : vector<256x256xf32> to vector<256x256xbf16>
    %c0_74 = arith.constant 0 : index
    %c0_75 = arith.constant 0 : index
    %139 = vector.load %arg22[%c0_74, %c0_75] : memref<256x128xbf16, #tpu.memory_space<vmem>>, vector<256x128xbf16>
    %cst_76 = arith.constant dense<0.000000e+00> : vector<256x128xf32>
    %140 = tpu.matmul %138, %139, %cst_76 {dimension_numbers = #tpu.dot_dimension_numbers<[1], [0], [0], [1], [0, 0, 1, 1], [], []>} : vector<256x256xbf16>, vector<256x128xbf16>, vector<256x128xf32> -> vector<256x128xf32>
    %c0_77 = arith.constant 0 : index
    %c0_78 = arith.constant 0 : index
    %141 = vector.load %arg23[%c0_77, %c0_78] : memref<1x128xf32, #tpu.memory_space<vmem>>, vector<1x128xf32>
    %142 = vector.broadcast %141 : vector<1x128xf32> to vector<256x128xf32>
    %143 = arith.addf %140, %142 : vector<256x128xf32>
    %c0_79 = arith.constant 0 : index
    %c0_80 = arith.constant 0 : index
    %144 = vector.load %arg24[%c0_79, %c0_80] : memref<256x128xf32, #tpu.memory_space<vmem>>, vector<256x128xf32>
    tpu.vector_store %arg24[%c0_79, %c0_80], %143 {strides = array<i32>} : memref<256x128xf32, #tpu.memory_space<vmem>>, vector<256x128xf32>,
    %c0_81 = arith.constant 0 : index
    %c0_82 = arith.constant 0 : index
    %145 = vector.load %arg25[%c0_81, %c0_82] : memref<256x256xf32, #tpu.memory_space<vmem>>, vector<256x256xf32>
    tpu.vector_store %arg25[%c0_81, %c0_82], %95 {strides = array<i32>} : memref<256x256xf32, #tpu.memory_space<vmem>>, vector<256x256xf32>,
    return
  }
}

</mosaic_0001>

<bundles_post_ra>
// kernel: vae_forward.3
= control target key start
LH: loop header
LB: loop body
LE: loop exit
PB: predicated region body
PF: predicated region fallthrough
CT: control target
= control target key end

     0   :  { %vm216_vm0 = vcmask 261120   ;;  %vm691_vm7 = vcmask 1040384   ;;  %s7774_s1 = inlined_call_operand.vmem [shape: bf16[32,256], index: 1, kind: input, shape index: {}]   ;;  %s7775_s0 = inlined_call_operand.vmem [shape: bf16[256,32], index: 0, kind: input, shape index: {}]   ;;  %s7776_s4 = inlined_call_operand.vmem [shape: bf16[256,128], index: 4, kind: input, shape index: {}]   ;;  %s7777_s2 = inlined_call_operand.vmem [shape: f32[1,256], index: 2, kind: input, shape index: {}]   ;;  %s7778_s3 = inlined_call_operand.vmem [shape: f32[1,256], index: 3, kind: input, shape index: {}]   ;;  %s7779_s7 = inlined_call_operand.vmem [shape: bf16[128,128], index: 7, kind: input, shape index: {}]   ;;  %s7780_s5 = inlined_call_operand.vmem [shape: f32[1,128], index: 5, kind: input, shape index: {}]   ;;  %s7781_s6 = inlined_call_operand.vmem [shape: f32[1,128], index: 6, kind: input, shape index: {}]   ;;  %s7782_s10 = inlined_call_operand.vmem [shape: bf16[128,256], index: 10, kind: input, shape index: {}]   ;;  %s7783_s13 = inlined_call_operand.vmem [shape: bf16[128,128], index: 13, kind: input, shape index: {}]   ;;  %s7784_s8 = inlined_call_operand.vmem [shape: f32[1,128], index: 8, kind: input, shape index: {}]   ;;  %s7785_s9 = inlined_call_operand.vmem [shape: f32[1,128], index: 9, kind: input, shape index: {}]   ;;  %s7786_s16 = inlined_call_operand.vmem [shape: bf16[128,128], index: 16, kind: input, shape index: {}]   ;;  %s7787_s11 = inlined_call_operand.vmem [shape: f32[1,256], index: 11, kind: input, shape index: {}]   ;;  %s7788_s25 = inlined_call_operand.vmem [shape: f32[256,256], index: 25, kind: output, shape index: {1}]   ;;  %s7789_s12 = inlined_call_operand.vmem [shape: bf16[256,128], index: 12, kind: input, shape index: {}]   ;;  %s7790_s19 = inlined_call_operand.vmem [shape: bf16[128,256], index: 19, kind: input, shape index: {}]   ;;  %s7791_s14 = inlined_call_operand.vmem [shape: f32[1,128], index: 14, kind: input, shape index: {}]   ;;  %s7792_s15 = inlined_call_operand.vmem [shape: bf16[256,128], index: 15, kind: input, shape index: {}]   ;;  %s7793_s17 = inlined_call_operand.vmem [shape: f32[1,128], index: 17, kind: input, shape index: {}]   ;;  %s7794_s22 = inlined_call_operand.vmem [shape: bf16[256,128], index: 22, kind: input, shape index: {}]   ;;  %s7795_s18 = inlined_call_operand.vmem [shape: bf16[256,128], index: 18, kind: input, shape index: {}]   ;;  %s7796_s20 = inlined_call_operand.vmem [shape: f32[1,256], index: 20, kind: input, shape index: {}]   ;;  %s7797_s21 = inlined_call_operand.vmem [shape: bf16[256,256], index: 21, kind: input, shape index: {}]   ;;  %s7798_s23 = inlined_call_operand.vmem [shape: f32[1,128], index: 23, kind: input, shape index: {}]   ;;  %s7799_s24 = inlined_call_operand.vmem [shape: f32[256,128], index: 24, kind: output, shape index: {0}]  }
   0x1   :  { %7835 = sst [smem:[#allocation29_spill]] %s7774_s1 }
   0x2   :  { %7836 = sst [smem:[#allocation30_spill]] %s7775_s0 }
   0x3   :  { %7837 = sst [smem:[#allocation31_spill]] %s7776_s4 }
   0x4   :  { %7838 = sst [smem:[#allocation32_spill]] %s7777_s2 }
   0x5   :  { %7839 = sst [smem:[#allocation33_spill]] %s7778_s3 }
   0x6   :  { %7840 = sst [smem:[#allocation34_spill]] %s7779_s7 }
   0x7   :  { %7841 = sst [smem:[#allocation35_spill]] %s7780_s5 }
   0x8   :  { %7842 = sst [smem:[#allocation36_spill]] %s7781_s6 }
   0x9   :  { %7843 = sst [smem:[#allocation37_spill]] %s7782_s10 }
   0xa   :  { %7844 = sst [smem:[#allocation38_spill]] %s7783_s13 }
   0xb   :  { %s7845_s5 = sld [smem:[#allocation29_spill]] }
   0xc   :  { %s7846_s29 = sld [smem:[#allocation30_spill]] }
   0xd   :  { %s7871_s27 = sld [smem:[#allocation31_spill]] }
   0xe   :  { %s7872_s3 = sld [smem:[#allocation32_spill]] }
   0xf   :  { %s7916_s2 = sld [smem:[#allocation34_spill]] }
  0x10   :  { %s7918_s28 = sld [smem:[#allocation36_spill]] }
  0x11   :  { %v4033_v0 = vld [vmem:[%s7845_s5 + $0x10] sm:$0xf]  ;;  %v4442_v1 = vld [vmem:[%s7845_s5 + $0x14] sm:$0xf0]  ;;  %v4025_v2 = vld [vmem:[%s7845_s5] sm:$0xf] }
  0x12   :  { %v4034_v3 = vor.u32 %v4442_v1, %v4033_v0  ;;  %v4440_v4 = vld [vmem:[%s7845_s5 + $0x4] sm:$0xf0]  ;;  %v4441_v5 = vld [vmem:[%s7845_s5 + $0x14] sm:$0xf]  ;;  %v4035_v6 = vld [vmem:[%s7845_s5 + $0x18] sm:$0xf0] }
  0x13   :  { %v4026_v7 = vor.u32 %v4440_v4, %v4025_v2  ;;  %v4038_v8 = vor.u32 %v4441_v5, %v4035_v6  ;;  %v4423_v9 = vld [vmem:[%s7846_s29] sm:$0xff]  ;;  %v4428_v10 = vld [vmem:[%s7846_s29 + $0x28] sm:$0xff]  ;;  %v4429_v15 = vld [vmem:[%s7846_s29 + $0x30] sm:$0xff]  ;;  %s7919_s7 = sld [smem:[#allocation37_spill]] }
  0x14   :  { %271 = vmatpush.bf16.msra.mxu0 %v4034_v3  ;;  %4768 = vmatpush.bf16.msra.mxu1 %v4034_v3  ;;  %v4439_v11 = vld [vmem:[%s7845_s5 + $0x4] sm:$0xf]  ;;  %v4027_v12 = vld [vmem:[%s7845_s5 + $0x8] sm:$0xf0]  ;;  %v4425_v17 = vld [vmem:[%s7846_s29 + $0x10] sm:$0xff] }
  0x15   :  { %4770 = vmatpush.bf16.msra.mxu3 %v4034_v3  ;;  %4769 = vmatpush.bf16.msra.mxu2 %v4034_v3  ;;  %v4030_v13 = vor.u32 %v4439_v11, %v4027_v12  ;;  %v4424_v14 = vld [vmem:[%s7846_s29 + $0x8] sm:$0xff]  ;;  %v4435_v16 = vld [vmem:[%s7846_s29 + $0x60] sm:$0xff]  ;;  %v4430_v18 = vld [vmem:[%s7846_s29 + $0x38] sm:$0xff] }
  0x16   :  { %v4433_v19 = vld [vmem:[%s7846_s29 + $0x50] sm:$0xff]  ;;  %v4436_v20 = vld [vmem:[%s7846_s29 + $0x68] sm:$0xff]  ;;  %v4426_v21 = vld [vmem:[%s7846_s29 + $0x18] sm:$0xff] }
  0x17   :  { %v4431_v22 = vld [vmem:[%s7846_s29 + $0x40] sm:$0xff]  ;;  %v4434_v23 = vld [vmem:[%s7846_s29 + $0x58] sm:$0xff]  ;;  %v4437_v24 = vld [vmem:[%s7846_s29 + $0x70] sm:$0xff] }
  0x18   :  { %272 = vmatpush.bf16.msra.mxu0 %v4026_v7  ;;  %4771 = vmatpush.bf16.msra.mxu1 %v4026_v7  ;;  %v4427_v25 = vld [vmem:[%s7846_s29 + $0x20] sm:$0xff]  ;;  %v4432_v26 = vld [vmem:[%s7846_s29 + $0x48] sm:$0xff]  ;;  %v5075_v27 = vld [vmem:[%s7846_s29 + $0x78] sm:$0xff]  ;;  %s7917_s29 = sld [smem:[#allocation35_spill]] }
  0x19   :  { %4773 = vmatpush.bf16.msra.mxu3 %v4026_v7  ;;  %4772 = vmatpush.bf16.msra.mxu2 %v4026_v7 }
  0x1b   :  { %4039 = vmatmul.msk.bf16.vlgmr.msra.gmra.mxu0 %vm216_vm0, %v4423_v9  ;;  %4044 = vmatmul.msk.bf16.vlgmr.msra.gmra.mxu1 %vm216_vm0, %v4428_v10 }
  0x1c   :  { %360 = vmatpush.bf16.msrb.mxu1 %v4038_v8  ;;  %4051 = vmatmul.msk.bf16.vlgmr.msra.gmra.mxu3 %vm216_vm0, %v4435_v16 }
  0x1d   :  { %4049 = vmatmul.msk.bf16.vlgmr.msra.gmra.mxu2 %vm216_vm0, %v4433_v19 }
  0x20   :  { %361 = vmatpush.bf16.msrb.mxu1 %v4030_v13 }
  0x2b   :  { %4040 = vmatmul.msk.bf16.gmra.mxu0 %vm216_vm0, %v4424_v14  ;;  %4045 = vmatmul.msk.bf16.gmra.mxu1 %vm216_vm0, %v4429_v15 }
  0x2c   :  { %4052 = vmatmul.msk.bf16.gmra.mxu3 %vm216_vm0, %v4436_v20 }
  0x2d   :  { %4050 = vmatmul.msk.bf16.gmra.mxu2 %vm216_vm0, %v4434_v23 }
  0x3b   :  { %4041 = vmatmul.msk.bf16.gmra.mxu0 %vm216_vm0, %v4425_v17  ;;  %4046 = vmatmul.msk.bf16.gmra.mxu1 %vm216_vm0, %v4430_v18 }
  0x3c   :  { %4053 = vmatmul.msk.bf16.gmra.mxu3 %vm216_vm0, %v4437_v24 }
  0x4b   :  { %4042 = vmatmul.msk.bf16.gmra.mxu0 %vm216_vm0, %v4426_v21  ;;  %4047 = vmatmul.msk.bf16.gmra.mxu1 %vm216_vm0, %v4431_v22 }
  0x4c   :  { %4054 = vmatmul.msk.bf16.gmra.mxu3 %vm216_vm0, %v5075_v27 }
  0x5b   :  { %4043 = vmatmul.msk.bf16.gmra.mxu0 %vm216_vm0, %v4427_v25  ;;  %4048 = vmatmul.msk.bf16.gmra.mxu1 %vm216_vm0, %v4432_v26 }
  0x6b   :  { %4055 = vmatmul.msk.bf16.vlgmr.msrb.gmra.mxu1 %vm216_vm0, %v4423_v9 }
  0x7b   :  { %4056 = vmatmul.msk.bf16.gmra.mxu1 %vm216_vm0, %v4424_v14 }
  0x8b   :  { %4057 = vmatmul.msk.bf16.gmra.mxu1 %vm216_vm0, %v4425_v17 }
  0x98   :  { %v5082_v28 = vpop.f32.mrf.mxu1  ;;  %v5119_v43 = vpop.f32.mrf.mxu0 }
  0x99   :  { %v519_v58 = vmul.f32 %v5119_v43, %v5119_v43 }
  0x9b   :  { %4058 = vmatmul.msk.bf16.gmra.mxu1 %vm216_vm0, %v4426_v21 }
  0xa0   :  { %v5085_v29 = vpop.f32.mrf.mxu1  ;;  %v5124_v45 = vpop.f32.mrf.mxu0 }
  0xa1   :  { %v443_v57 = vadd.f32 %v5124_v45, %v5119_v43  ;;  %v521_v59 = vmul.f32 %v5124_v45, %v5124_v45 }
  0xa3   :  { %v583_v63 = vadd.f32 %v521_v59, %v519_v58  ;;  %v539_v59 = vmul.f32 %v5082_v28, %v5082_v28 }
  0xa8   :  { %v5087_v30 = vpop.f32.mrf.mxu1  ;;  %v5129_v47 = vpop.f32.mrf.mxu0 }
  0xa9   :  { %v444_v61 = vadd.f32 %v443_v57, %v5129_v47  ;;  %v523_v62 = vmul.f32 %v5129_v47, %v5129_v47 }
  0xab   :  { %4059 = vmatmul.msk.bf16.gmra.mxu1 %vm216_vm0, %v4427_v25  ;;  %v584_v1 = vadd.f32 %v583_v63, %v523_v62 }
  0xb0   :  { %v5090_v31 = vpop.f32.mrf.mxu1  ;;  %v5133_v49 = vpop.f32.mrf.mxu0 }
  0xb1   :  { %v445_v0 = vadd.f32 %v444_v61, %v5133_v49  ;;  %v525_v2 = vmul.f32 %v5133_v49, %v5133_v49 }
  0xb3   :  { %v585_v7 = vadd.f32 %v584_v1, %v525_v2 }
  0xb8   :  { %v5092_v32 = vpop.f32.mrf.mxu1  ;;  %v5140_v52 = vpop.f32.mrf.mxu0 }
  0xb9   :  { %v446_v5 = vadd.f32 %v445_v0, %v5140_v52  ;;  %v527_v6 = vmul.f32 %v5140_v52, %v5140_v52  ;;  %v541_v0 = vmul.f32 %v5085_v29, %v5085_v29 }
  0xbb   :  { %4060 = vmatmul.msk.bf16.gmra.mxu1 %vm216_vm0, %v4428_v10  ;;  %v586_v9 = vadd.f32 %v585_v7, %v527_v6  ;;  %v5211_v6 = vpop.f32.mrf.mxu3 }
  0xbc   :  { %7853 = vst [vmem:[#allocation8_spill] sm:$0xff] %v5211_v6 }
  0xc0   :  { %v5095_v33 = vpop.f32.mrf.mxu1  ;;  %v5144_v54 = vpop.f32.mrf.mxu0 }
  0xc1   :  { %v447_v8 = vadd.f32 %v446_v5, %v5144_v54  ;;  %v529_v10 = vmul.f32 %v5144_v54, %v5144_v54  ;;  %v543_v5 = vmul.f32 %v5087_v30, %v5087_v30 }
  0xc8   :  { %v5097_v34 = vpop.f32.mrf.mxu1  ;;  %v5149_v56 = vpop.f32.mrf.mxu0 }
  0xc9   :  { %7851 = vst [vmem:[#allocation6_spill] sm:$0xff] %v5149_v56  ;;  %v448_v13 = vadd.f32 %v447_v8, %v5149_v56  ;;  %v531_v14 = vmul.f32 %v5149_v56, %v5149_v56 }
  0xcb   :  { %4061 = vmatmul.msk.bf16.gmra.mxu1 %vm216_vm0, %v4429_v15  ;;  %v587_v15 = vadd.f32 %v586_v9, %v529_v10  ;;  %v545_v10 = vmul.f32 %v5090_v31, %v5090_v31 }
  0xcd   :  { %v588_v17 = vadd.f32 %v587_v15, %v531_v14  ;;  %v547_v15 = vmul.f32 %v5092_v32, %v5092_v32 }
  0xd0   :  { %v5100_v35 = vpop.f32.mrf.mxu1  ;;  %v5166_v3 = vpop.f32.mrf.mxu0 }
  0xd1   :  { %7852 = vst [vmem:[#allocation7_spill] sm:$0xff] %v5166_v3 }
  0xd8   :  { %v5102_v36 = vpop.f32.mrf.mxu1  ;;  %v5178_v12 = vpop.f32.mrf.mxu0 }
  0xd9   :  { %7847 = vst [vmem:[#allocation2_spill] sm:$0xff] %v5102_v36  ;;  %v535_v21 = vmul.f32 %v5178_v12, %v5178_v12 }
  0xdb   :  { %4062 = vmatmul.msk.bf16.gmra.mxu1 %vm216_vm0, %v4430_v18  ;;  %v533_v18 = vmul.f32 %v5166_v3, %v5166_v3 }
  0xe0   :  { %v5105_v37 = vpop.f32.mrf.mxu1 }
  0xe1   :  { %7848 = vst [vmem:[#allocation3_spill] sm:$0xff] %v5105_v37 }
  0xe8   :  { %v5107_v38 = vpop.f32.mrf.mxu1 }
  0xeb   :  { %4063 = vmatmul.msk.bf16.gmra.mxu1 %vm216_vm0, %v4431_v22  ;;  %v589_v22 = vadd.f32 %v588_v17, %v533_v18  ;;  %v5224_v18 = vpop.f32.mrf.mxu3 }
  0xec   :  { %7855 = vst [vmem:[#allocation10_spill] sm:$0xff] %v5224_v18 }
  0xed   :  { %v590_v25 = vadd.f32 %v589_v22, %v535_v21  ;;  %v549_v22 = vmul.f32 %v5095_v33, %v5095_v33 }
  0xf0   :  { %v5110_v39 = vpop.f32.mrf.mxu1 }
  0xf8   :  { %v5112_v40 = vpop.f32.mrf.mxu1 }
  0xfb   :  { %4064 = vmatmul.msk.bf16.gmra.mxu1 %vm216_vm0, %v4432_v26 }
 0x100   :  { %v5115_v41 = vpop.f32.mrf.mxu1 }
 0x108   :  { %v5117_v42 = vpop.f32.mrf.mxu1 }
 0x10b   :  { %4065 = vmatmul.msk.bf16.gmra.mxu1 %vm216_vm0, %v4433_v19 }
 0x110   :  { %v5122_v44 = vpop.f32.mrf.mxu1 }
 0x118   :  { %v5126_v46 = vpop.f32.mrf.mxu1 }
 0x119   :  { %7849 = vst [vmem:[#allocation4_spill] sm:$0xff] %v5126_v46 }
 0x11b   :  { %4066 = vmatmul.msk.bf16.gmra.mxu1 %vm216_vm0, %v4434_v23  ;;  %v5193_v23 = vpop.f32.mrf.mxu0 }
 0x11c   :  { %v537_v26 = vmul.f32 %v5193_v23, %v5193_v23 }
 0x11e   :  { %v591_v58 = vadd.f32 %v590_v25, %v537_v26  ;;  %v551_v26 = vmul.f32 %v5097_v34, %v5097_v34 }
 0x120   :  { %v5131_v48 = vpop.f32.mrf.mxu1  ;;  %v592_v62 = vadd.f32 %v591_v58, %v539_v59 }
 0x121   :  { %7850 = vst [vmem:[#allocation5_spill] sm:$0xff] %v5131_v48 }
 0x122   :  { %v593_v2 = vadd.f32 %v592_v62, %v541_v0  ;;  %v553_v62 = vmul.f32 %v5100_v35, %v5100_v35  ;;  %v5240_v0 = vpop.f32.mrf.mxu3 }
 0x124   :  { %v594_v8 = vadd.f32 %v593_v2, %v543_v5  ;;  %v555_v5 = vmul.f32 %v5102_v36, %v5102_v36 }
 0x126   :  { %v595_v14 = vadd.f32 %v594_v8, %v545_v10 }
 0x128   :  { %v5135_v50 = vpop.f32.mrf.mxu1 }
 0x12b   :  { %4067 = vmatmul.msk.bf16.gmra.mxu1 %vm216_vm0, %v4435_v16  ;;  %v449_v16 = vadd.f32 %v448_v13, %v5166_v3 }
 0x130   :  { %v5138_v51 = vpop.f32.mrf.mxu1 }
 0x138   :  { %v5142_v53 = vpop.f32.mrf.mxu1 }
 0x13b   :  { %4068 = vmatmul.msk.bf16.gmra.mxu1 %vm216_vm0, %v4436_v20  ;;  %v450_v20 = vadd.f32 %v449_v16, %v5178_v12  ;;  %v5221_v16 = vpop.f32.mrf.mxu2 }
 0x13c   :  { %7854 = vst [vmem:[#allocation9_spill] sm:$0xff] %v5221_v16 }
 0x140   :  { %v5147_v55 = vpop.f32.mrf.mxu1 }
 0x143   :  { %v5234_v59 = vpop.f32.mrf.mxu2 }
 0x144   :  { %7857 = vst [vmem:[#allocation12_spill] sm:$0xff] %v5234_v59 }
 0x148   :  { %v5157_v60 = vpop.f32.mrf.mxu1 }
 0x14b   :  { %4069 = vmatmul.msk.bf16.gmra.mxu1 %vm216_vm0, %v4437_v24  ;;  %v451_v24 = vadd.f32 %v450_v20, %v5193_v23  ;;  %v596_v20 = vadd.f32 %v595_v14, %v547_v15  ;;  %v5250_v14 = vpop.f32.mrf.mxu2 }
 0x14c   :  { %7859 = vst [vmem:[#allocation14_spill] sm:$0xff] %v5250_v14 }
 0x14d   :  { %v452_v57 = vadd.f32 %v451_v24, %v5082_v28  ;;  %v597_v25 = vadd.f32 %v596_v20, %v549_v22  ;;  %v5255_v22 = vpop.f32.mrf.mxu3 }
 0x14e   :  { %7860 = vst [vmem:[#allocation15_spill] sm:$0xff] %v5255_v22 }
 0x14f   :  { %v453_v61 = vadd.f32 %v452_v57, %v5085_v29  ;;  %v598_v58 = vadd.f32 %v597_v25, %v551_v26  ;;  %v561_v26 = vmul.f32 %v5234_v59, %v5234_v59 }
 0x150   :  { %v5168_v4 = vpop.f32.mrf.mxu1 }
 0x151   :  { %v454_v1 = vadd.f32 %v453_v61, %v5087_v30  ;;  %v599_v2 = vadd.f32 %v598_v58, %v553_v62  ;;  %v563_v62 = vmul.f32 %v5250_v14, %v5250_v14 }
 0x153   :  { %v455_v7 = vadd.f32 %v454_v1, %v5090_v31  ;;  %v600_v8 = vadd.f32 %v599_v2, %v555_v5  ;;  %v5265_v2 = vpop.f32.mrf.mxu2 }
 0x154   :  { %7861 = vst [vmem:[#allocation16_spill] sm:$0xff] %v5265_v2 }
 0x155   :  { %v456_v13 = vadd.f32 %v455_v7, %v5092_v32  ;;  %v5267_v5 = vpop.f32.mrf.mxu3 }
 0x157   :  { %v457_v17 = vadd.f32 %v456_v13, %v5095_v33  ;;  %v557_v13 = vmul.f32 %v5105_v37, %v5105_v37 }
 0x158   :  { %v5176_v11 = vpop.f32.mrf.mxu1 }
 0x159   :  { %v458_v24 = vadd.f32 %v457_v17, %v5097_v34  ;;  %v559_v17 = vmul.f32 %v5221_v16, %v5221_v16  ;;  %v601_v20 = vadd.f32 %v600_v8, %v557_v13  ;;  %v565_v13 = vmul.f32 %v5265_v2, %v5265_v2 }
 0x15b   :  { %4070 = vmatmul.msk.bf16.gmra.mxu1 %vm216_vm0, %v5075_v27  ;;  %v459_v57 = vadd.f32 %v458_v24, %v5100_v35  ;;  %v602_v25 = vadd.f32 %v601_v20, %v559_v17  ;;  %v567_v20 = vmul.f32 %v5211_v6, %v5211_v6 }
 0x15d   :  { %v460_v1 = vadd.f32 %v459_v57, %v5102_v36 }
 0x15f   :  { %v461_v7 = vadd.f32 %v460_v1, %v5105_v37  ;;  %v603_v1 = vadd.f32 %v602_v25, %v561_v26  ;;  %v520_v26 = vmul.f32 %v5107_v38, %v5107_v38 }
 0x160   :  { %v5188_v19 = vpop.f32.mrf.mxu1 }
 0x161   :  { %v462_v15 = vadd.f32 %v461_v7, %v5221_v16  ;;  %v604_v8 = vadd.f32 %v603_v1, %v563_v62  ;;  %v524_v62 = vmul.f32 %v5112_v40, %v5112_v40  ;;  %v569_v1 = vmul.f32 %v5224_v18, %v5224_v18 }
 0x162   :  { %v528_v16 = vmul.f32 %v5117_v42, %v5117_v42 }
 0x163   :  { %v463_v24 = vadd.f32 %v462_v15, %v5234_v59  ;;  %v605_v25 = vadd.f32 %v604_v8, %v565_v13  ;;  %v5289_v59 = vpop.f32.mrf.mxu3  ;;  %v526_v8 = vmul.f32 %v5115_v41, %v5115_v41 }
 0x164   :  { %7863 = vst [vmem:[#allocation18_spill] sm:$0xff] %v5289_v59 }
 0x165   :  { %v464_v58 = vadd.f32 %v463_v24, %v5250_v14  ;;  %v522_v24 = vmul.f32 %v5110_v39, %v5110_v39 }
 0x167   :  { %v465_v7 = vadd.f32 %v464_v58, %v5265_v2  ;;  %v480_v58 = vadd.f32 %v5110_v39, %v5107_v38  ;;  %v620_v56 = vadd.f32 %v522_v24, %v520_v26  ;;  %v606_v2 = vadd.f32 %v605_v25, %v567_v20 }
 0x168   :  { %v5198_v27 = vpop.f32.mrf.mxu1  ;;  %v530_v26 = vmul.f32 %v5122_v44, %v5122_v44 }
 0x169   :  { %v466_v17 = vadd.f32 %v465_v7, %v5211_v6  ;;  %v481_v3 = vadd.f32 %v480_v58, %v5112_v40  ;;  %v621_v6 = vadd.f32 %v620_v56, %v524_v62  ;;  %v607_v24 = vadd.f32 %v606_v2, %v569_v1 }
 0x16a   :  { %v573_v62 = vmul.f32 %v5255_v22, %v5255_v22 }
 0x16b   :  { %v467_v7 = vadd.f32 %v466_v17, %v5224_v18  ;;  %v482_v14 = vadd.f32 %v481_v3, %v5115_v41  ;;  %v571_v17 = vmul.f32 %v5240_v0, %v5240_v0  ;;  %v622_v25 = vadd.f32 %v621_v6, %v526_v8 }
 0x16c   :  { %v532_v3 = vmul.f32 %v5126_v46, %v5126_v46  ;;  %v534_v6 = vmul.f32 %v5131_v48, %v5131_v48 }
 0x16d   :  { %v468_v58 = vadd.f32 %v467_v7, %v5240_v0  ;;  %v483_v20 = vadd.f32 %v482_v14, %v5117_v42  ;;  %v623_v18 = vadd.f32 %v622_v25, %v528_v16  ;;  %v608_v36 = vadd.f32 %v607_v24, %v571_v17  ;;  %v5315_v16 = vpop.f32.mrf.mxu3 }
 0x16e   :  { %7865 = vst [vmem:[#allocation20_spill] sm:$0xff] %v5315_v16 }
 0x16f   :  { %v484_v56 = vadd.f32 %v483_v20, %v5122_v44  ;;  %v469_v37 = vadd.f32 %v468_v58, %v5255_v22  ;;  %v624_v1 = vadd.f32 %v623_v18, %v530_v26  ;;  %v536_v20 = vmul.f32 %v5135_v50, %v5135_v50 }
 0x170   :  { %v5204_v63 = vpop.f32.mrf.mxu1  ;;  %v575_v58 = vmul.f32 %v5267_v5, %v5267_v5  ;;  %v609_v24 = vadd.f32 %v608_v36, %v573_v62  ;;  %v538_v26 = vmul.f32 %v5138_v51, %v5138_v51  ;;  %v542_v62 = vmul.f32 %v5147_v55, %v5147_v55 }
 0x171   :  { %v485_v2 = vadd.f32 %v484_v56, %v5126_v46  ;;  %v625_v7 = vadd.f32 %v624_v1, %v532_v3  ;;  %v470_v17 = vadd.f32 %v469_v37, %v5267_v5  ;;  %v577_v1 = vmul.f32 %v5289_v59, %v5289_v59 }
 0x172   :  { %v610_v46 = vadd.f32 %v609_v24, %v575_v58 }
 0x173   :  { %v486_v8 = vadd.f32 %v485_v2, %v5131_v48  ;;  %v626_v25 = vadd.f32 %v625_v7, %v534_v6  ;;  %v540_v2 = vmul.f32 %v5142_v53, %v5142_v53  ;;  %v471_v48 = vadd.f32 %v470_v17, %v5289_v59 }
 0x174   :  { %v579_v17 = vmul.f32 %v5315_v16, %v5315_v16  ;;  %v611_v58 = vadd.f32 %v610_v46, %v577_v1 }
 0x175   :  { %v487_v18 = vadd.f32 %v486_v8, %v5135_v50  ;;  %v627_v56 = vadd.f32 %v626_v25, %v536_v20  ;;  %v544_v20 = vmul.f32 %v5157_v60, %v5157_v60  ;;  %v5343_v24 = vpop.f32.mrf.mxu3 }
 0x176   :  { %7866 = vst [vmem:[#allocation21_spill] sm:$0xff] %v5343_v24  ;;  %v612_v46 = vadd.f32 %v611_v58, %v579_v17  ;;  %v554_v17 = vmul.f32 %v5204_v63, %v5204_v63 }
 0x177   :  { %v488_v3 = vadd.f32 %v487_v18, %v5138_v51  ;;  %v628_v37 = vadd.f32 %v627_v56, %v538_v26  ;;  %v472_v18 = vadd.f32 %v471_v48, %v5315_v16  ;;  %v546_v56 = vmul.f32 %v5168_v4, %v5168_v4 }
 0x178   :  { %v5214_v9 = vpop.f32.mrf.mxu1 }
 0x179   :  { %v489_v36 = vadd.f32 %v488_v3, %v5142_v53  ;;  %v629_v7 = vadd.f32 %v628_v37, %v540_v2  ;;  %v473_v48 = vadd.f32 %v472_v18, %v5343_v24  ;;  %v581_v37 = vmul.f32 %v5343_v24, %v5343_v24 }
 0x17b   :  { %v490_v8 = vadd.f32 %v489_v36, %v5147_v55  ;;  %v630_v26 = vadd.f32 %v629_v7, %v542_v62  ;;  %v548_v36 = vmul.f32 %v5176_v11, %v5176_v11  ;;  %v550_v62 = vmul.f32 %v5188_v19, %v5188_v19 }
 0x17c   :  { %v613_v18 = vadd.f32 %v612_v46, %v581_v37 }
 0x17d   :  { %v491_v25 = vadd.f32 %v490_v8, %v5157_v60  ;;  %v631_v3 = vadd.f32 %v630_v26, %v544_v20  ;;  %v474_v26 = vrot.slane %v473_v48, 4 }
 0x17f   :  { %v492_v2 = vadd.f32 %v491_v25, %v5168_v4  ;;  %v632_v59 = vadd.f32 %v631_v3, %v546_v56  ;;  %v552_v25 = vmul.f32 %v5198_v27, %v5198_v27  ;;  %v556_v3 = vmul.f32 %v5214_v9, %v5214_v9 }
 0x180   :  { %v5226_v21 = vpop.f32.mrf.mxu1 }
 0x181   :  { %7856 = vst [vmem:[#allocation11_spill] sm:$0xff] %v5226_v21  ;;  %v493_v1 = vadd.f32 %v492_v2, %v5176_v11  ;;  %v633_v8 = vadd.f32 %v632_v59, %v548_v36  ;;  %v475_v59 = vadd.f32 %v474_v26, %v473_v48  ;;  %v614_v2 = vrot.slane %v613_v18, 4 }
 0x182   :  { %v558_v37 = vmul.f32 %v5226_v21, %v5226_v21 }
 0x183   :  { %v494_v20 = vadd.f32 %v493_v1, %v5188_v19  ;;  %v634_v24 = vadd.f32 %v633_v8, %v550_v62 }
 0x185   :  { %v495_v22 = vadd.f32 %v494_v20, %v5198_v27  ;;  %v635_v58 = vadd.f32 %v634_v24, %v552_v25  ;;  %v615_v20 = vadd.f32 %v614_v2, %v613_v18 }
 0x187   :  { %v496_v56 = vadd.f32 %v495_v22, %v5204_v63  ;;  %v636_v1 = vadd.f32 %v635_v58, %v554_v17  ;;  %v476_v22 = vrot.slane %v475_v59, 2 }
 0x188   :  { %v5236_v61 = vpop.f32.mrf.mxu1 }
 0x189   :  { %v497_v36 = vadd.f32 %v496_v56, %v5214_v9  ;;  %v637_v62 = vadd.f32 %v636_v1, %v556_v3  ;;  %v560_v24 = vmul.f32 %v5236_v61, %v5236_v61  ;;  %v477_v3 = vadd.f32 %v476_v22, %v475_v59 }
 0x18a   :  { %v616_v1 = vrot.slane %v615_v20, 2 }
 0x18b   :  { %v498_v8 = vadd.f32 %v497_v36, %v5226_v21  ;;  %v638_v48 = vadd.f32 %v637_v62, %v558_v37 }
 0x18d   :  { %v499_v25 = vadd.f32 %v498_v8, %v5236_v61  ;;  %v639_v17 = vadd.f32 %v638_v48, %v560_v24  ;;  %v478_v24 = vrot.slane %v477_v3, 1 }
 0x190   :  { %v5246_v10 = vpop.f32.mrf.mxu1 }
 0x191   :  { %7858 = vst [vmem:[#allocation13_spill] sm:$0xff] %v5246_v10  ;;  %v562_v26 = vmul.f32 %v5246_v10, %v5246_v10  ;;  %v500_v58 = vadd.f32 %v499_v25, %v5246_v10  ;;  %v617_v25 = vadd.f32 %v616_v1, %v615_v20 }
 0x193   :  { %v640_v21 = vadd.f32 %v639_v17, %v562_v26 }
 0x198   :  { %v5260_v57 = vpop.f32.mrf.mxu1 }
 0x199   :  { %v564_v56 = vmul.f32 %v5260_v57, %v5260_v57  ;;  %v501_v36 = vadd.f32 %v500_v58, %v5260_v57 }
 0x19b   :  { %v641_v37 = vadd.f32 %v640_v21, %v564_v56  ;;  %v479_v21 = vadd.f32 %v478_v24, %v477_v3  ;;  %v618_v56 = vrot.slane %v617_v25, 1 }
 0x1a0   :  { %v5272_v15 = vpop.f32.mrf.mxu1 }
 0x1a1   :  { %7862 = vst [vmem:[#allocation17_spill] sm:$0xff] %v5272_v15  ;;  %v566_v18 = vmul.f32 %v5272_v15, %v5272_v15  ;;  %v502_v62 = vadd.f32 %v501_v36, %v5272_v15 }
 0x1a3   :  { %v642_v59 = vadd.f32 %v641_v37, %v566_v18 }
 0x1a8   :  { %v5293_v13 = vpop.f32.mrf.mxu1 }
 0x1a9   :  { %v568_v8 = vmul.f32 %v5293_v13, %v5293_v13  ;;  %v503_v48 = vadd.f32 %v502_v62, %v5293_v13 }
 0x1ab   :  { %v643_v26 = vadd.f32 %v642_v59, %v568_v8  ;;  %v5404_v8 = vmul.f32 0.00390625, %v479_v21 }
 0x1b0   :  { %v5313_v14 = vpop.f32.mrf.mxu1 }
 0x1b1   :  { %7864 = vst [vmem:[#allocation19_spill] sm:$0xff] %v5313_v14  ;;  %v570_v22 = vmul.f32 %v5313_v14, %v5313_v14  ;;  %v504_v17 = vadd.f32 %v503_v48, %v5313_v14  ;;  %v619_v48 = vadd.f32 %v618_v56, %v617_v25 }
 0x1b3   :  { %v644_v15 = vadd.f32 %v643_v26, %v570_v22 }
 0x1b8   :  { %v5335_v6 = vpop.f32.mrf.mxu1 }
 0x1b9   :  { %v572_v58 = vmul.f32 %v5335_v6, %v5335_v6  ;;  %v505_v36 = vadd.f32 %v504_v17, %v5335_v6  ;;  %v657_v17 = vmul.f32 0.00390625, %v619_v48 }
 0x1bb   :  { %v645_v18 = vadd.f32 %v644_v15, %v572_v58  ;;  %v659_v58 = vmul.f32 %v5404_v8, %v5404_v8 }
 0x1c0   :  { %v5357_v7 = vpop.f32.mrf.mxu1 }
 0x1c1   :  { %7867 = vst [vmem:[#allocation22_spill] sm:$0xff] %v5357_v7  ;;  %v574_v20 = vmul.f32 %v5357_v7, %v5357_v7  ;;  %v506_v37 = vadd.f32 %v505_v36, %v5357_v7 }
 0x1c3   :  { %v646_v24 = vadd.f32 %v645_v18, %v574_v20 }
 0x1c8   :  { %v5371_v46 = vpop.f32.mrf.mxu1 }
 0x1c9   :  { %7868 = vst [vmem:[#allocation23_spill] sm:$0xff] %v5371_v46  ;;  %v576_v62 = vmul.f32 %v5371_v46, %v5371_v46  ;;  %v507_v3 = vadd.f32 %v506_v37, %v5371_v46  ;;  %v661_v37 = vsub.f32 %v657_v17, %v659_v58  ;;  %v4458_v58 = vld [vmem:[%s7871_s27 + $0x78] sm:$0xff] }
 0x1ca   :  { %1155 = vmatpush.bf16.msrb.mxu3 %v4458_v58 }
 0x1cb   :  { %v647_v22 = vadd.f32 %v646_v24, %v576_v62  ;;  %v663_v48 = vmax.f32 %v661_v37, 0.0 }
 0x1d0   :  { %v5385_v2 = vpop.f32.mrf.mxu1 }
 0x1d1   :  { %7869 = vst [vmem:[#allocation24_spill] sm:$0xff] %v5385_v2  ;;  %v578_v59 = vmul.f32 %v5385_v2, %v5385_v2  ;;  %v508_v26 = vadd.f32 %v507_v3, %v5385_v2 }
 0x1d3   :  { %v648_v36 = vadd.f32 %v647_v22, %v578_v59 }
 0x1d8   :  { %v5399_v1 = vpop.f32.mrf.mxu1 }
 0x1d9   :  { %7870 = vst [vmem:[#allocation25_spill] sm:$0xff] %v5399_v1  ;;  %v580_v15 = vmul.f32 %v5399_v1, %v5399_v1  ;;  %v509_v21 = vadd.f32 %v508_v26, %v5399_v1  ;;  %v666_v26 = vadd.f32 1e-05, %v663_v48 }
 0x1db   :  { %v649_v56 = vadd.f32 %v648_v36, %v580_v15  ;;  %4785 = vrsqrt.f32 %v666_v26  ;;  %vm674_vm4 = vweird.f32 %v666_v26 }
 0x1e0   :  { %v5415_v25 = vpop.f32.mrf.mxu1 }
 0x1e1   :  { %v510_v20 = vadd.f32 %v509_v21, %v5415_v25  ;;  %v582_v18 = vmul.f32 %v5415_v25, %v5415_v25 }
 0x1e3   :  { %v511_v62 = vrot.slane %v510_v20, 4  ;;  %v650_v3 = vadd.f32 %v649_v56, %v582_v18  ;;  %v4448_v18 = vld [vmem:[%s7871_s27 + $0x28] sm:$0xff] }
 0x1e5   :  { %v512_v24 = vadd.f32 %v511_v62, %v510_v20  ;;  %v651_v2 = vrot.slane %v650_v3, 4  ;;  %v4455_v62 = vld [vmem:[%s7871_s27 + $0x60] sm:$0xff] }
 0x1e7   :  { %v513_v7 = vrot.slane %v512_v24, 2  ;;  %v652_v14 = vadd.f32 %v651_v2, %v650_v3  ;;  %v4447_v3 = vld [vmem:[%s7871_s27 + $0x20] sm:$0xff] }
 0x1e9   :  { %v514_v10 = vadd.f32 %v513_v7, %v512_v24  ;;  %v653_v16 = vrot.slane %v652_v14, 2  ;;  %v4450_v7 = vld [vmem:[%s7871_s27 + $0x38] sm:$0xff] }
 0x1ea   :  { %1066 = vmatpush.bf16.msrb.mxu2 %v4450_v7  ;;  %v4453_v7 = vld [vmem:[%s7871_s27 + $0x50] sm:$0xff] }
 0x1eb   :  { %v515_v59 = vrot.slane %v514_v10, 1  ;;  %v654_v22 = vadd.f32 %v653_v16, %v652_v14  ;;  %v4457_v16 = vld [vmem:[%s7871_s27 + $0x70] sm:$0xff] }
 0x1ec   :  { %1156 = vmatpush.bf16.msrb.mxu3 %v4457_v16  ;;  %v4452_v16 = vld [vmem:[%s7871_s27 + $0x48] sm:$0xff] }
 0x1ed   :  { %v516_v1 = vadd.f32 %v515_v59, %v514_v10  ;;  %v655_v15 = vrot.slane %v654_v22, 1  ;;  %v4786_v10 = vpop.eup %4785 }
 0x1ee   :  { %v669_v20 = vmul.f32 %v4786_v10, %v666_v26  ;;  %vm675_vm2 = vweird.f32 %v4786_v10 }
 0x1ef   :  { %v5420_v21 = vmul.f32 0.00390625, %v516_v1  ;;  %v656_v36 = vadd.f32 %v655_v15, %v654_v22  ;;  %v4449_v1 = vld [vmem:[%s7871_s27 + $0x30] sm:$0xff]  ;;  %v4454_v22 = vld [vmem:[%s7871_s27 + $0x58] sm:$0xff]  ;;  %vm676_vm6 = vmor %vm674_vm4, %vm675_vm2 }
 0x1f0   :  { %1067 = vmatpush.bf16.msrb.mxu2 %v4449_v1  ;;  %v670_v37 = vmul.f32 %v4786_v10, %v669_v20  ;;  %v4446_v15 = vld [vmem:[%s7871_s27 + $0x18] sm:$0xff]  ;;  %v4444_v1 = vld [vmem:[%s7871_s27 + $0x8] sm:$0xff] }
 0x1f1   :  { %v658_v46 = vmul.f32 0.00390625, %v656_v36  ;;  %v660_v17 = vmul.f32 %v5420_v21, %v5420_v21 }
 0x1f2   :  { %v671_v48 = vmul.f32 0.5, %v670_v37  ;;  %v665_v37 = vld [vmem:[%s7872_s3] sm:$0x3] }
 0x1f3   :  { %v662_v2 = vsub.f32 %v658_v46, %v660_v17  ;;  %v4456_v46 = vld [vmem:[%s7871_s27 + $0x68] sm:$0xff] }
 0x1f4   :  { %1157 = vmatpush.bf16.msrb.mxu3 %v4456_v46  ;;  %1068 = vmatpush.bf16.msrb.mxu2 %v4448_v18  ;;  %v672_v17 = vsub.f32 1.5, %v671_v48 }
 0x1f5   :  { %v664_v14 = vmax.f32 %v662_v2, 0.0  ;;  %v4445_v2 = vld [vmem:[%s7871_s27 + $0x10] sm:$0xff] }
 0x1f6   :  { %v673_v20 = vmul.f32 %v4786_v10, %v672_v17 }
 0x1f7   :  { %v667_v56 = vadd.f32 1e-05, %v664_v14 }
 0x1f8   :  { %1158 = vmatpush.bf16.msrb.mxu3 %v4455_v62  ;;  %1069 = vmatpush.bf16.msrb.mxu2 %v4447_v3  ;;  %v4451_v3 = vld [vmem:[%s7871_s27 + $0x40] sm:$0xff]  ;;  %v677_v26 = vsel %vm676_vm6, %v4786_v10, %v673_v20 }
 0x1f9   :  { %4787 = vrsqrt.f32 %v667_v56  ;;  %vm684_vm3 = vweird.f32 %v667_v56 }
 0x1fc   :  { %1159 = vmatpush.bf16.msrb.mxu3 %v4454_v22  ;;  %1070 = vmatpush.bf16.msrb.mxu2 %v4446_v15 }
 0x1ff   :  { %v4788_v24 = vpop.eup %4787 }
 0x200   :  { %v679_v59 = vmul.f32 %v4788_v24, %v667_v56  ;;  %vm685_vm1 = vweird.f32 %v4788_v24  ;;  %1160 = vmatpush.bf16.msrb.mxu3 %v4453_v7  ;;  %1071 = vmatpush.bf16.msrb.mxu2 %v4445_v2  ;;  %v4443_v56 = vld [vmem:[%s7871_s27] sm:$0xff]  ;;  %s7875_s27 = sld [smem:[#allocation33_spill]] }
 0x201   :  { %vm686_vm5 = vmor %vm684_vm3, %vm685_vm1 }
 0x202   :  { %v680_v36 = vmul.f32 %v4788_v24, %v679_v59 }
 0x204   :  { %v681_v58 = vmul.f32 0.5, %v680_v36  ;;  %1161 = vmatpush.bf16.msrb.mxu3 %v4452_v16  ;;  %1072 = vmatpush.bf16.msrb.mxu2 %v4444_v1 }
 0x206   :  { %v682_v14 = vsub.f32 1.5, %v681_v58  ;;  %v695_v10 = vld [vmem:[%s7875_s27] sm:$0x3] }
 0x208   :  { %v683_v46 = vmul.f32 %v4788_v24, %v682_v14  ;;  %1162 = vmatpush.bf16.msrb.mxu3 %v4451_v3  ;;  %1073 = vmatpush.bf16.msrb.mxu2 %v4443_v56  ;;  %v7880_v3 = vld [vmem:[#allocation14_spill] sm:$0xff] }
 0x20a   :  { %v687_v18 = vsel %vm686_vm5, %v4788_v24, %v683_v46 }
 0x20b   :  { %v690_v62 = vrot.slane %v687_v18, 7 }
 0x20d   :  { %v692_v48 = vsel %vm691_vm7, %v677_v26, %v690_v62  ;;  %v7881_v26 = vld [vmem:[#allocation8_spill] sm:$0xff] }
 0x20e   :  { %v694_v24 = vmul.f32 %v692_v48, %v665_v37 }
 0x210   :  { %v5476_v59 = vperm.slane %v694_v24, 0  ;;  %v5478_v22 = vperm.slane %v694_v24, 1 }
 0x212   :  { %7873 = vst [vmem:[#allocation26_spill] sm:$0xff] %v5476_v59  ;;  %v702_v15 = vmul.f32 %v5478_v22, %v5420_v21  ;;  %v701_v36 = vmul.f32 %v5476_v59, %v5404_v8  ;;  %v5490_v7 = vmul.f32 %v5478_v22, %v5415_v25  ;;  %v709_v2 = vmul.f32 %v5476_v59, %v5119_v43 }
 0x213   :  { %7874 = vst [vmem:[#allocation27_spill] sm:$0xff] %v5478_v22  ;;  %v710_v21 = vmul.f32 %v5478_v22, %v5107_v38  ;;  %v5498_v8 = vmul.f32 %v5476_v59, %v5124_v45  ;;  %v5502_v16 = vmul.f32 %v5478_v22, %v5110_v39  ;;  %v5506_v1 = vmul.f32 %v5476_v59, %v5129_v47 }
 0x214   :  { %v705_v17 = vrot.slane %v702_v15, 7  ;;  %7876 = vst [vmem:[#allocation28_spill] sm:$0xff] %v5490_v7  ;;  %v5510_v25 = vmul.f32 %v5478_v22, %v5112_v40  ;;  %v5514_v38 = vmul.f32 %v5476_v59, %v5133_v49  ;;  %v5518_v43 = vmul.f32 %v5478_v22, %v5115_v41 }
 0x215   :  { %v5522_v39 = vmul.f32 %v5476_v59, %v5140_v52  ;;  %v5526_v45 = vmul.f32 %v5478_v22, %v5117_v42  ;;  %v5530_v40 = vmul.f32 %v5476_v59, %v5144_v54  ;;  %v5534_v47 = vmul.f32 %v5478_v22, %v5122_v44 }
 0x216   :  { %v706_v58 = vsel %vm691_vm7, %v701_v36, %v705_v17  ;;  %v5538_v41 = vmul.f32 %v5476_v59, %v5178_v12  ;;  %v5542_v49 = vmul.f32 %v5478_v22, %v5135_v50  ;;  %v5546_v42 = vmul.f32 %v5476_v59, %v5193_v23  ;;  %v7882_v36 = vld [vmem:[#allocation23_spill] sm:$0xff] }
 0x217   :  { %v708_v14 = vsub.f32 %v695_v10, %v706_v58  ;;  %v5550_v52 = vmul.f32 %v5478_v22, %v5138_v51  ;;  %v5554_v44 = vmul.f32 %v5476_v59, %v5082_v28  ;;  %v5558_v54 = vmul.f32 %v5478_v22, %v5142_v53  ;;  %v7883_v10 = vld [vmem:[#allocation20_spill] sm:$0xff]  ;;  %v7884_v58 = vld [vmem:[#allocation25_spill] sm:$0xff] }
 0x218   :  { %v5566_v23 = vmul.f32 %v5476_v59, %v5085_v29  ;;  %v5570_v51 = vmul.f32 %v5478_v22, %v5147_v55  ;;  %v5574_v28 = vmul.f32 %v5476_v59, %v5087_v30  ;;  %v5578_v53 = vmul.f32 %v5478_v22, %v5157_v60 }
 0x219   :  { %v5560_v12 = vperm.slane %v708_v14, 0  ;;  %v5562_v50 = vperm.slane %v708_v14, 1  ;;  %v5582_v20 = vmul.f32 %v5476_v59, %v5090_v31  ;;  %v5586_v29 = vmul.f32 %v5478_v22, %v5168_v4 }
 0x21a   :  { %v5590_v55 = vmul.f32 %v5476_v59, %v5092_v32  ;;  %v5594_v30 = vmul.f32 %v5478_v22, %v5176_v11  ;;  %v5598_v60 = vmul.f32 %v5476_v59, %v5095_v33  ;;  %v5602_v31 = vmul.f32 %v5478_v22, %v5188_v19  ;;  %v7877_v33 = vld [vmem:[#allocation2_spill] sm:$0xff] }
 0x21b   :  { %v5606_v4 = vmul.f32 %v5476_v59, %v5097_v34  ;;  %v742_v32 = vmul.f32 %v5478_v22, %v5198_v27  ;;  %v5612_v46 = vmul.f32 %v5476_v59, %v5100_v35  ;;  %v5616_v11 = vmul.f32 %v5478_v22, %v5204_v63  ;;  %v7878_v34 = vld [vmem:[#allocation3_spill] sm:$0xff]  ;;  %v7879_v27 = vld [vmem:[#allocation9_spill] sm:$0xff] }
 0x21c   :  { %v5620_v18 = vmul.f32 %v5476_v59, %v7877_v33  ;;  %v746_v19 = vmul.f32 %v5478_v22, %v5214_v9  ;;  %v5626_v37 = vmul.f32 %v5476_v59, %v7878_v34  ;;  %v749_v62 = vmul.f32 %v5476_v59, %v7879_v27 }
 0x21d   :  { %v750_v35 = vmul.f32 %v5478_v22, %v5236_v61  ;;  %v753_v63 = vmul.f32 %v5476_v59, %v7880_v3  ;;  %v754_v56 = vmul.f32 %v5478_v22, %v5260_v57  ;;  %v757_v48 = vmul.f32 %v5476_v59, %v7881_v26 }
 0x21e   :  { %v758_v9 = vmul.f32 %v5478_v22, %v5293_v13  ;;  %v761_v24 = vmul.f32 %v5476_v59, %v5240_v0  ;;  %v762_v15 = vmul.f32 %v5478_v22, %v5335_v6  ;;  %v765_v61 = vmul.f32 %v5476_v59, %v5267_v5 }
 0x21f   :  { %v766_v17 = vmul.f32 %v5478_v22, %v7882_v36  ;;  %v769_v57 = vmul.f32 %v5476_v59, %v7883_v10  ;;  %v770_v14 = vmul.f32 %v5478_v22, %v7884_v58  ;;  %v778_v13 = vadd.f32 %v5560_v12, %v709_v2  ;;  %v7890_v58 = vld [vmem:[#allocation12_spill] sm:$0xff] }
 0x220   :  { %v779_v33 = vadd.f32 %v5562_v50, %v710_v21  ;;  %v5655_v0 = vadd.f32 %v5562_v50, %v742_v32  ;;  %v5658_v6 = vadd.f32 %v5562_v50, %v746_v19  ;;  %v5661_v5 = vadd.f32 %v5560_v12, %v749_v62 }
 0x221   :  { %v5664_v34 = vadd.f32 %v5562_v50, %v750_v35  ;;  %v5667_v27 = vadd.f32 %v5560_v12, %v753_v63  ;;  %v5670_v3 = vadd.f32 %v5562_v50, %v754_v56  ;;  %v5673_v2 = vadd.f32 %v5560_v12, %v757_v48 }
 0x222   :  { %v5676_v21 = vadd.f32 %v5562_v50, %v758_v9  ;;  %v5679_v32 = vadd.f32 %v5560_v12, %v761_v24  ;;  %v5682_v19 = vadd.f32 %v5562_v50, %v762_v15  ;;  %v5685_v62 = vadd.f32 %v5560_v12, %v765_v61 }
 0x223   :  { %v5688_v35 = vadd.f32 %v5562_v50, %v766_v17  ;;  %v5691_v63 = vadd.f32 %v5560_v12, %v769_v57  ;;  %v5694_v56 = vadd.f32 %v5562_v50, %v770_v14  ;;  %v780_v26 = vadd.f32 %v5560_v12, %v5498_v8  ;;  %v7889_v57 = vld [vmem:[#allocation11_spill] sm:$0xff]  ;;  %v7891_v14 = vld [vmem:[#allocation13_spill] sm:$0xff] }
 0x224   :  { %7885 = vst [vmem:[#allocation2_spill] sm:$0xff] %v5685_v62  ;;  %v842_v48 = vmax.f32 %v778_v13, 0.0  ;;  %v781_v9 = vadd.f32 %v5562_v50, %v5502_v16  ;;  %v843_v24 = vmax.f32 %v779_v33, 0.0  ;;  %v782_v15 = vadd.f32 %v5560_v12, %v5506_v1  ;;  %v7897_v62 = vld [vmem:[#allocation15_spill] sm:$0xff] }
 0x225   :  { %7886 = vst [vmem:[#allocation3_spill] sm:$0xff] %v5688_v35  ;;  %v844_v61 = vmax.f32 %v780_v26, 0.0  ;;  %v784_v36 = vadd.f32 %v5560_v12, %v5514_v38  ;;  %v783_v17 = vadd.f32 %v5562_v50, %v5510_v25  ;;  %v785_v10 = vadd.f32 %v5562_v50, %v5518_v43  ;;  %v7892_v38 = vld [vmem:[#allocation16_spill] sm:$0xff]  ;;  %v7893_v25 = vld [vmem:[#allocation17_spill] sm:$0xff]  ;;  %v7894_v26 = vld [vmem:[#allocation10_spill] sm:$0xff] }
 0x226   :  { %7887 = vst [vmem:[#allocation9_spill] sm:$0xff] %v5691_v63  ;;  %v5710_v8 = vmul.f32 %v5478_v22, %v7889_v57  ;;  %v5714_v16 = vmul.f32 %v5476_v59, %v7890_v58  ;;  %v5718_v1 = vmul.f32 %v5478_v22, %v7891_v14  ;;  %v845_v13 = vmax.f32 %v781_v9, 0.0  ;;  %v7895_v58 = vld [vmem:[#allocation19_spill] sm:$0xff] }
 0x227   :  { %7888 = vst [vmem:[#allocation14_spill] sm:$0xff] %v5694_v56  ;;  %v5722_v33 = vmul.f32 %v5476_v59, %v7892_v38  ;;  %v5726_v43 = vmul.f32 %v5478_v22, %v7893_v25  ;;  %v5730_v57 = vmul.f32 %v5476_v59, %v7894_v26  ;;  %v906_v56 = vpack.c.bf16 %v844_v61, %v842_v48  ;;  %v7898_v61 = vld [vmem:[#allocation22_spill] sm:$0xff] }
 0x228   :  { %v5734_v7 = vmul.f32 %v5478_v22, %v7895_v58  ;;  %v907_v14 = vpack.c.bf16 %v845_v13, %v843_v24  ;;  %v5738_v9 = vadd.f32 %v5560_v12, %v5522_v39  ;;  %v5742_v38 = vadd.f32 %v5560_v12, %v5530_v40  ;;  %v7899_v13 = vld [vmem:[#allocation18_spill] sm:$0xff] }
 0x229   :  { %1074 = vmatmul.bf16.vlgmr.msrb.gmra.mxu2 %v906_v56  ;;  %v846_v25 = vmax.f32 %v782_v15, 0.0  ;;  %v848_v63 = vmax.f32 %v784_v36, 0.0  ;;  %v847_v35 = vmax.f32 %v783_v17, 0.0  ;;  %v849_v26 = vmax.f32 %v785_v10, 0.0  ;;  %v7900_v56 = vld [vmem:[#allocation24_spill] sm:$0xff]  ;;  %v7901_v36 = vld [vmem:[#allocation21_spill] sm:$0xff] }
 0x22a   :  { %7896 = vst [vmem:[#allocation8_spill] sm:$0xff] %v5742_v38  ;;  %v5746_v48 = vmul.f32 %v5476_v59, %v7897_v62  ;;  %v5750_v24 = vmul.f32 %v5478_v22, %v7898_v61  ;;  %v5754_v39 = vmul.f32 %v5476_v59, %v7899_v13  ;;  %1163 = vmatmul.bf16.vlgmr.msrb.gmra.mxu3 %v907_v14 }
 0x22b   :  { %v5758_v40 = vadd.f32 %v5562_v50, %v5526_v45  ;;  %v5762_v15 = vmul.f32 %v5478_v22, %v7900_v56  ;;  %v5766_v62 = vmul.f32 %v5476_v59, %v7901_v36  ;;  %v5770_v17 = vadd.f32 %v5562_v50, %v5534_v47 }
 0x22c   :  { %v794_v10 = vadd.f32 %v5560_v12, %v5538_v41  ;;  %v796_v14 = vadd.f32 %v5560_v12, %v5546_v42  ;;  %v795_v61 = vadd.f32 %v5562_v50, %v5542_v49  ;;  %v908_v13 = vpack.c.bf16 %v848_v63, %v846_v25 }
 0x22d   :  { %v909_v56 = vpack.c.bf16 %v849_v26, %v847_v35  ;;  %v797_v47 = vadd.f32 %v5562_v50, %v5550_v52  ;;  %v851_v22 = vmax.f32 %v5758_v40, 0.0  ;;  %v798_v58 = vadd.f32 %v5560_v12, %v5554_v44 }
 0x22e   :  { %v858_v36 = vmax.f32 %v794_v10, 0.0  ;;  %v860_v59 = vmax.f32 %v796_v14, 0.0  ;;  %v859_v41 = vmax.f32 %v795_v61, 0.0  ;;  %v853_v45 = vmax.f32 %v5770_v17, 0.0 }
 0x22f   :  { %v861_v38 = vmax.f32 %v797_v47, 0.0  ;;  %v800_v42 = vadd.f32 %v5560_v12, %v5566_v23  ;;  %v799_v49 = vadd.f32 %v5562_v50, %v5558_v54  ;;  %v862_v63 = vmax.f32 %v798_v58, 0.0 }
 0x230   :  { %v5790_v35 = vpack.c.bf16 %v860_v59, %v858_v36  ;;  %v801_v52 = vadd.f32 %v5562_v50, %v5570_v51  ;;  %v802_v25 = vadd.f32 %v5560_v12, %v5574_v28  ;;  %v804_v14 = vadd.f32 %v5560_v12, %v5582_v20 }
 0x231   :  { %v5796_v26 = vpack.c.bf16 %v861_v38, %v859_v41  ;;  %v864_v44 = vmax.f32 %v800_v42, 0.0  ;;  %v863_v10 = vmax.f32 %v799_v49, 0.0  ;;  %v803_v59 = vadd.f32 %v5562_v50, %v5578_v53 }
 0x232   :  { %v865_v23 = vmax.f32 %v801_v52, 0.0  ;;  %v866_v61 = vmax.f32 %v802_v25, 0.0  ;;  %v805_v54 = vadd.f32 %v5562_v50, %v5586_v29  ;;  %v868_v51 = vmax.f32 %v804_v14, 0.0 }
 0x233   :  { %v5804_v58 = vpack.c.bf16 %v864_v44, %v862_v63  ;;  %v806_v28 = vadd.f32 %v5560_v12, %v5590_v55  ;;  %v808_v38 = vadd.f32 %v5560_v12, %v5598_v60  ;;  %v867_v20 = vmax.f32 %v803_v59, 0.0 }
 0x234   :  { %v5810_v36 = vpack.c.bf16 %v865_v23, %v863_v10  ;;  %v869_v47 = vmax.f32 %v805_v54, 0.0  ;;  %v807_v41 = vadd.f32 %v5562_v50, %v5594_v30  ;;  %v5814_v53 = vpack.c.bf16 %v868_v51, %v866_v61 }
 0x235   :  { %v870_v42 = vmax.f32 %v806_v28, 0.0  ;;  %v872_v29 = vmax.f32 %v808_v38, 0.0  ;;  %v809_v49 = vadd.f32 %v5562_v50, %v5602_v31  ;;  %v810_v60 = vadd.f32 %v5560_v12, %v5606_v4 }
 0x236   :  { %v5818_v63 = vpack.c.bf16 %v869_v47, %v867_v20  ;;  %v871_v55 = vmax.f32 %v807_v41, 0.0  ;;  %v812_v52 = vadd.f32 %v5560_v12, %v5612_v46  ;;  %v813_v30 = vadd.f32 %v5562_v50, %v5616_v11 }
 0x237   :  { %v5824_v25 = vpack.c.bf16 %v872_v29, %v870_v42  ;;  %v873_v44 = vmax.f32 %v809_v49, 0.0  ;;  %v875_v10 = vmax.f32 %v5655_v0, 0.0  ;;  %v874_v14 = vmax.f32 %v810_v60, 0.0 }
 0x238   :  { %v876_v23 = vmax.f32 %v812_v52, 0.0  ;;  %v814_v31 = vadd.f32 %v5560_v12, %v5620_v18  ;;  %v816_v61 = vadd.f32 %v5560_v12, %v5626_v37  ;;  %v877_v46 = vmax.f32 %v813_v30, 0.0 }
 0x239   :  { %1079 = vmatmul.bf16.gmra.mxu2 %v908_v13  ;;  %v5833_v4 = vpack.c.bf16 %v873_v44, %v871_v55  ;;  %v817_v59 = vadd.f32 %v5562_v50, %v5710_v8  ;;  %v879_v54 = vmax.f32 %v5658_v6, 0.0  ;;  %v820_v18 = vadd.f32 %v5560_v12, %v5714_v16 }
 0x23a   :  { %1168 = vmatmul.bf16.gmra.mxu3 %v909_v56  ;;  %v5838_v11 = vpack.c.bf16 %v876_v23, %v874_v14  ;;  %v878_v0 = vmax.f32 %v814_v31, 0.0  ;;  %v880_v51 = vmax.f32 %v816_v61, 0.0  ;;  %v5842_v28 = vpack.c.bf16 %v877_v46, %v875_v10 }
 0x23b   :  { %v881_v37 = vmax.f32 %v817_v59, 0.0  ;;  %v882_v13 = vmax.f32 %v5661_v5, 0.0  ;;  %v821_v38 = vadd.f32 %v5562_v50, %v5718_v1  ;;  %v884_v8 = vmax.f32 %v820_v18, 0.0 }
 0x23c   :  { %v5847_v20 = vpack.c.bf16 %v880_v51, %v878_v0  ;;  %v883_v6 = vmax.f32 %v5664_v34, 0.0  ;;  %v824_v56 = vadd.f32 %v5560_v12, %v5722_v33  ;;  %v886_v16 = vmax.f32 %v5667_v27, 0.0 }
 0x23d   :  { %v5852_v47 = vpack.c.bf16 %v881_v37, %v879_v54  ;;  %v885_v41 = vmax.f32 %v821_v38, 0.0  ;;  %v825_v42 = vadd.f32 %v5562_v50, %v5726_v43  ;;  %v5857_v5 = vpack.c.bf16 %v884_v8, %v882_v13  ;;  %v7905_v37 = vld [vmem:[#allocation28_spill] sm:$0xff] }
 0x23e   :  { %v888_v29 = vmax.f32 %v824_v56, 0.0  ;;  %v887_v1 = vmax.f32 %v5670_v3, 0.0  ;;  %v828_v49 = vadd.f32 %v5560_v12, %v5730_v57  ;;  %v890_v33 = vmax.f32 %v5673_v2, 0.0 }
 0x23f   :  { %v5862_v34 = vpack.c.bf16 %v885_v41, %v883_v6  ;;  %v889_v55 = vmax.f32 %v825_v42, 0.0  ;;  %v829_v60 = vadd.f32 %v5562_v50, %v5734_v7  ;;  %v891_v43 = vmax.f32 %v5676_v21, 0.0  ;;  %v7908_v41 = vld [vmem:[#allocation8_spill] sm:$0xff] }
 0x240   :  { %v5867_v27 = vpack.c.bf16 %v888_v29, %v886_v16  ;;  %v892_v52 = vmax.f32 %v828_v49, 0.0  ;;  %v832_v44 = vadd.f32 %v5560_v12, %v5746_v48  ;;  %v894_v57 = vmax.f32 %v5679_v32, 0.0  ;;  %v7902_v48 = vld [vmem:[#allocation2_spill] sm:$0xff] }
 0x241   :  { %v5872_v3 = vpack.c.bf16 %v889_v55, %v887_v1  ;;  %v893_v30 = vmax.f32 %v829_v60, 0.0  ;;  %v833_v10 = vadd.f32 %v5562_v50, %v5750_v24  ;;  %v895_v7 = vmax.f32 %v5682_v19, 0.0  ;;  %v7903_v24 = vld [vmem:[#allocation3_spill] sm:$0xff]  ;;  %v7911_v60 = vld [vmem:[#allocation26_spill] sm:$0xff] }
 0x242   :  { %v5877_v2 = vpack.c.bf16 %v892_v52, %v890_v33  ;;  %v896_v14 = vmax.f32 %v832_v44, 0.0  ;;  %v836_v23 = vadd.f32 %v5560_v12, %v5754_v39  ;;  %v898_v61 = vmax.f32 %v7902_v48, 0.0  ;;  %v7904_v39 = vld [vmem:[#allocation9_spill] sm:$0xff]  ;;  %v7910_v33 = vld [vmem:[#allocation6_spill] sm:$0xff]  ;;  %v7912_v52 = vld [vmem:[#allocation7_spill] sm:$0xff] }
 0x243   :  { %v5882_v21 = vpack.c.bf16 %v893_v30, %v891_v43  ;;  %v897_v31 = vmax.f32 %v833_v10, 0.0  ;;  %v837_v46 = vadd.f32 %v5562_v50, %v5762_v15  ;;  %v899_v54 = vmax.f32 %v7903_v24, 0.0  ;;  %v7906_v15 = vld [vmem:[#allocation14_spill] sm:$0xff]  ;;  %v7913_v44 = vld [vmem:[#allocation4_spill] sm:$0xff]  ;;  %v7914_v30 = vld [vmem:[#allocation27_spill] sm:$0xff] }
 0x244   :  { %v5887_v32 = vpack.c.bf16 %v896_v14, %v894_v57  ;;  %v900_v59 = vmax.f32 %v836_v23, 0.0  ;;  %v840_v0 = vadd.f32 %v5560_v12, %v5766_v62  ;;  %v902_v18 = vmax.f32 %v7904_v39, 0.0  ;;  %v7915_v10 = vld [vmem:[#allocation5_spill] sm:$0xff] }
 0x245   :  { %v5892_v19 = vpack.c.bf16 %v897_v31, %v895_v7  ;;  %v901_v51 = vmax.f32 %v837_v46, 0.0  ;;  %v841_v13 = vadd.f32 %v5562_v50, %v7905_v37  ;;  %v903_v6 = vmax.f32 %v7906_v15, 0.0 }
 0x246   :  { %v5897_v38 = vpack.c.bf16 %v900_v59, %v898_v61  ;;  %v904_v8 = vmax.f32 %v840_v0, 0.0  ;;  %v7907_v56 = vmax.f32 %v5738_v9, 0.0  ;;  %v7909_v16 = vmax.f32 %v7908_v41, 0.0 }
 0x247   :  { %v5904_v29 = vpack.c.bf16 %v901_v51, %v899_v54  ;;  %v905_v62 = vmax.f32 %v841_v13, 0.0  ;;  %v911_v1 = vpack.c.bf16 %v853_v45, %v851_v22  ;;  %v721_v9 = vmul.f32 %v7911_v60, %v7910_v33 }
 0x248   :  { %v910_v42 = vpack.c.bf16 %v7909_v16, %v7907_v56  ;;  %v5910_v49 = vpack.c.bf16 %v904_v8, %v902_v18  ;;  %v723_v43 = vmul.f32 %v7911_v60, %v7912_v52  ;;  %v722_v57 = vmul.f32 %v7914_v30, %v7913_v44 }
 0x249   :  { %v5912_v55 = vpack.c.bf16 %v905_v62, %v903_v6  ;;  %v724_v40 = vmul.f32 %v7914_v30, %v7915_v10  ;;  %v790_v22 = vadd.f32 %v5560_v12, %v721_v9 }
 0x24a   :  { %1084 = vmatmul.bf16.gmra.mxu2 %v910_v42  ;;  %1173 = vmatmul.bf16.gmra.mxu3 %v911_v1  ;;  %v792_v17 = vadd.f32 %v5560_v12, %v723_v43  ;;  %v791_v45 = vadd.f32 %v5562_v50, %v722_v57 }
 0x24b   :  { %v793_v14 = vadd.f32 %v5562_v50, %v724_v40  ;;  %v854_v7 = vmax.f32 %v790_v22, 0.0 }
 0x24c   :  { %v856_v23 = vmax.f32 %v792_v17, 0.0  ;;  %v855_v31 = vmax.f32 %v791_v45, 0.0 }
 0x24d   :  { %v857_v48 = vmax.f32 %v793_v14, 0.0 }
 0x24e   :  { %v912_v61 = vpack.c.bf16 %v856_v23, %v854_v7 }
 0x24f   :  { %v913_v46 = vpack.c.bf16 %v857_v48, %v855_v31 }
 0x25a   :  { %1089 = vmatmul.bf16.gmra.mxu2 %v912_v61  ;;  %1178 = vmatmul.bf16.gmra.mxu3 %v913_v46 }
 0x26a   :  { %1094 = vmatmul.bf16.gmra.mxu2 %v5790_v35  ;;  %1183 = vmatmul.bf16.gmra.mxu3 %v5796_v26 }
 0x27a   :  { %1099 = vmatmul.bf16.gmra.mxu2 %v5804_v58  ;;  %1188 = vmatmul.bf16.gmra.mxu3 %v5810_v36 }
 0x28a   :  { %1104 = vmatmul.bf16.gmra.mxu2 %v5814_v53  ;;  %1193 = vmatmul.bf16.gmra.mxu3 %v5818_v63 }
 0x29a   :  { %1109 = vmatmul.bf16.gmra.mxu2 %v5824_v25  ;;  %1198 = vmatmul.bf16.gmra.mxu3 %v5833_v4 }
 0x2aa   :  { %1114 = vmatmul.bf16.gmra.mxu2 %v5838_v11  ;;  %1203 = vmatmul.bf16.gmra.mxu3 %v5842_v28 }
 0x2ac   :  { %v1075_v12 = vpop.f32.mrf.mxu2 }
 0x2ad   :  { %v1164_v50 = vpop.f32.mrf.mxu3 }
 0x2ae   :  { %v5936_v35 = vadd.f32 %v1164_v50, %v1075_v12 }
 0x2b0   :  { %v1282_v12 = vmul.f32 %v5936_v35, %v5936_v35 }
 0x2b4   :  { %v1077_v26 = vpop.f32.mrf.mxu2 }
 0x2b5   :  { %v1166_v58 = vpop.f32.mrf.mxu3 }
 0x2b6   :  { %v5938_v59 = vadd.f32 %v1166_v58, %v1077_v26 }
 0x2b8   :  { %v1283_v46 = vmul.f32 %v5938_v59, %v5938_v59  ;;  %v1244_v50 = vadd.f32 %v5938_v59, %v5936_v35 }
 0x2ba   :  { %1119 = vmatmul.bf16.gmra.mxu2 %v5847_v20  ;;  %1208 = vmatmul.bf16.gmra.mxu3 %v5852_v47 }
 0x2bc   :  { %v1080_v36 = vpop.f32.mrf.mxu2 }
 0x2bd   :  { %v1169_v53 = vpop.f32.mrf.mxu3 }
 0x2be   :  { %v5942_v63 = vadd.f32 %v1169_v53, %v1080_v36  ;;  %v1314_v53 = vadd.f32 %v1283_v46, %v1282_v12 }
 0x2c0   :  { %v1284_v26 = vmul.f32 %v5942_v63, %v5942_v63 }
 0x2c4   :  { %v1082_v25 = vpop.f32.mrf.mxu2 }
 0x2c5   :  { %v1171_v4 = vpop.f32.mrf.mxu3 }
 0x2c6   :  { %v5944_v11 = vadd.f32 %v1171_v4, %v1082_v25  ;;  %v1245_v25 = vadd.f32 %v1244_v50, %v5942_v63 }
 0x2c8   :  { %v1285_v4 = vmul.f32 %v5944_v11, %v5944_v11 }
 0x2ca   :  { %1124 = vmatmul.bf16.gmra.mxu2 %v5857_v5  ;;  %1213 = vmatmul.bf16.gmra.mxu3 %v5862_v34 }
 0x2cd   :  { %v1085_v28 = vpop.f32.mrf.mxu2  ;;  %v1174_v24 = vpop.f32.mrf.mxu3 }
 0x2ce   :  { %v5948_v54 = vadd.f32 %v1174_v24, %v1085_v28  ;;  %v1315_v28 = vadd.f32 %v1314_v53, %v1284_v26  ;;  %v1246_v24 = vadd.f32 %v1245_v25, %v5944_v11 }
 0x2d5   :  { %v1087_v0 = vpop.f32.mrf.mxu2  ;;  %v1176_v20 = vpop.f32.mrf.mxu3 }
 0x2d6   :  { %v5950_v51 = vadd.f32 %v1176_v20, %v1087_v0  ;;  %v1286_v0 = vmul.f32 %v5948_v54, %v5948_v54  ;;  %v1316_v20 = vadd.f32 %v1315_v28, %v1285_v4 }
 0x2da   :  { %1129 = vmatmul.bf16.gmra.mxu2 %v5867_v27  ;;  %1218 = vmatmul.bf16.gmra.mxu3 %v5872_v3 }
 0x2dd   :  { %v1090_v47 = vpop.f32.mrf.mxu2  ;;  %v1179_v39 = vpop.f32.mrf.mxu3 }
 0x2de   :  { %v5954_v18 = vadd.f32 %v1179_v39, %v1090_v47  ;;  %v1247_v47 = vadd.f32 %v1246_v24, %v5948_v54  ;;  %v1287_v39 = vmul.f32 %v5950_v51, %v5950_v51 }
 0x2e5   :  { %v1092_v37 = vpop.f32.mrf.mxu2  ;;  %v1181_v5 = vpop.f32.mrf.mxu3 }
 0x2e6   :  { %v5956_v13 = vadd.f32 %v1181_v5, %v1092_v37  ;;  %v4466_v37 = vld [vmem:[%s7916_s2 + $0x38] sm:$0xff]  ;;  %v1317_v5 = vadd.f32 %v1316_v20, %v1286_v0 }
 0x2e7   :  { %1553 = vmatpush.bf16.msrb.mxu0 %v4466_v37 }
 0x2ea   :  { %1134 = vmatmul.bf16.gmra.mxu2 %v5877_v2  ;;  %1223 = vmatmul.bf16.gmra.mxu3 %v5882_v21 }
 0x2ed   :  { %v1095_v34 = vpop.f32.mrf.mxu2  ;;  %v1184_v8 = vpop.f32.mrf.mxu3 }
 0x2ee   :  { %v5960_v15 = vadd.f32 %v1184_v8, %v1095_v34  ;;  %v1248_v34 = vadd.f32 %v1247_v47, %v5950_v51  ;;  %v1288_v8 = vmul.f32 %v5954_v18, %v5954_v18 }
 0x2f5   :  { %v5962_v6 = vpop.f32.mrf.mxu2  ;;  %v5964_v27 = vpop.f32.mrf.mxu3 }
 0x2fa   :  { %1139 = vmatmul.bf16.gmra.mxu2 %v5887_v32  ;;  %1228 = vmatmul.bf16.gmra.mxu3 %v5892_v19 }
 0x2fd   :  { %v1100_v3 = vpop.f32.mrf.mxu2  ;;  %v1189_v56 = vpop.f32.mrf.mxu3 }
 0x2fe   :  { %v5968_v41 = vadd.f32 %v1189_v56, %v1100_v3 }
 0x300   :  { %v1292_v50 = vmul.f32 %v5968_v41, %v5968_v41 }
 0x305   :  { %v5970_v16 = vpop.f32.mrf.mxu2  ;;  %v5972_v2 = vpop.f32.mrf.mxu3 }
 0x306   :  { %v6062_v46 = vadd.f32 %v5972_v2, %v5970_v16 }
 0x308   :  { %v1293_v16 = vmul.f32 %v6062_v46, %v6062_v46 }
 0x30a   :  { %1144 = vmatmul.bf16.gmra.mxu2 %v5897_v38  ;;  %1233 = vmatmul.bf16.gmra.mxu3 %v5904_v29 }
 0x30d   :  { %v1105_v21 = vpop.f32.mrf.mxu2  ;;  %v1194_v42 = vpop.f32.mrf.mxu3 }
 0x30e   :  { %v5976_v62 = vadd.f32 %v1194_v42, %v1105_v21  ;;  %v1318_v21 = vadd.f32 %v1317_v5, %v1287_v39  ;;  %v1249_v42 = vadd.f32 %v1248_v34, %v5954_v18 }
 0x310   :  { %v1294_v0 = vmul.f32 %v5976_v62, %v5976_v62 }
 0x315   :  { %v5978_v1 = vpop.f32.mrf.mxu2  ;;  %v5980_v32 = vpop.f32.mrf.mxu3 }
 0x316   :  { %v6075_v2 = vadd.f32 %v5980_v32, %v5978_v1  ;;  %v4464_v1 = vld [vmem:[%s7916_s2 + $0x28] sm:$0xff] }
 0x318   :  { %v1295_v39 = vmul.f32 %v6075_v2, %v6075_v2 }
 0x31a   :  { %1149 = vmatmul.bf16.gmra.mxu2 %v5910_v49  ;;  %1238 = vmatmul.bf16.gmra.mxu3 %v5912_v55 }
 0x31d   :  { %v1110_v19 = vpop.f32.mrf.mxu2  ;;  %v1199_v33 = vpop.f32.mrf.mxu3 }
 0x31e   :  { %v5984_v60 = vadd.f32 %v1199_v33, %v1110_v19  ;;  %v1289_v19 = vmul.f32 %v5956_v13, %v5956_v13  ;;  %v6052_v33 = vadd.f32 %v5964_v27, %v5962_v6  ;;  %v4465_v6 = vld [vmem:[%s7916_s2 + $0x30] sm:$0xff] }
 0x31f   :  { %1554 = vmatpush.bf16.msrb.mxu0 %v4465_v6 }
 0x320   :  { %v1296_v34 = vmul.f32 %v5984_v60, %v5984_v60 }
 0x323   :  { %1555 = vmatpush.bf16.msrb.mxu0 %v4464_v1 }
 0x325   :  { %v5986_v9 = vpop.f32.mrf.mxu2  ;;  %v5988_v38 = vpop.f32.mrf.mxu3 }
 0x326   :  { %v6085_v37 = vadd.f32 %v5988_v38, %v5986_v9 }
 0x328   :  { %v1297_v9 = vmul.f32 %v6085_v37, %v6085_v37 }
 0x32d   :  { %v1115_v29 = vpop.f32.mrf.mxu2  ;;  %v1204_v52 = vpop.f32.mrf.mxu3 }
 0x32e   :  { %v5990_v43 = vadd.f32 %v1204_v52, %v1115_v29  ;;  %v1319_v29 = vadd.f32 %v1318_v21, %v1288_v8  ;;  %v1250_v52 = vadd.f32 %v1249_v42, %v5956_v13 }
 0x335   :  { %v5992_v44 = vpop.f32.mrf.mxu2  ;;  %v5994_v30 = vpop.f32.mrf.mxu3 }
 0x336   :  { %v6098_v38 = vadd.f32 %v5994_v30, %v5992_v44 }
 0x33d   :  { %v1120_v57 = vpop.f32.mrf.mxu2  ;;  %v1209_v49 = vpop.f32.mrf.mxu3 }
 0x33e   :  { %v5996_v10 = vadd.f32 %v1209_v49, %v1120_v57  ;;  %v1290_v57 = vmul.f32 %v5960_v15, %v5960_v15  ;;  %v1320_v49 = vadd.f32 %v1319_v29, %v1289_v19 }
 0x340   :  { %v1321_v27 = vadd.f32 %v1320_v49, %v1290_v57  ;;  %v1298_v57 = vmul.f32 %v5990_v43, %v5990_v43  ;;  %v1300_v30 = vmul.f32 %v5996_v10, %v5996_v10 }
 0x345   :  { %v5998_v55 = vpop.f32.mrf.mxu2  ;;  %v6000_v40 = vpop.f32.mrf.mxu3 }
 0x346   :  { %v6108_v6 = vadd.f32 %v6000_v40, %v5998_v55 }
 0x34d   :  { %v1125_v22 = vpop.f32.mrf.mxu2  ;;  %v1214_v17 = vpop.f32.mrf.mxu3 }
 0x34e   :  { %v6002_v45 = vadd.f32 %v1214_v17, %v1125_v22  ;;  %v1251_v22 = vadd.f32 %v1250_v52, %v5960_v15  ;;  %v1291_v17 = vmul.f32 %v6052_v33, %v6052_v33 }
 0x350   :  { %v1252_v12 = vadd.f32 %v1251_v22, %v6052_v33  ;;  %v1322_v25 = vadd.f32 %v1321_v27, %v1291_v17  ;;  %v1299_v17 = vmul.f32 %v6098_v38, %v6098_v38 }
 0x352   :  { %v1253_v4 = vadd.f32 %v1252_v12, %v5968_v41  ;;  %v1323_v28 = vadd.f32 %v1322_v25, %v1292_v50 }
 0x354   :  { %v1254_v24 = vadd.f32 %v1253_v4, %v6062_v46  ;;  %v1324_v20 = vadd.f32 %v1323_v28, %v1293_v16  ;;  %v1301_v16 = vmul.f32 %v6108_v6, %v6108_v6 }
 0x355   :  { %v6004_v14 = vpop.f32.mrf.mxu2  ;;  %v6006_v7 = vpop.f32.mrf.mxu3 }
 0x356   :  { %v1255_v47 = vadd.f32 %v1254_v24, %v5976_v62  ;;  %v1325_v32 = vadd.f32 %v1324_v20, %v1294_v0  ;;  %v6118_v28 = vadd.f32 %v6006_v7, %v6004_v14  ;;  %v1302_v24 = vmul.f32 %v6002_v45, %v6002_v45 }
 0x358   :  { %v1256_v5 = vadd.f32 %v1255_v47, %v6075_v2  ;;  %v1326_v42 = vadd.f32 %v1325_v32, %v1295_v39  ;;  %v1303_v39 = vmul.f32 %v6118_v28, %v6118_v28 }
 0x35a   :  { %v1257_v19 = vadd.f32 %v1256_v5, %v5984_v60  ;;  %v1327_v29 = vadd.f32 %v1326_v42, %v1296_v34 }
 0x35c   :  { %v1258_v52 = vadd.f32 %v1257_v19, %v6085_v37  ;;  %v1328_v49 = vadd.f32 %v1327_v29, %v1297_v9 }
 0x35d   :  { %v6008_v23 = vpop.f32.mrf.mxu2  ;;  %v6010_v31 = vpop.f32.mrf.mxu3 }
 0x35e   :  { %v1259_v22 = vadd.f32 %v1258_v52, %v5990_v43  ;;  %v1329_v27 = vadd.f32 %v1328_v49, %v1298_v57  ;;  %v6125_v0 = vadd.f32 %v6010_v31, %v6008_v23 }
 0x360   :  { %v1260_v44 = vadd.f32 %v1259_v22, %v6098_v38  ;;  %v1330_v25 = vadd.f32 %v1329_v27, %v1299_v17  ;;  %v1304_v32 = vmul.f32 %v6125_v0, %v6125_v0 }
 0x362   :  { %v1261_v4 = vadd.f32 %v1260_v44, %v5996_v10  ;;  %v1331_v55 = vadd.f32 %v1330_v25, %v1300_v30 }
 0x364   :  { %v1262_v40 = vadd.f32 %v1261_v4, %v6108_v6  ;;  %v1332_v20 = vadd.f32 %v1331_v55, %v1301_v16 }
 0x365   :  { %v6012_v48 = vpop.f32.mrf.mxu2  ;;  %v6014_v61 = vpop.f32.mrf.mxu3 }
 0x366   :  { %v1263_v47 = vadd.f32 %v1262_v40, %v6002_v45  ;;  %v6132_v14 = vadd.f32 %v6014_v61, %v6012_v48  ;;  %v1333_v7 = vadd.f32 %v1332_v20, %v1302_v24 }
 0x368   :  { %v1264_v1 = vadd.f32 %v1263_v47, %v6118_v28  ;;  %v1334_v34 = vadd.f32 %v1333_v7, %v1303_v39  ;;  %v1305_v19 = vmul.f32 %v6132_v14, %v6132_v14 }
 0x36a   :  { %v1265_v42 = vadd.f32 %v1264_v1, %v6125_v0  ;;  %v1335_v61 = vadd.f32 %v1334_v34, %v1304_v32 }
 0x36c   :  { %v1266_v9 = vadd.f32 %v1265_v42, %v6132_v14 }
 0x36d   :  { %v6024_v58 = vpop.f32.mrf.mxu2  ;;  %v6026_v36 = vpop.f32.mrf.mxu3 }
 0x36e   :  { %v6139_v23 = vadd.f32 %v6026_v36, %v6024_v58  ;;  %v1336_v36 = vadd.f32 %v1335_v61, %v1305_v19 }
 0x370   :  { %v1306_v29 = vmul.f32 %v6139_v23, %v6139_v23  ;;  %v1267_v52 = vadd.f32 %v1266_v9, %v6139_v23 }
 0x372   :  { %v1337_v22 = vadd.f32 %v1336_v36, %v1306_v29 }
 0x375   :  { %v6043_v3 = vpop.f32.mrf.mxu2  ;;  %v6045_v56 = vpop.f32.mrf.mxu3 }
 0x376   :  { %v6146_v48 = vadd.f32 %v6045_v56, %v6043_v3 }
 0x378   :  { %v1307_v57 = vmul.f32 %v6146_v48, %v6146_v48  ;;  %v1268_v3 = vadd.f32 %v1267_v52, %v6146_v48 }
 0x37d   :  { %v1140_v26 = vpop.f32.mrf.mxu2  ;;  %v1229_v53 = vpop.f32.mrf.mxu3 }
 0x37e   :  { %v6151_v58 = vadd.f32 %v1229_v53, %v1140_v26  ;;  %v1338_v26 = vadd.f32 %v1337_v22, %v1307_v57 }
 0x380   :  { %v1308_v56 = vmul.f32 %v6151_v58, %v6151_v58  ;;  %v1269_v53 = vadd.f32 %v1268_v3, %v6151_v58 }
 0x385   :  { %v1142_v8 = vpop.f32.mrf.mxu2  ;;  %v1231_v21 = vpop.f32.mrf.mxu3 }
 0x386   :  { %v6156_v49 = vadd.f32 %v1231_v21, %v1142_v8  ;;  %v1339_v8 = vadd.f32 %v1338_v26, %v1308_v56 }
 0x388   :  { %v1309_v30 = vmul.f32 %v6156_v49, %v6156_v49  ;;  %v1270_v21 = vadd.f32 %v1269_v53, %v6156_v49 }
 0x38d   :  { %v1145_v12 = vpop.f32.mrf.mxu2  ;;  %v1234_v50 = vpop.f32.mrf.mxu3 }
 0x38e   :  { %v6161_v17 = vadd.f32 %v1234_v50, %v1145_v12  ;;  %v1340_v12 = vadd.f32 %v1339_v8, %v1309_v30 }
 0x390   :  { %v1310_v4 = vmul.f32 %v6161_v17, %v6161_v17  ;;  %v1271_v50 = vadd.f32 %v1270_v21, %v6161_v17 }
 0x392   :  { %v1341_v40 = vadd.f32 %v1340_v12, %v1310_v4  ;;  %v4463_v4 = vld [vmem:[%s7916_s2 + $0x20] sm:$0xff] }
 0x393   :  { %1556 = vmatpush.bf16.msrb.mxu0 %v4463_v4 }
 0x395   :  { %v1147_v31 = vpop.f32.mrf.mxu2  ;;  %v1236_v5 = vpop.f32.mrf.mxu3 }
 0x396   :  { %v6166_v25 = vadd.f32 %v1236_v5, %v1147_v31 }
 0x398   :  { %v1311_v55 = vmul.f32 %v6166_v25, %v6166_v25  ;;  %v1272_v24 = vadd.f32 %v1271_v50, %v6166_v25  ;;  %v4462_v50 = vld [vmem:[%s7916_s2 + $0x18] sm:$0xff] }
 0x399   :  { %1557 = vmatpush.bf16.msrb.mxu0 %v4462_v50 }
 0x39a   :  { %v1342_v7 = vadd.f32 %v1341_v40, %v1311_v55  ;;  %v4461_v55 = vld [vmem:[%s7916_s2 + $0x10] sm:$0xff] }
 0x39d   :  { %v1150_v27 = vpop.f32.mrf.mxu2  ;;  %v1239_v44 = vpop.f32.mrf.mxu3  ;;  %1558 = vmatpush.bf16.msrb.mxu0 %v4461_v55 }
 0x39e   :  { %v6171_v16 = vadd.f32 %v1239_v44, %v1150_v27 }
 0x3a0   :  { %v1312_v20 = vmul.f32 %v6171_v16, %v6171_v16  ;;  %v1273_v1 = vadd.f32 %v1272_v24, %v6171_v16  ;;  %v4460_v24 = vld [vmem:[%s7916_s2 + $0x8] sm:$0xff] }
 0x3a1   :  { %1559 = vmatpush.bf16.msrb.mxu0 %v4460_v24 }
 0x3a2   :  { %v1343_v31 = vadd.f32 %v1342_v7, %v1312_v20 }
 0x3a5   :  { %v1152_v47 = vpop.f32.mrf.mxu2  ;;  %v1241_v39 = vpop.f32.mrf.mxu3 }
 0x3a6   :  { %v1242_v32 = vadd.f32 %v1241_v39, %v1152_v47  ;;  %v4459_v39 = vld [vmem:[%s7916_s2] sm:$0xff]  ;;  %s7920_s2 = sld [smem:[#allocation38_spill]] }
 0x3a7   :  { %1560 = vmatpush.bf16.msrb.mxu0 %v4459_v39 }
 0x3a8   :  { %v1274_v5 = vadd.f32 %v1273_v1, %v1242_v32  ;;  %v1313_v34 = vmul.f32 %v1242_v32, %v1242_v32 }
 0x3aa   :  { %v1275_v42 = vrot.slane %v1274_v5, 4  ;;  %v1344_v19 = vadd.f32 %v1343_v31, %v1313_v34  ;;  %v1355_v31 = vld [vmem:[%s7917_s29] sm:$0x1] }
 0x3ac   :  { %v1276_v61 = vadd.f32 %v1275_v42, %v1274_v5  ;;  %v1345_v9 = vrot.slane %v1344_v19, 4 }
 0x3ae   :  { %v1277_v29 = vrot.slane %v1276_v61, 2  ;;  %v1346_v36 = vadd.f32 %v1345_v9, %v1344_v19  ;;  %v1368_v19 = vld [vmem:[%s7918_s28] sm:$0x1] }
 0x3b0   :  { %v1278_v52 = vadd.f32 %v1277_v29, %v1276_v61  ;;  %v1347_v57 = vrot.slane %v1346_v36, 2 }
 0x3b2   :  { %v1279_v22 = vrot.slane %v1278_v52, 1  ;;  %v1348_v3 = vadd.f32 %v1347_v57, %v1346_v36 }
 0x3b4   :  { %v1280_v56 = vadd.f32 %v1279_v22, %v1278_v52  ;;  %v1349_v27 = vrot.slane %v1348_v3, 1 }
 0x3b6   :  { %v1281_v44 = vmul.f32 0.00390625, %v1280_v56  ;;  %v1350_v26 = vadd.f32 %v1349_v27, %v1348_v3 }
 0x3b8   :  { %v1351_v53 = vmul.f32 0.00390625, %v1350_v26  ;;  %v1352_v30 = vmul.f32 %v1281_v44, %v1281_v44 }
 0x3ba   :  { %v1353_v8 = vsub.f32 %v1351_v53, %v1352_v30 }
 0x3bc   :  { %v1354_v21 = vmax.f32 %v1353_v8, 0.0 }
 0x3be   :  { %v1356_v12 = vadd.f32 1e-05, %v1354_v21 }
 0x3c0   :  { %4789 = vrsqrt.f32 %v1356_v12  ;;  %vm1363_vm9 = vweird.f32 %v1356_v12 }
 0x3c6   :  { %v4790_v40 = vpop.eup %4789 }
 0x3c7   :  { %v1358_v20 = vmul.f32 %v4790_v40, %v1356_v12  ;;  %vm1364_vm8 = vweird.f32 %v4790_v40 }
 0x3c8   :  { %vm1365_vm10 = vmor %vm1363_vm9, %vm1364_vm8 }
 0x3c9   :  { %v1359_v47 = vmul.f32 %v4790_v40, %v1358_v20 }
 0x3cb   :  { %v1360_v7 = vmul.f32 0.5, %v1359_v47 }
 0x3cd   :  { %v1361_v1 = vsub.f32 1.5, %v1360_v7 }
 0x3cf   :  { %v1362_v5 = vmul.f32 %v4790_v40, %v1361_v1 }
 0x3d1   :  { %v1366_v34 = vsel %vm1365_vm10, %v4790_v40, %v1362_v5 }
 0x3d2   :  { %v1367_v42 = vmul.f32 %v1366_v34, %v1355_v31 }
 0x3d4   :  { %v1369_v61 = vmul.f32 %v1367_v42, %v1281_v44  ;;  %v6201_v9 = vperm.slane %v1367_v42, 0 }
 0x3d6   :  { %v1370_v29 = vsub.f32 %v1368_v19, %v1369_v61  ;;  %v6204_v36 = vmul.f32 %v6201_v9, %v1242_v32  ;;  %v1374_v57 = vmul.f32 %v6201_v9, %v5936_v35  ;;  %v1375_v22 = vmul.f32 %v6201_v9, %v5938_v59 }
 0x3d7   :  { %v1376_v3 = vmul.f32 %v6201_v9, %v5942_v63  ;;  %v1382_v56 = vmul.f32 %v6201_v9, %v5960_v15  ;;  %v1384_v27 = vmul.f32 %v6201_v9, %v5968_v41  ;;  %v1386_v32 = vmul.f32 %v6201_v9, %v5976_v62 }
 0x3d8   :  { %v6206_v52 = vperm.slane %v1370_v29, 0  ;;  %v1388_v44 = vmul.f32 %v6201_v9, %v5984_v60  ;;  %v1389_v35 = vmul.f32 %v6201_v9, %v6085_v37  ;;  %v1390_v59 = vmul.f32 %v6201_v9, %v5990_v43 }
 0x3d9   :  { %v6228_v63 = vmul.f32 %v6201_v9, %v6171_v16  ;;  %v1391_v15 = vmul.f32 %v6201_v9, %v6098_v38  ;;  %v1392_v41 = vmul.f32 %v6201_v9, %v5996_v10  ;;  %v1393_v37 = vmul.f32 %v6201_v9, %v6108_v6 }
 0x3da   :  { %v1409_v62 = vadd.f32 %v6206_v52, %v1374_v57  ;;  %v1410_v60 = vadd.f32 %v6206_v52, %v1375_v22  ;;  %v1394_v43 = vmul.f32 %v6201_v9, %v6002_v45  ;;  %v1395_v16 = vmul.f32 %v6201_v9, %v6118_v28 }
 0x3db   :  { %v1377_v26 = vmul.f32 %v6201_v9, %v5944_v11  ;;  %v1396_v38 = vmul.f32 %v6201_v9, %v6125_v0  ;;  %v1397_v10 = vmul.f32 %v6201_v9, %v6132_v14  ;;  %v1398_v6 = vmul.f32 %v6201_v9, %v6139_v23 }
 0x3dc   :  { %v1441_v53 = vmax.f32 %v1409_v62, 0.0  ;;  %v1442_v30 = vmax.f32 %v1410_v60, 0.0  ;;  %v1399_v45 = vmul.f32 %v6201_v9, %v6146_v48  ;;  %v6253_v8 = vadd.f32 %v6206_v52, %v1376_v3 }
 0x3dd   :  { %v6256_v28 = vadd.f32 %v6206_v52, %v1377_v26  ;;  %v1400_v11 = vmul.f32 %v6201_v9, %v6151_v58  ;;  %v1383_v14 = vmul.f32 %v6201_v9, %v6052_v33  ;;  %v1417_v21 = vadd.f32 %v6206_v52, %v1382_v56 }
 0x3de   :  { %v1473_v0 = vpack.c.bf16 %v1442_v30, %v1441_v53  ;;  %v1401_v23 = vmul.f32 %v6201_v9, %v6156_v49  ;;  %v1402_v48 = vmul.f32 %v6201_v9, %v6161_v17  ;;  %v1385_v4 = vmul.f32 %v6201_v9, %v6062_v46 }
 0x3df   :  { %v1419_v12 = vadd.f32 %v6206_v52, %v1384_v27  ;;  %v1403_v58 = vmul.f32 %v6201_v9, %v6166_v25  ;;  %v1418_v50 = vadd.f32 %v6206_v52, %v1383_v14  ;;  %v1449_v33 = vmax.f32 %v1417_v21, 0.0 }
 0x3e0   :  { %1561 = vmatmul.bf16.vlgmr.msrb.gmra.mxu0 %v1473_v0  ;;  %v1387_v55 = vmul.f32 %v6201_v9, %v6075_v2  ;;  %v1443_v49 = vmax.f32 %v6253_v8, 0.0  ;;  %v1444_v40 = vmax.f32 %v6256_v28, 0.0  ;;  %v1420_v17 = vadd.f32 %v6206_v52, %v1385_v4 }
 0x3e1   :  { %v1451_v24 = vmax.f32 %v1419_v12, 0.0  ;;  %v1450_v46 = vmax.f32 %v1418_v50, 0.0  ;;  %v1421_v20 = vadd.f32 %v6206_v52, %v1386_v32  ;;  %v1423_v25 = vadd.f32 %v6206_v52, %v1388_v44 }
 0x3e2   :  { %v1422_v47 = vadd.f32 %v6206_v52, %v1387_v55  ;;  %v1452_v39 = vmax.f32 %v1420_v17, 0.0  ;;  %v1424_v7 = vadd.f32 %v6206_v52, %v1389_v35  ;;  %v1425_v1 = vadd.f32 %v6206_v52, %v1390_v59 }
 0x3e3   :  { %v1426_v2 = vadd.f32 %v6206_v52, %v1391_v15  ;;  %v6284_v31 = vpack.c.bf16 %v1450_v46, %v1449_v33  ;;  %v1453_v5 = vmax.f32 %v1421_v20, 0.0  ;;  %v1455_v42 = vmax.f32 %v1423_v25, 0.0 }
 0x3e4   :  { %v1454_v34 = vmax.f32 %v1422_v47, 0.0  ;;  %v1478_v19 = vpack.c.bf16 %v1452_v39, %v1451_v24  ;;  %v1456_v61 = vmax.f32 %v1424_v7, 0.0  ;;  %v1457_v29 = vmax.f32 %v1425_v1, 0.0 }
 0x3e5   :  { %v1458_v57 = vmax.f32 %v1426_v2, 0.0  ;;  %v1427_v3 = vadd.f32 %v6206_v52, %v1392_v41  ;;  %v1428_v56 = vadd.f32 %v6206_v52, %v1393_v37  ;;  %v1429_v27 = vadd.f32 %v6206_v52, %v1394_v43 }
 0x3e6   :  { %v1479_v22 = vpack.c.bf16 %v1454_v34, %v1453_v5  ;;  %v1480_v32 = vpack.c.bf16 %v1456_v61, %v1455_v42  ;;  %v1430_v35 = vadd.f32 %v6206_v52, %v1395_v16  ;;  %v1431_v59 = vadd.f32 %v6206_v52, %v1396_v38  ;;  %v4225_v61 = vld [vmem:[%s7919_s7 + $0x70] sm:$0xf] }
 0x3e7   :  { %v1481_v44 = vpack.c.bf16 %v1458_v57, %v1457_v29  ;;  %v1459_v15 = vmax.f32 %v1427_v3, 0.0  ;;  %v1460_v62 = vmax.f32 %v1428_v56, 0.0  ;;  %v1461_v60 = vmax.f32 %v1429_v27, 0.0  ;;  %v4482_v29 = vld [vmem:[%s7919_s7 + $0x74] sm:$0xf0] }
 0x3e8   :  { %v1432_v26 = vadd.f32 %v6206_v52, %v1397_v10  ;;  %v1462_v53 = vmax.f32 %v1430_v35, 0.0  ;;  %v1463_v30 = vmax.f32 %v1431_v59, 0.0  ;;  %v1433_v8 = vadd.f32 %v6206_v52, %v1398_v6  ;;  %v4479_v56 = vld [vmem:[%s7919_s7 + $0x64] sm:$0xf]  ;;  %v4219_v27 = vld [vmem:[%s7919_s7 + $0x68] sm:$0xf0] }
 0x3e9   :  { %v1434_v41 = vadd.f32 %v6206_v52, %v1399_v45  ;;  %v1482_v37 = vpack.c.bf16 %v1460_v62, %v1459_v15  ;;  %v1435_v43 = vadd.f32 %v6206_v52, %v1400_v11  ;;  %v1436_v0 = vadd.f32 %v6206_v52, %v1401_v23  ;;  %v4217_v59 = vld [vmem:[%s7919_s7 + $0x60] sm:$0xf]  ;;  %v4480_v15 = vld [vmem:[%s7919_s7 + $0x64] sm:$0xf0] }
 0x3ea   :  { %v1464_v28 = vmax.f32 %v1432_v26, 0.0  ;;  %v1483_v16 = vpack.c.bf16 %v1462_v53, %v1461_v60  ;;  %v1465_v14 = vmax.f32 %v1433_v8, 0.0  ;;  %v1437_v21 = vadd.f32 %v6206_v52, %v1402_v48  ;;  %v4477_v53 = vld [vmem:[%s7919_s7 + $0x54] sm:$0xf] }
 0x3eb   :  { %v1466_v38 = vmax.f32 %v1434_v41, 0.0  ;;  %v1467_v12 = vmax.f32 %v1435_v43, 0.0  ;;  %v1468_v10 = vmax.f32 %v1436_v0, 0.0  ;;  %v1438_v50 = vadd.f32 %v6206_v52, %v1403_v58  ;;  %v4478_v43 = vld [vmem:[%s7919_s7 + $0x54] sm:$0xf0] }
 0x3ec   :  { %v1484_v4 = vpack.c.bf16 %v1464_v28, %v1463_v30  ;;  %v1469_v6 = vmax.f32 %v1437_v21, 0.0  ;;  %v1439_v45 = vadd.f32 %v6206_v52, %v6228_v63  ;;  %v1440_v11 = vadd.f32 %v6206_v52, %v6204_v36  ;;  %v4211_v30 = vld [vmem:[%s7919_s7 + $0x58] sm:$0xf0]  ;;  %v4209_v28 = vld [vmem:[%s7919_s7 + $0x50] sm:$0xf] }
 0x3ed   :  { %v1485_v33 = vpack.c.bf16 %v1466_v38, %v1465_v14  ;;  %v1474_v55 = vpack.c.bf16 %v1444_v40, %v1443_v49  ;;  %v1486_v23 = vpack.c.bf16 %v1468_v10, %v1467_v12  ;;  %v1470_v17 = vmax.f32 %v1438_v50, 0.0  ;;  %v4475_v38 = vld [vmem:[%s7919_s7 + $0x44] sm:$0xf]  ;;  %v4203_v21 = vld [vmem:[%s7919_s7 + $0x48] sm:$0xf0] }
 0x3ee   :  { %v1471_v24 = vmax.f32 %v1439_v45, 0.0  ;;  %v1472_v46 = vmax.f32 %v1440_v11, 0.0  ;;  %v1378_v58 = vmul.f32 %v6201_v9, %v5948_v54  ;;  %v1379_v47 = vmul.f32 %v6201_v9, %v5950_v51  ;;  %v4201_v50 = vld [vmem:[%s7919_s7 + $0x40] sm:$0xf] }
 0x3ef   :  { %v1487_v48 = vpack.c.bf16 %v1470_v17, %v1469_v6  ;;  %v1380_v39 = vmul.f32 %v6201_v9, %v5954_v18  ;;  %v1381_v7 = vmul.f32 %v6201_v9, %v5956_v13  ;;  %v4481_v13 = vld [vmem:[%s7919_s7 + $0x74] sm:$0xf]  ;;  %v4227_v9 = vld [vmem:[%s7919_s7 + $0x78] sm:$0xf0]  ;;  %v4226_v57 = vor.u32 %v4482_v29, %v4225_v61 }
 0x3f0   :  { %1566 = vmatmul.bf16.gmra.mxu0 %v1474_v55  ;;  %v6302_v20 = vpack.c.bf16 %v1472_v46, %v1471_v24  ;;  %v1413_v63 = vadd.f32 %v6206_v52, %v1378_v58  ;;  %v1414_v25 = vadd.f32 %v6206_v52, %v1379_v47  ;;  %v4218_v62 = vor.u32 %v4480_v15, %v4217_v59  ;;  %v4473_v55 = vld [vmem:[%s7919_s7 + $0x34] sm:$0xf]  ;;  %v4472_v59 = vld [vmem:[%s7919_s7 + $0x24] sm:$0xf0] }
 0x3f1   :  { %v1415_v1 = vadd.f32 %v6206_v52, %v1380_v39  ;;  %v1416_v54 = vadd.f32 %v6206_v52, %v1381_v7  ;;  %v4230_v52 = vor.u32 %v4481_v13, %v4227_v9  ;;  %1989 = vmatpush.bf16.msra.mxu1 %v4226_v57  ;;  %v4214_v8 = vor.u32 %v4477_v53, %v4211_v30 }
 0x3f2   :  { %v1445_v36 = vmax.f32 %v1413_v63, 0.0  ;;  %v1446_v49 = vmax.f32 %v1414_v25, 0.0  ;;  %v4210_v0 = vor.u32 %v4478_v43, %v4209_v28  ;;  %v4490_v25 = vld [vmem:[%s7920_s2 + $0x38] sm:$0xff] }
 0x3f3   :  { %v1447_v2 = vmax.f32 %v1415_v1, 0.0  ;;  %v1448_v51 = vmax.f32 %v1416_v54, 0.0  ;;  %2078 = vmatpush.bf16.msra.mxu2 %v4230_v52  ;;  %2475 = vmatpush.bf16.msra.mxu3 %v4490_v25 }
 0x3f4   :  { %v1475_v40 = vpack.c.bf16 %v1446_v49, %v1445_v36  ;;  %v4471_v36 = vld [vmem:[%s7919_s7 + $0x24] sm:$0xf]  ;;  %v4187_v49 = vld [vmem:[%s7919_s7 + $0x28] sm:$0xf0] }
 0x3f5   :  { %v1476_v5 = vpack.c.bf16 %v1448_v51, %v1447_v2  ;;  %1990 = vmatpush.bf16.msra.mxu1 %v4218_v62 }
 0x3f9   :  { %1991 = vmatpush.bf16.msra.mxu1 %v4210_v0 }
 0x400   :  { %1571 = vmatmul.bf16.gmra.mxu0 %v1475_v40  ;;  %v4190_v40 = vor.u32 %v4471_v36, %v4187_v49 }
 0x410   :  { %1576 = vmatmul.bf16.gmra.mxu0 %v1476_v5 }
 0x420   :  { %1581 = vmatmul.bf16.gmra.mxu0 %v6284_v31 }
 0x430   :  { %1586 = vmatmul.bf16.gmra.mxu0 %v1478_v19 }
 0x440   :  { %1591 = vmatmul.bf16.gmra.mxu0 %v1479_v22 }
 0x450   :  { %1596 = vmatmul.bf16.gmra.mxu0 %v1480_v32  ;;  %v4222_v32 = vor.u32 %v4479_v56, %v4219_v27 }
 0x452   :  { %2079 = vmatpush.bf16.msra.mxu2 %v4222_v32  ;;  %v4185_v32 = vld [vmem:[%s7919_s7 + $0x20] sm:$0xf] }
 0x453   :  { %v4186_v15 = vor.u32 %v4472_v59, %v4185_v32 }
 0x456   :  { %2080 = vmatpush.bf16.msra.mxu2 %v4214_v8 }
 0x45d   :  { %v6317_v34 = vpop.f32.mrf.mxu0 }
 0x45e   :  { %v1680_v1 = vmul.f32 %v6317_v34, %v6317_v34 }
 0x460   :  { %1601 = vmatmul.bf16.gmra.mxu0 %v1481_v44 }
 0x465   :  { %v6319_v18 = vpop.f32.mrf.mxu0 }
 0x466   :  { %v1681_v7 = vmul.f32 %v6319_v18, %v6319_v18  ;;  %v1642_v54 = vadd.f32 %v6319_v18, %v6317_v34 }
 0x468   :  { %v1712_v5 = vadd.f32 %v1681_v7, %v1680_v1 }
 0x46d   :  { %v6321_v42 = vpop.f32.mrf.mxu0 }
 0x46e   :  { %v1682_v2 = vmul.f32 %v6321_v42, %v6321_v42  ;;  %v1643_v51 = vadd.f32 %v1642_v54, %v6321_v42 }
 0x470   :  { %1606 = vmatmul.bf16.gmra.mxu0 %v1482_v37  ;;  %v1713_v52 = vadd.f32 %v1712_v5, %v1682_v2  ;;  %v4489_v2 = vld [vmem:[%s7920_s2 + $0x30] sm:$0xff]  ;;  %v4179_v5 = vld [vmem:[%s7919_s7 + $0x18] sm:$0xf0] }
 0x471   :  { %2476 = vmatpush.bf16.msra.mxu3 %v4489_v2 }
 0x475   :  { %v6329_v31 = vpop.f32.mrf.mxu0 }
 0x476   :  { %v1683_v13 = vmul.f32 %v6329_v31, %v6329_v31  ;;  %v1644_v61 = vadd.f32 %v1643_v51, %v6329_v31  ;;  %v4469_v51 = vld [vmem:[%s7919_s7 + $0x14] sm:$0xf] }
 0x478   :  { %v1714_v56 = vadd.f32 %v1713_v52, %v1683_v13  ;;  %v4182_v13 = vor.u32 %v4469_v51, %v4179_v5 }
 0x47d   :  { %v6331_v19 = vpop.f32.mrf.mxu0 }
 0x47e   :  { %v1684_v29 = vmul.f32 %v6331_v19, %v6331_v19  ;;  %v1645_v57 = vadd.f32 %v1644_v61, %v6331_v19 }
 0x480   :  { %1611 = vmatmul.bf16.gmra.mxu0 %v1483_v16  ;;  %v1715_v62 = vadd.f32 %v1714_v56, %v1684_v29 }
 0x485   :  { %v6339_v22 = vpop.f32.mrf.mxu0 }
 0x486   :  { %v1685_v27 = vmul.f32 %v6339_v22, %v6339_v22  ;;  %v1646_v53 = vadd.f32 %v1645_v57, %v6339_v22 }
 0x488   :  { %v1716_v28 = vadd.f32 %v1715_v62, %v1685_v27 }
 0x48d   :  { %v6341_v3 = vpop.f32.mrf.mxu0 }
 0x48e   :  { %v1686_v30 = vmul.f32 %v6341_v3, %v6341_v3  ;;  %v1647_v8 = vadd.f32 %v1646_v53, %v6341_v3 }
 0x490   :  { %1616 = vmatmul.bf16.gmra.mxu0 %v1484_v4  ;;  %v4206_v4 = vor.u32 %v4475_v38, %v4203_v21  ;;  %v1717_v38 = vadd.f32 %v1716_v28, %v1686_v30 }
 0x492   :  { %2081 = vmatpush.bf16.msra.mxu2 %v4206_v4 }
 0x495   :  { %v6349_v44 = vpop.f32.mrf.mxu0 }
 0x496   :  { %v1687_v43 = vmul.f32 %v6349_v44, %v6349_v44  ;;  %v1648_v21 = vadd.f32 %v1647_v8, %v6349_v44 }
 0x49d   :  { %v6351_v35 = vpop.f32.mrf.mxu0 }
 0x49e   :  { %v1688_v4 = vmul.f32 %v6351_v35, %v6351_v35 }
 0x4a0   :  { %1621 = vmatmul.bf16.gmra.mxu0 %v1485_v33  ;;  %v4476_v33 = vld [vmem:[%s7919_s7 + $0x44] sm:$0xf0] }
 0x4a1   :  { %v4202_v6 = vor.u32 %v4476_v33, %v4201_v50  ;;  %v1649_v50 = vadd.f32 %v1648_v21, %v6351_v35  ;;  %v1718_v33 = vadd.f32 %v1717_v38, %v1687_v43 }
 0x4a3   :  { %1992 = vmatpush.bf16.msra.mxu1 %v4202_v6 }
 0x4a5   :  { %v6359_v60 = vpop.f32.mrf.mxu0 }
 0x4a6   :  { %v1689_v6 = vmul.f32 %v6359_v60, %v6359_v60 }
 0x4ad   :  { %v6361_v26 = vpop.f32.mrf.mxu0 }
 0x4b0   :  { %1626 = vmatmul.bf16.gmra.mxu0 %v1486_v23  ;;  %v4195_v23 = vld [vmem:[%s7919_s7 + $0x38] sm:$0xf0] }
 0x4b1   :  { %v4198_v17 = vor.u32 %v4473_v55, %v4195_v23  ;;  %v1719_v55 = vadd.f32 %v1718_v33, %v1688_v4  ;;  %v1650_v23 = vadd.f32 %v1649_v50, %v6359_v60 }
 0x4b3   :  { %2082 = vmatpush.bf16.msra.mxu2 %v4198_v17  ;;  %v1690_v17 = vmul.f32 %v6361_v26, %v6361_v26 }
 0x4b5   :  { %v6369_v41 = vpop.f32.mrf.mxu0 }
 0x4b7   :  { %2083 = vmatpush.bf16.msra.mxu2 %v4190_v40 }
 0x4bb   :  { %2084 = vmatpush.bf16.msra.mxu2 %v4182_v13 }
 0x4bd   :  { %v6371_v37 = vpop.f32.mrf.mxu0 }
 0x4be   :  { %v1692_v40 = vmul.f32 %v6371_v37, %v6371_v37 }
 0x4c0   :  { %1631 = vmatmul.bf16.gmra.mxu0 %v1487_v48  ;;  %v4193_v48 = vld [vmem:[%s7919_s7 + $0x30] sm:$0xf] }
 0x4c5   :  { %v6379_v16 = vpop.f32.mrf.mxu0 }
 0x4c6   :  { %v1693_v54 = vmul.f32 %v6379_v16, %v6379_v16 }
 0x4cd   :  { %v6381_v14 = vpop.f32.mrf.mxu0 }
 0x4ce   :  { %v1694_v29 = vmul.f32 %v6381_v14, %v6381_v14 }
 0x4d0   :  { %1636 = vmatmul.bf16.gmra.mxu0 %v6302_v20  ;;  %v4474_v20 = vld [vmem:[%s7919_s7 + $0x34] sm:$0xf0] }
 0x4d1   :  { %v4194_v58 = vor.u32 %v4474_v20, %v4193_v48  ;;  %v1651_v48 = vadd.f32 %v1650_v23, %v6361_v26  ;;  %v1720_v20 = vadd.f32 %v1719_v55, %v1689_v6 }
 0x4d3   :  { %1993 = vmatpush.bf16.msra.mxu1 %v4194_v58  ;;  %v1691_v58 = vmul.f32 %v6369_v41, %v6369_v41  ;;  %v1721_v36 = vadd.f32 %v1720_v20, %v1690_v17  ;;  %v1652_v49 = vadd.f32 %v1651_v48, %v6369_v41 }
 0x4d5   :  { %v6390_v12 = vpop.f32.mrf.mxu0  ;;  %v1653_v7 = vadd.f32 %v1652_v49, %v6371_v37  ;;  %v1722_v1 = vadd.f32 %v1721_v36, %v1691_v58 }
 0x4d6   :  { %v1695_v27 = vmul.f32 %v6390_v12, %v6390_v12 }
 0x4d7   :  { %1994 = vmatpush.bf16.msra.mxu1 %v4186_v15  ;;  %v1723_v52 = vadd.f32 %v1722_v1, %v1692_v40  ;;  %v1654_v61 = vadd.f32 %v1653_v7, %v6379_v16 }
 0x4d9   :  { %v1655_v57 = vadd.f32 %v1654_v61, %v6381_v14  ;;  %v1724_v56 = vadd.f32 %v1723_v52, %v1693_v54 }
 0x4db   :  { %v1725_v59 = vadd.f32 %v1724_v56, %v1694_v29  ;;  %v1656_v15 = vadd.f32 %v1655_v57, %v6390_v12 }
 0x4dd   :  { %v6392_v10 = vpop.f32.mrf.mxu0  ;;  %v1726_v30 = vadd.f32 %v1725_v59, %v1695_v27 }
 0x4de   :  { %v1696_v62 = vmul.f32 %v6392_v10, %v6392_v10  ;;  %v1657_v53 = vadd.f32 %v1656_v15, %v6392_v10 }
 0x4e0   :  { %v1727_v28 = vadd.f32 %v1726_v30, %v1696_v62 }
 0x4e5   :  { %v6400_v45 = vpop.f32.mrf.mxu0 }
 0x4e6   :  { %v1697_v8 = vmul.f32 %v6400_v45, %v6400_v45  ;;  %v1658_v43 = vadd.f32 %v1657_v53, %v6400_v45 }
 0x4e8   :  { %v1728_v4 = vadd.f32 %v1727_v28, %v1697_v8 }
 0x4ed   :  { %v6402_v11 = vpop.f32.mrf.mxu0 }
 0x4ee   :  { %v1698_v38 = vmul.f32 %v6402_v11, %v6402_v11  ;;  %v1659_v21 = vadd.f32 %v1658_v43, %v6402_v11 }
 0x4f0   :  { %v1729_v6 = vadd.f32 %v1728_v4, %v1698_v38 }
 0x4f5   :  { %v6410_v24 = vpop.f32.mrf.mxu0 }
 0x4f6   :  { %v1699_v50 = vmul.f32 %v6410_v24, %v6410_v24  ;;  %v1660_v55 = vadd.f32 %v1659_v21, %v6410_v24 }
 0x4f8   :  { %v1730_v48 = vadd.f32 %v1729_v6, %v1699_v50 }
 0x4fd   :  { %v6412_v46 = vpop.f32.mrf.mxu0 }
 0x4fe   :  { %v1700_v23 = vmul.f32 %v6412_v46, %v6412_v46  ;;  %v1661_v17 = vadd.f32 %v1660_v55, %v6412_v46 }
 0x500   :  { %v1731_v58 = vadd.f32 %v1730_v48, %v1700_v23 }
 0x505   :  { %v6420_v47 = vpop.f32.mrf.mxu0 }
 0x506   :  { %v1701_v20 = vmul.f32 %v6420_v47, %v6420_v47  ;;  %v1662_v36 = vadd.f32 %v1661_v17, %v6420_v47 }
 0x508   :  { %v1732_v7 = vadd.f32 %v1731_v58, %v1701_v20 }
 0x50d   :  { %v6422_v63 = vpop.f32.mrf.mxu0 }
 0x50e   :  { %v1702_v49 = vmul.f32 %v6422_v63, %v6422_v63  ;;  %v1663_v40 = vadd.f32 %v1662_v36, %v6422_v63 }
 0x510   :  { %v1733_v2 = vadd.f32 %v1732_v7, %v1702_v49 }
 0x515   :  { %v6433_v39 = vpop.f32.mrf.mxu0 }
 0x516   :  { %v1703_v1 = vmul.f32 %v6433_v39, %v6433_v39  ;;  %v1664_v51 = vadd.f32 %v1663_v40, %v6433_v39 }
 0x518   :  { %v1734_v52 = vadd.f32 %v1733_v2, %v1703_v1 }
 0x51d   :  { %v6446_v9 = vpop.f32.mrf.mxu0 }
 0x51e   :  { %v1704_v5 = vmul.f32 %v6446_v9, %v6446_v9  ;;  %v1665_v13 = vadd.f32 %v1664_v51, %v6446_v9 }
 0x520   :  { %v1735_v29 = vadd.f32 %v1734_v52, %v1704_v5 }
 0x525   :  { %v6466_v0 = vpop.f32.mrf.mxu0 }
 0x526   :  { %v1705_v61 = vmul.f32 %v6466_v0, %v6466_v0  ;;  %v1666_v57 = vadd.f32 %v1665_v13, %v6466_v0 }
 0x528   :  { %v1736_v59 = vadd.f32 %v1735_v29, %v1705_v61 }
 0x52d   :  { %v6480_v25 = vpop.f32.mrf.mxu0 }
 0x52e   :  { %v1706_v56 = vmul.f32 %v6480_v25, %v6480_v25  ;;  %v1667_v27 = vadd.f32 %v1666_v57, %v6480_v25 }
 0x530   :  { %v1737_v53 = vadd.f32 %v1736_v59, %v1706_v56 }
 0x535   :  { %v6503_v32 = vpop.f32.mrf.mxu0 }
 0x536   :  { %v1707_v15 = vmul.f32 %v6503_v32, %v6503_v32  ;;  %v1668_v30 = vadd.f32 %v1667_v27, %v6503_v32 }
 0x538   :  { %v1738_v43 = vadd.f32 %v1737_v53, %v1707_v15 }
 0x53d   :  { %v6517_v33 = vpop.f32.mrf.mxu0 }
 0x53e   :  { %v1708_v8 = vmul.f32 %v6517_v33, %v6517_v33  ;;  %v1669_v28 = vadd.f32 %v1668_v30, %v6517_v33  ;;  %v4177_v30 = vld [vmem:[%s7919_s7 + $0x10] sm:$0xf] }
 0x540   :  { %v1739_v21 = vadd.f32 %v1738_v43, %v1708_v8  ;;  %v4470_v8 = vld [vmem:[%s7919_s7 + $0x14] sm:$0xf0] }
 0x545   :  { %v6531_v54 = vpop.f32.mrf.mxu0 }
 0x546   :  { %v1709_v38 = vmul.f32 %v6531_v54, %v6531_v54  ;;  %v1670_v4 = vadd.f32 %v1669_v28, %v6531_v54  ;;  %v4488_v28 = vld [vmem:[%s7920_s2 + $0x28] sm:$0xff] }
 0x547   :  { %2477 = vmatpush.bf16.msra.mxu3 %v4488_v28 }
 0x548   :  { %v1740_v55 = vadd.f32 %v1739_v21, %v1709_v38  ;;  %v4178_v38 = vor.u32 %v4470_v8, %v4177_v30  ;;  %v4467_v21 = vld [vmem:[%s7919_s7 + $0x4] sm:$0xf] }
 0x54a   :  { %1995 = vmatpush.bf16.msra.mxu1 %v4178_v38 }
 0x54d   :  { %v6545_v62 = vpop.f32.mrf.mxu0 }
 0x54e   :  { %v1710_v50 = vmul.f32 %v6545_v62, %v6545_v62  ;;  %v1671_v6 = vadd.f32 %v1670_v4, %v6545_v62  ;;  %v4171_v4 = vld [vmem:[%s7919_s7 + $0x8] sm:$0xf0] }
 0x550   :  { %v1741_v17 = vadd.f32 %v1740_v55, %v1710_v50  ;;  %v4169_v50 = vld [vmem:[%s7919_s7] sm:$0xf]  ;;  %v4174_v55 = vor.u32 %v4467_v21, %v4171_v4 }
 0x552   :  { %2085 = vmatpush.bf16.msra.mxu2 %v4174_v55 }
 0x555   :  { %v1639_v23 = vpop.f32.mrf.mxu0 }
 0x556   :  { %v1672_v48 = vadd.f32 %v1671_v6, %v1639_v23  ;;  %v1711_v20 = vmul.f32 %v1639_v23, %v1639_v23 }
 0x558   :  { %v1673_v58 = vrot.slane %v1672_v48, 4  ;;  %v1742_v36 = vadd.f32 %v1741_v17, %v1711_v20  ;;  %v4468_v17 = vld [vmem:[%s7919_s7 + $0x4] sm:$0xf0] }
 0x559   :  { %v4170_v20 = vor.u32 %v4468_v17, %v4169_v50 }
 0x55a   :  { %v1674_v49 = vadd.f32 %v1673_v58, %v1672_v48  ;;  %v1743_v40 = vrot.slane %v1742_v36, 4  ;;  %v4487_v48 = vld [vmem:[%s7920_s2 + $0x20] sm:$0xff] }
 0x55b   :  { %2478 = vmatpush.bf16.msra.mxu3 %v4487_v48  ;;  %1996 = vmatpush.bf16.msra.mxu1 %v4170_v20 }
 0x55c   :  { %v1675_v7 = vrot.slane %v1674_v49, 2  ;;  %v1744_v1 = vadd.f32 %v1743_v40, %v1742_v36  ;;  %v1753_v40 = vld [vmem:[%s7784_s8] sm:$0x1] }
 0x55e   :  { %v1676_v2 = vadd.f32 %v1675_v7, %v1674_v49  ;;  %v1745_v51 = vrot.slane %v1744_v1, 2 }
 0x560   :  { %v1677_v5 = vrot.slane %v1676_v2, 1  ;;  %v1746_v13 = vadd.f32 %v1745_v51, %v1744_v1  ;;  %v1766_v51 = vld [vmem:[%s7785_s9] sm:$0x1] }
 0x562   :  { %v1678_v52 = vadd.f32 %v1677_v5, %v1676_v2  ;;  %v1747_v61 = vrot.slane %v1746_v13, 1 }
 0x564   :  { %v1679_v29 = vmul.f32 0.00390625, %v1678_v52  ;;  %v1748_v57 = vadd.f32 %v1747_v61, %v1746_v13  ;;  %v4486_v61 = vld [vmem:[%s7920_s2 + $0x18] sm:$0xff] }
 0x565   :  { %2479 = vmatpush.bf16.msra.mxu3 %v4486_v61 }
 0x566   :  { %v1749_v56 = vmul.f32 0.00390625, %v1748_v57  ;;  %v1750_v27 = vmul.f32 %v1679_v29, %v1679_v29 }
 0x568   :  { %v1751_v59 = vsub.f32 %v1749_v56, %v1750_v27 }
 0x56a   :  { %v1752_v15 = vmax.f32 %v1751_v59, 0.0 }
 0x56c   :  { %v1754_v53 = vadd.f32 1e-05, %v1752_v15 }
 0x56e   :  { %4791 = vrsqrt.f32 %v1754_v53  ;;  %vm1761_vm12 = vweird.f32 %v1754_v53 }
 0x574   :  { %v4792_v43 = vpop.eup %4791 }
 0x575   :  { %v1756_v6 = vmul.f32 %v4792_v43, %v1754_v53  ;;  %vm1762_vm11 = vweird.f32 %v4792_v43 }
 0x576   :  { %vm1763_vm13 = vmor %vm1761_vm12, %vm1762_vm11 }
 0x577   :  { %v1757_v58 = vmul.f32 %v4792_v43, %v1756_v6 }
 0x579   :  { %v1758_v36 = vmul.f32 0.5, %v1757_v58 }
 0x57b   :  { %v1759_v49 = vsub.f32 1.5, %v1758_v36 }
 0x57d   :  { %v1760_v7 = vmul.f32 %v4792_v43, %v1759_v49 }
 0x57f   :  { %v1764_v1 = vsel %vm1763_vm13, %v4792_v43, %v1760_v7 }
 0x580   :  { %v1765_v2 = vmul.f32 %v1764_v1, %v1753_v40 }
 0x582   :  { %v1767_v5 = vmul.f32 %v1765_v2, %v1679_v29  ;;  %v6587_v52 = vperm.slane %v1765_v2, 0 }
 0x584   :  { %v1768_v13 = vsub.f32 %v1766_v51, %v1767_v5  ;;  %v6593_v57 = vmul.f32 %v6587_v52, %v1639_v23  ;;  %v1772_v27 = vmul.f32 %v6587_v52, %v6317_v34  ;;  %v1773_v59 = vmul.f32 %v6587_v52, %v6319_v18 }
 0x585   :  { %v1774_v29 = vmul.f32 %v6587_v52, %v6321_v42  ;;  %v1775_v15 = vmul.f32 %v6587_v52, %v6329_v31  ;;  %v1780_v53 = vmul.f32 %v6587_v52, %v6351_v35  ;;  %v1781_v23 = vmul.f32 %v6587_v52, %v6359_v60 }
 0x586   :  { %v6595_v56 = vperm.slane %v1768_v13, 0  ;;  %v1782_v30 = vmul.f32 %v6587_v52, %v6361_v26  ;;  %v1784_v34 = vmul.f32 %v6587_v52, %v6371_v37  ;;  %v1786_v18 = vmul.f32 %v6587_v52, %v6381_v14 }
 0x587   :  { %v1788_v42 = vmul.f32 %v6587_v52, %v6392_v10  ;;  %v1790_v31 = vmul.f32 %v6587_v52, %v6402_v11  ;;  %v1792_v35 = vmul.f32 %v6587_v52, %v6412_v46  ;;  %v1794_v60 = vmul.f32 %v6587_v52, %v6422_v63 }
 0x588   :  { %v1796_v26 = vmul.f32 %v6587_v52, %v6446_v9  ;;  %v1802_v37 = vmul.f32 %v6587_v52, %v6545_v62  ;;  %v1807_v14 = vadd.f32 %v6595_v56, %v1772_v27  ;;  %v1798_v10 = vmul.f32 %v6587_v52, %v6480_v25 }
 0x589   :  { %v1800_v11 = vmul.f32 %v6587_v52, %v6517_v33  ;;  %v1808_v8 = vadd.f32 %v6595_v56, %v1773_v59  ;;  %v1815_v46 = vadd.f32 %v6595_v56, %v1780_v53  ;;  %v1817_v63 = vadd.f32 %v6595_v56, %v1782_v30 }
 0x58a   :  { %v1819_v28 = vadd.f32 %v6595_v56, %v1784_v34  ;;  %v1821_v9 = vadd.f32 %v6595_v56, %v1786_v18  ;;  %v1823_v62 = vadd.f32 %v6595_v56, %v1788_v42  ;;  %v1825_v43 = vadd.f32 %v6595_v56, %v1790_v31 }
 0x58b   :  { %v1827_v38 = vadd.f32 %v6595_v56, %v1792_v35  ;;  %v1829_v25 = vadd.f32 %v6595_v56, %v1794_v60  ;;  %v6642_v33 = vadd.f32 %v6595_v56, %v1796_v26  ;;  %v6645_v21 = vadd.f32 %v6595_v56, %v1798_v10 }
 0x58c   :  { %v6648_v4 = vadd.f32 %v6595_v56, %v1800_v11  ;;  %v6651_v50 = vadd.f32 %v6595_v56, %v1802_v37  ;;  %v1839_v6 = vmax.f32 %v1807_v14, 0.0  ;;  %v1783_v55 = vmul.f32 %v6587_v52, %v6369_v41 }
 0x58d   :  { %v1785_v17 = vmul.f32 %v6587_v52, %v6379_v16  ;;  %v1787_v48 = vmul.f32 %v6587_v52, %v6390_v12  ;;  %v1840_v20 = vmax.f32 %v1808_v8, 0.0  ;;  %v1789_v58 = vmul.f32 %v6587_v52, %v6400_v45 }
 0x58e   :  { %v1791_v36 = vmul.f32 %v6587_v52, %v6410_v24  ;;  %v1793_v49 = vmul.f32 %v6587_v52, %v6420_v47  ;;  %v1816_v40 = vadd.f32 %v6595_v56, %v1781_v23  ;;  %v1795_v41 = vmul.f32 %v6587_v52, %v6433_v39 }
 0x58f   :  { %v1797_v16 = vmul.f32 %v6587_v52, %v6466_v0  ;;  %v1871_v7 = vpack.c.bf16 %v1840_v20, %v1839_v6  ;;  %v1847_v12 = vmax.f32 %v1815_v46, 0.0  ;;  %v1799_v1 = vmul.f32 %v6587_v52, %v6503_v32 }
 0x590   :  { %v1848_v45 = vmax.f32 %v1816_v40, 0.0  ;;  %v1818_v2 = vadd.f32 %v6595_v56, %v1783_v55  ;;  %v1849_v24 = vmax.f32 %v1817_v63, 0.0  ;;  %v1801_v47 = vmul.f32 %v6587_v52, %v6531_v54 }
 0x591   :  { %v1809_v51 = vadd.f32 %v6595_v56, %v1774_v29  ;;  %1997 = vmatmul.bf16.vlgmr.msra.gmra.mxu1 %v1871_v7  ;;  %2086 = vmatmul.bf16.vlgmr.msra.gmra.mxu2 %v1871_v7  ;;  %v1820_v39 = vadd.f32 %v6595_v56, %v1785_v17  ;;  %v1851_v5 = vmax.f32 %v1819_v28, 0.0  ;;  %v1810_v0 = vadd.f32 %v6595_v56, %v1775_v15 }
 0x592   :  { %v6678_v13 = vpack.c.bf16 %v1848_v45, %v1847_v12  ;;  %v1850_v61 = vmax.f32 %v1818_v2, 0.0  ;;  %v1822_v32 = vadd.f32 %v6595_v56, %v1787_v48  ;;  %v1853_v59 = vmax.f32 %v1821_v9, 0.0 }
 0x593   :  { %v1852_v27 = vmax.f32 %v1820_v39, 0.0  ;;  %v1824_v53 = vadd.f32 %v6595_v56, %v1789_v58  ;;  %v1855_v23 = vmax.f32 %v1823_v62, 0.0  ;;  %v1826_v30 = vadd.f32 %v6595_v56, %v1791_v36 }
 0x594   :  { %v6682_v54 = vpack.c.bf16 %v1850_v61, %v1849_v24  ;;  %v1854_v29 = vmax.f32 %v1822_v32, 0.0  ;;  %v1857_v34 = vmax.f32 %v1825_v43, 0.0  ;;  %v1828_v15 = vadd.f32 %v6595_v56, %v1793_v49  ;;  %v4497_v61 = vld [vmem:[%s7786_s16 + $0x30] sm:$0xff]  ;;  %v4495_v32 = vld [vmem:[%s7786_s16 + $0x20] sm:$0xff] }
 0x595   :  { %v6685_v18 = vpack.c.bf16 %v1852_v27, %v1851_v5  ;;  %v1856_v42 = vmax.f32 %v1824_v53, 0.0  ;;  %v1859_v31 = vmax.f32 %v1827_v38, 0.0  ;;  %v1858_v60 = vmax.f32 %v1826_v30, 0.0 }
 0x596   :  { %v6688_v35 = vpack.c.bf16 %v1854_v29, %v1853_v59  ;;  %v1830_v26 = vadd.f32 %v6595_v56, %v1795_v41  ;;  %v1861_v37 = vmax.f32 %v1829_v25, 0.0  ;;  %v1860_v10 = vmax.f32 %v1828_v15, 0.0 }
 0x597   :  { %v6691_v14 = vpack.c.bf16 %v1856_v42, %v1855_v23  ;;  %v1832_v11 = vadd.f32 %v6595_v56, %v1797_v16  ;;  %v1863_v8 = vmax.f32 %v6642_v33, 0.0  ;;  %v6695_v46 = vpack.c.bf16 %v1858_v60, %v1857_v34 }
 0x598   :  { %v1862_v63 = vmax.f32 %v1830_v26, 0.0  ;;  %v1834_v28 = vadd.f32 %v6595_v56, %v1799_v1  ;;  %v1865_v9 = vmax.f32 %v6645_v21, 0.0  ;;  %v6699_v62 = vpack.c.bf16 %v1860_v10, %v1859_v31  ;;  %v4532_v26 = vld [vmem:[%s7789_s12] sm:$0xff]  }
 0x599   :  { %v1864_v43 = vmax.f32 %v1832_v11, 0.0  ;;  %v1836_v38 = vadd.f32 %v6595_v56, %v1801_v47  ;;  %v1867_v25 = vmax.f32 %v6648_v4, 0.0  ;;  %v1838_v33 = vadd.f32 %v6595_v56, %v6593_v57  ;;  %v4498_v57 = vld [vmem:[%s7786_s16 + $0x38] sm:$0xff] }
 0x59a   :  { %v6703_v6 = vpack.c.bf16 %v1862_v63, %v1861_v37  ;;  %v1866_v55 = vmax.f32 %v1834_v28, 0.0  ;;  %v1869_v17 = vmax.f32 %v6651_v50, 0.0  ;;  %v1841_v48 = vmax.f32 %v1809_v51, 0.0  ;;  %v4485_v50 = vld [vmem:[%s7920_s2 + $0x10] sm:$0xff]  ;;  %2776 = vmatpush.bf16.msra.mxu0 %v4498_v57 }
 0x59b   :  { %v1842_v20 = vmax.f32 %v1810_v0, 0.0  ;;  %v6708_v58 = vpack.c.bf16 %v1864_v43, %v1863_v8  ;;  %v1868_v21 = vmax.f32 %v1836_v38, 0.0  ;;  %v1870_v49 = vmax.f32 %v1838_v33, 0.0  ;;  %2480 = vmatpush.bf16.msra.mxu3 %v4485_v50  ;;  %v4494_v33 = vld [vmem:[%s7786_s16 + $0x18] sm:$0xff] }
 0x59c   :  { %v6710_v36 = vpack.c.bf16 %v1866_v55, %v1865_v9  ;;  %v1776_v16 = vmul.f32 %v6587_v52, %v6331_v19  ;;  %v1777_v7 = vmul.f32 %v6587_v52, %v6339_v22  ;;  %v1778_v47 = vmul.f32 %v6587_v52, %v6341_v3  ;;  %v4484_v3 = vld [vmem:[%s7920_s2 + $0x8] sm:$0xff] }
 0x59d   :  { %v6712_v40 = vpack.c.bf16 %v1868_v21, %v1867_v25  ;;  %v6714_v41 = vpack.c.bf16 %v1870_v49, %v1869_v17  ;;  %v1872_v4 = vpack.c.bf16 %v1842_v20, %v1841_v48  ;;  %v1779_v51 = vmul.f32 %v6587_v52, %v6349_v44  ;;  %v4496_v44 = vld [vmem:[%s7786_s16 + $0x28] sm:$0xff]  ;;  %v4483_v52 = vld [vmem:[%s7920_s2] sm:$0xff] }
 0x59e   :  { %v1811_v12 = vadd.f32 %v6595_v56, %v1776_v16  ;;  %v1812_v1 = vadd.f32 %v6595_v56, %v1777_v7  ;;  %v1813_v19 = vadd.f32 %v6595_v56, %v1778_v47  ;;  %2777 = vmatpush.bf16.msra.mxu0 %v4497_v61  ;;  %v4534_v63 = vunpack.c.h.bf16 %v4532_v26  ;;  %v4723_v7 = vld [vmem:[%s7789_s12 + $0x8] sm:$0xff]  }
 0x59f   :  { %v1814_v39 = vadd.f32 %v6595_v56, %v1779_v51  ;;  %2481 = vmatpush.bf16.msra.mxu3 %v4484_v3  ;;  %v1903_v56 = vld [vmem:[%s7787_s11] sm:$0x3] }
 0x5a0   :  { %v1843_v45 = vmax.f32 %v1811_v12, 0.0  ;;  %v1844_v2 = vmax.f32 %v1812_v1, 0.0  ;;  %v1845_v22 = vmax.f32 %v1813_v19, 0.0  ;;  %v6768_v53 = vperm.slane %v1903_v56, 1  ;;  %v4513_v12 = vld [vmem:[%s7790_s19 + $0x74] sm:$0xf] }
 0x5a1   :  { %2002 = vmatmul.bf16.gmra.mxu1 %v1872_v4  ;;  %2091 = vmatmul.bf16.gmra.mxu2 %v1872_v4  ;;  %v1846_v5 = vmax.f32 %v1814_v39, 0.0  ;;  %v4355_v1 = vld [vmem:[%s7790_s19 + $0x78] sm:$0xf0]  ;;  %v4538_v19 = vunpack.c.h.bf16 %v4723_v7 }
 0x5a2   :  { %v1873_v24 = vpack.c.bf16 %v1844_v2, %v1843_v45  ;;  %2778 = vmatpush.bf16.msra.mxu0 %v4496_v44  ;;  %v4537_v2 = vunpack.c.l.bf16 %v4723_v7  ;;  %v4353_v44 = vld [vmem:[%s7790_s19 + $0x70] sm:$0xf] }
 0x5a3   :  { %v1874_v0 = vpack.c.bf16 %v1846_v5, %v1845_v22  ;;  %2482 = vmatpush.bf16.msra.mxu3 %v4483_v52  ;;  %v4514_v52 = vld [vmem:[%s7790_s19 + $0x74] sm:$0xf0] }
 0x5a6   :  { %2779 = vmatpush.bf16.msra.mxu0 %v4495_v32 }
 0x5aa   :  { %2780 = vmatpush.bf16.msra.mxu0 %v4494_v33 }
 0x5b1   :  { %2007 = vmatmul.bf16.gmra.mxu1 %v1873_v24  ;;  %2096 = vmatmul.bf16.gmra.mxu2 %v1873_v24  ;;  %v4358_v24 = vor.u32 %v4513_v12, %v4355_v1 }
 0x5b3   :  { %3200 = vmatpush.bf16.msrb.mxu2 %v4358_v24 }
 0x5c1   :  { %2012 = vmatmul.bf16.gmra.mxu1 %v1874_v0  ;;  %2101 = vmatmul.bf16.gmra.mxu2 %v1874_v0 }
 0x5d1   :  { %2017 = vmatmul.bf16.gmra.mxu1 %v6678_v13  ;;  %2106 = vmatmul.bf16.gmra.mxu2 %v6678_v13  ;;  %v6757_v13 = vperm.slane %v1903_v56, 0 }
 0x5e1   :  { %2022 = vmatmul.bf16.gmra.mxu1 %v6682_v54  ;;  %2111 = vmatmul.bf16.gmra.mxu2 %v6682_v54 }
 0x5f1   :  { %2027 = vmatmul.bf16.gmra.mxu1 %v6685_v18  ;;  %2116 = vmatmul.bf16.gmra.mxu2 %v6685_v18 }
 0x601   :  { %2032 = vmatmul.bf16.gmra.mxu1 %v6688_v35  ;;  %2121 = vmatmul.bf16.gmra.mxu2 %v6688_v35 }
 0x60e   :  { %v1998_v27 = vpop.f32.mrf.mxu1 }
 0x60f   :  { %v1999_v59 = vadd.f32 %v1998_v27, %v6757_v13 }
 0x611   :  { %3887 = vst [vmem:[%s7788_s25] sm:$0xff] %v1999_v59  ;;  %2037 = vmatmul.bf16.gmra.mxu1 %v6691_v14  ;;  %2126 = vmatmul.bf16.gmra.mxu2 %v6691_v14  ;;  %v4533_v14 = vunpack.c.l.bf16 %v4532_v26 }
 0x614   :  { %v2087_v23 = vpop.f32.mrf.mxu2 }
 0x615   :  { %v2088_v54 = vadd.f32 %v2087_v23, %v6768_v53 }
 0x616   :  { %v2000_v29 = vpop.f32.mrf.mxu1 }
 0x617   :  { %v2167_v30 = vmul.f32 0.5, %v2088_v54  ;;  %3888 = vst [vmem:[%s7788_s25 + $0x8] sm:$0xff] %v2088_v54  ;;  %v2001_v34 = vadd.f32 %v2000_v29, %v6757_v13 }
 0x619   :  { %3889 = vst [vmem:[%s7788_s25 + $0x10] sm:$0xff] %v2001_v34  ;;  %v2199_v18 = vmul.f32 1.442695, %v2167_v30 }
 0x61b   :  { %4793 = vpow2.f32 %v2199_v18 }
 0x61c   :  { %v2089_v42 = vpop.f32.mrf.mxu2 }
 0x61d   :  { %v2090_v15 = vadd.f32 %v2089_v42, %v6768_v53  ;;  %v4724_v42 = vld [vmem:[%s7789_s12 + $0x10] sm:$0xff]  }
 0x61e   :  { %v2003_v31 = vpop.f32.mrf.mxu1 }
 0x61f   :  { %v2168_v35 = vmul.f32 0.5, %v2090_v15  ;;  %3890 = vst [vmem:[%s7788_s25 + $0x18] sm:$0xff] %v2090_v15  ;;  %v6783_v60 = vadd.f32 %v2003_v31, %v6757_v13  ;;  %v4541_v31 = vunpack.c.l.bf16 %v4724_v42 }
 0x621   :  { %v2201_v37 = vmul.f32 1.442695, %v2168_v35  ;;  %3891 = vst [vmem:[%s7788_s25 + $0x20] sm:$0xff] %v6783_v60  ;;  %2042 = vmatmul.bf16.gmra.mxu1 %v6695_v46  ;;  %2131 = vmatmul.bf16.gmra.mxu2 %v6695_v46  ;;  %v4794_v11 = vpop.eup %4793 }
 0x622   :  { %v2327_v38 = vmul.f32 %v4794_v11, %v4533_v14 }
 0x623   :  { %4795 = vpow2.f32 %v2201_v37  ;;  %v4542_v37 = vunpack.c.h.bf16 %v4724_v42 }
 0x624   :  { %v2092_v10 = vpop.f32.mrf.mxu2  ;;  %v2359_v17 = vadd.f32 %v2327_v38, %v1999_v59  ;;  %v4354_v59 = vor.u32 %v4514_v52, %v4353_v44 }
 0x625   :  { %v2093_v8 = vadd.f32 %v2092_v10, %v6768_v53 }
 0x626   :  { %v2005_v28 = vpop.f32.mrf.mxu1  ;;  %3111 = vmatpush.bf16.msrb.mxu1 %v4354_v59 }
 0x627   :  { %v2169_v9 = vmul.f32 0.5, %v2093_v8  ;;  %3892 = vst [vmem:[%s7788_s25 + $0x28] sm:$0xff] %v2093_v8  ;;  %v2006_v43 = vadd.f32 %v2005_v28, %v6757_v13  ;;  %v4493_v28 = vld [vmem:[%s7786_s16 + $0x10] sm:$0xff] }
 0x628   :  { %2781 = vmatpush.bf16.msra.mxu0 %v4493_v28 }
 0x629   :  { %v4796_v25 = vpop.eup %4795  ;;  %3893 = vst [vmem:[%s7788_s25 + $0x30] sm:$0xff] %v2006_v43  ;;  %v2203_v55 = vmul.f32 1.442695, %v2169_v9 }
 0x62a   :  { %v2328_v46 = vmul.f32 %v4796_v25, %v4534_v63 }
 0x62b   :  { %4797 = vpow2.f32 %v2203_v55 }
 0x62c   :  { %v2360_v48 = vadd.f32 %v2328_v46, %v2001_v34  ;;  %v2094_v20 = vpop.f32.mrf.mxu2 }
 0x62d   :  { %v2095_v21 = vadd.f32 %v2094_v20, %v6768_v53  ;;  %v4725_v20 = vld [vmem:[%s7789_s12 + $0x18] sm:$0xff]  }
 0x62e   :  { %v2008_v49 = vpop.f32.mrf.mxu1  ;;  %v2391_v4 = vpack.c.bf16 %v2360_v48, %v2359_v17  ;;  %v4546_v12 = vunpack.c.h.bf16 %v4725_v20 }
 0x62f   :  { %v2170_v57 = vmul.f32 0.5, %v2095_v21  ;;  %3894 = vst [vmem:[%s7788_s25 + $0x38] sm:$0xff] %v2095_v21  ;;  %v6810_v50 = vadd.f32 %v2008_v49, %v6757_v13  ;;  %v4511_v21 = vld [vmem:[%s7790_s19 + $0x64] sm:$0xf]  ;;  %v4347_v49 = vld [vmem:[%s7790_s19 + $0x68] sm:$0xf0] }
 0x630   :  { %2483 = vmatmul.bf16.vlgmr.msra.gmra.mxu3 %v2391_v4 }
 0x631   :  { %v2205_v16 = vmul.f32 1.442695, %v2170_v57  ;;  %3895 = vst [vmem:[%s7788_s25 + $0x40] sm:$0xff] %v6810_v50  ;;  %2047 = vmatmul.bf16.gmra.mxu1 %v6699_v62  ;;  %2136 = vmatmul.bf16.gmra.mxu2 %v6699_v62  ;;  %v4798_v47 = vpop.eup %4797  ;;  %v4545_v57 = vunpack.c.l.bf16 %v4725_v20 }
 0x632   :  { %v2329_v5 = vmul.f32 %v4798_v47, %v4537_v2 }
 0x633   :  { %4799 = vpow2.f32 %v2205_v16 }
 0x634   :  { %v2097_v45 = vpop.f32.mrf.mxu2  ;;  %v2361_v32 = vadd.f32 %v2329_v5, %v6783_v60 }
 0x635   :  { %v2098_v51 = vadd.f32 %v2097_v45, %v6768_v53 }
 0x636   :  { %v2010_v62 = vpop.f32.mrf.mxu1 }
 0x637   :  { %v2171_v39 = vmul.f32 0.5, %v2098_v51  ;;  %3896 = vst [vmem:[%s7788_s25 + $0x48] sm:$0xff] %v2098_v51  ;;  %v2011_v22 = vadd.f32 %v2010_v62, %v6757_v13  ;;  %v4345_v62 = vld [vmem:[%s7790_s19 + $0x60] sm:$0xf] }
 0x639   :  { %v4800_v0 = vpop.eup %4799  ;;  %3897 = vst [vmem:[%s7788_s25 + $0x50] sm:$0xff] %v2011_v22  ;;  %v2207_v3 = vmul.f32 1.442695, %v2171_v39 }
 0x63a   :  { %v2330_v61 = vmul.f32 %v4800_v0, %v4538_v19  ;;  %v4512_v19 = vld [vmem:[%s7790_s19 + $0x64] sm:$0xf0] }
 0x63b   :  { %4801 = vpow2.f32 %v2207_v3  ;;  %v4346_v0 = vor.u32 %v4512_v19, %v4345_v62 }
 0x63c   :  { %v2099_v56 = vpop.f32.mrf.mxu2  ;;  %v2362_v27 = vadd.f32 %v2330_v61, %v2006_v43 }
 0x63d   :  { %v2100_v23 = vadd.f32 %v2099_v56, %v6768_v53  ;;  %3112 = vmatpush.bf16.msrb.mxu1 %v4346_v0 }
 0x63e   :  { %v2013_v54 = vpop.f32.mrf.mxu1  ;;  %v2392_v29 = vpack.c.bf16 %v2362_v27, %v2361_v32  ;;  %v4726_v27 = vld [vmem:[%s7789_s12 + $0x20] sm:$0xff]  }
 0x63f   :  { %v2172_v30 = vmul.f32 0.5, %v2100_v23  ;;  %3898 = vst [vmem:[%s7788_s25 + $0x58] sm:$0xff] %v2100_v23  ;;  %v2014_v34 = vadd.f32 %v2013_v54, %v6757_v13  ;;  %v4549_v23 = vunpack.c.l.bf16 %v4726_v27 }
 0x640   :  { %2488 = vmatmul.bf16.gmra.mxu3 %v2392_v29 }
 0x641   :  { %v2209_v18 = vmul.f32 1.442695, %v2172_v30  ;;  %3899 = vst [vmem:[%s7788_s25 + $0x60] sm:$0xff] %v2014_v34  ;;  %2052 = vmatmul.bf16.gmra.mxu1 %v6703_v6  ;;  %2141 = vmatmul.bf16.gmra.mxu2 %v6703_v6  ;;  %v4802_v35 = vpop.eup %4801 }
 0x642   :  { %v2331_v6 = vmul.f32 %v4802_v35, %v4541_v31 }
 0x643   :  { %4803 = vpow2.f32 %v2209_v18 }
 0x644   :  { %v2102_v15 = vpop.f32.mrf.mxu2  ;;  %v2363_v43 = vadd.f32 %v2331_v6, %v6810_v50  ;;  %v4350_v50 = vor.u32 %v4511_v21, %v4347_v49 }
 0x645   :  { %v2103_v60 = vadd.f32 %v2102_v15, %v6768_v53 }
 0x646   :  { %v2015_v26 = vpop.f32.mrf.mxu1  ;;  %3201 = vmatpush.bf16.msrb.mxu2 %v4350_v50 }
 0x647   :  { %v2173_v14 = vmul.f32 0.5, %v2103_v60  ;;  %3900 = vst [vmem:[%s7788_s25 + $0x68] sm:$0xff] %v2103_v60  ;;  %v2016_v10 = vadd.f32 %v2015_v26, %v6757_v13  ;;  %v4492_v60 = vld [vmem:[%s7786_s16 + $0x8] sm:$0xff] }
 0x648   :  { %2782 = vmatpush.bf16.msra.mxu0 %v4492_v60  ;;  %v4507_v60 = vld [vmem:[%s7790_s19 + $0x44] sm:$0xf] }
 0x649   :  { %v4804_v11 = vpop.eup %4803  ;;  %3901 = vst [vmem:[%s7788_s25 + $0x70] sm:$0xff] %v2016_v10  ;;  %v2211_v63 = vmul.f32 1.442695, %v2173_v14 }
 0x64a   :  { %v2332_v8 = vmul.f32 %v4804_v11, %v4542_v37 }
 0x64b   :  { %4805 = vpow2.f32 %v2211_v63 }
 0x64c   :  { %v2104_v9 = vpop.f32.mrf.mxu2  ;;  %v2364_v38 = vadd.f32 %v2332_v8, %v2011_v22 }
 0x64d   :  { %v2105_v25 = vadd.f32 %v2104_v9, %v6768_v53  ;;  %v4727_v9 = vld [vmem:[%s7789_s12 + $0x28] sm:$0xff]  }
 0x64e   :  { %v2018_v46 = vpop.f32.mrf.mxu1  ;;  %v2393_v55 = vpack.c.bf16 %v2364_v38, %v2363_v43  ;;  %v4509_v43 = vld [vmem:[%s7790_s19 + $0x54] sm:$0xf]  ;;  %v4339_v38 = vld [vmem:[%s7790_s19 + $0x58] sm:$0xf0] }
 0x64f   :  { %v2174_v33 = vmul.f32 0.5, %v2105_v25  ;;  %3902 = vst [vmem:[%s7788_s25 + $0x78] sm:$0xff] %v2105_v25  ;;  %v6872_v17 = vadd.f32 %v2018_v46, %v6757_v13  ;;  %v4553_v46 = vunpack.c.l.bf16 %v4727_v9 }
 0x650   :  { %2493 = vmatmul.bf16.gmra.mxu3 %v2393_v55  ;;  %v4342_v55 = vor.u32 %v4509_v43, %v4339_v38 }
 0x651   :  { %v2213_v48 = vmul.f32 1.442695, %v2174_v33  ;;  %3903 = vst [vmem:[%s7788_s25 + $0x80] sm:$0xff] %v6872_v17  ;;  %2057 = vmatmul.bf16.gmra.mxu1 %v6708_v58  ;;  %2146 = vmatmul.bf16.gmra.mxu2 %v6708_v58  ;;  %v4806_v16 = vpop.eup %4805 }
 0x652   :  { %v2333_v2 = vmul.f32 %v4806_v16, %v4545_v57  ;;  %3202 = vmatpush.bf16.msrb.mxu2 %v4342_v55  ;;  %v4337_v16 = vld [vmem:[%s7790_s19 + $0x50] sm:$0xf]  ;;  %v4329_v55 = vld [vmem:[%s7790_s19 + $0x40] sm:$0xf] }
 0x653   :  { %4807 = vpow2.f32 %v2213_v48  ;;  %v4554_v48 = vunpack.c.h.bf16 %v4727_v9 }
 0x654   :  { %v2107_v4 = vpop.f32.mrf.mxu2  ;;  %v2365_v22 = vadd.f32 %v2333_v2, %v2014_v34  ;;  %v4550_v34 = vunpack.c.h.bf16 %v4726_v27 }
 0x655   :  { %v2108_v7 = vadd.f32 %v2107_v4, %v6768_v53 }
 0x656   :  { %v2020_v58 = vpop.f32.mrf.mxu1 }
 0x657   :  { %v2175_v1 = vmul.f32 0.5, %v2108_v7  ;;  %3904 = vst [vmem:[%s7788_s25 + $0x88] sm:$0xff] %v2108_v7  ;;  %v2021_v45 = vadd.f32 %v2020_v58, %v6757_v13  ;;  %v4510_v7 = vld [vmem:[%s7790_s19 + $0x54] sm:$0xf0] }
 0x659   :  { %v4808_v24 = vpop.eup %4807  ;;  %3905 = vst [vmem:[%s7788_s25 + $0x90] sm:$0xff] %v2021_v45  ;;  %v2215_v51 = vmul.f32 1.442695, %v2175_v1 }
 0x65a   :  { %v2334_v47 = vmul.f32 %v4808_v24, %v4546_v12 }
 0x65b   :  { %4809 = vpow2.f32 %v2215_v51 }
 0x65c   :  { %v2109_v39 = vpop.f32.mrf.mxu2  ;;  %v2366_v5 = vadd.f32 %v2334_v47, %v2016_v10 }
 0x65d   :  { %v2110_v61 = vadd.f32 %v2109_v39, %v6768_v53  ;;  %v4728_v39 = vld [vmem:[%s7789_s12 + $0x30] sm:$0xff]  }
 0x65e   :  { %v2023_v3 = vpop.f32.mrf.mxu1  ;;  %v2394_v44 = vpack.c.bf16 %v2366_v5, %v2365_v22  ;;  %v4557_v5 = vunpack.c.l.bf16 %v4728_v39 }
 0x65f   :  { %v2176_v52 = vmul.f32 0.5, %v2110_v61  ;;  %3906 = vst [vmem:[%s7788_s25 + $0x98] sm:$0xff] %v2110_v61  ;;  %v2024_v56 = vadd.f32 %v2023_v3, %v6757_v13 }
 0x660   :  { %2498 = vmatmul.bf16.gmra.mxu3 %v2394_v44  ;;  %v4558_v44 = vunpack.c.h.bf16 %v4728_v39 }
 0x661   :  { %v2217_v32 = vmul.f32 1.442695, %v2176_v52  ;;  %3907 = vst [vmem:[%s7788_s25 + $0xa0] sm:$0xff] %v2024_v56  ;;  %2062 = vmatmul.bf16.gmra.mxu1 %v6710_v36  ;;  %2151 = vmatmul.bf16.gmra.mxu2 %v6710_v36  ;;  %v4810_v54 = vpop.eup %4809 }
 0x662   :  { %v2335_v36 = vmul.f32 %v4810_v54, %v4549_v23  ;;  %v4491_v23 = vld [vmem:[%s7786_s16] sm:$0xff] }
 0x663   :  { %4811 = vpow2.f32 %v2217_v32  ;;  %2783 = vmatpush.bf16.msra.mxu0 %v4491_v23 }
 0x664   :  { %v2112_v59 = vpop.f32.mrf.mxu2  ;;  %v2367_v37 = vadd.f32 %v2335_v36, %v6872_v17 }
 0x665   :  { %v2113_v29 = vadd.f32 %v2112_v59, %v6768_v53 }
 0x666   :  { %v2025_v30 = vpop.f32.mrf.mxu1 }
 0x667   :  { %v2177_v18 = vmul.f32 0.5, %v2113_v29  ;;  %3908 = vst [vmem:[%s7788_s25 + $0xa8] sm:$0xff] %v2113_v29  ;;  %v2026_v42 = vadd.f32 %v2025_v30, %v6757_v13 }
 0x669   :  { %v4812_v15 = vpop.eup %4811  ;;  %3909 = vst [vmem:[%s7788_s25 + $0xb0] sm:$0xff] %v2026_v42  ;;  %v2219_v35 = vmul.f32 1.442695, %v2177_v18 }
 0x66a   :  { %v2336_v31 = vmul.f32 %v4812_v15, %v4550_v34 }
 0x66b   :  { %4813 = vpow2.f32 %v2219_v35  ;;  %v4729_v35 = vld [vmem:[%s7789_s12 + $0x38] sm:$0xff]  }
 0x66c   :  { %v2114_v26 = vpop.f32.mrf.mxu2  ;;  %v2368_v14 = vadd.f32 %v2336_v31, %v2021_v45  ;;  %v4338_v45 = vor.u32 %v4510_v7, %v4337_v16  ;;  %v4730_v7 = vld [vmem:[%s7789_s12 + $0x40] sm:$0xff]  }
 0x66d   :  { %v2115_v10 = vadd.f32 %v2114_v26, %v6768_v53  ;;  %v4331_v26 = vld [vmem:[%s7790_s19 + $0x48] sm:$0xf0] }
 0x66e   :  { %v2028_v6 = vpop.f32.mrf.mxu1  ;;  %v2395_v11 = vpack.c.bf16 %v2368_v14, %v2367_v37  ;;  %3113 = vmatpush.bf16.msrb.mxu1 %v4338_v45  ;;  %v4561_v14 = vunpack.c.l.bf16 %v4729_v35 }
 0x66f   :  { %v2178_v8 = vmul.f32 0.5, %v2115_v10  ;;  %3910 = vst [vmem:[%s7788_s25 + $0xb8] sm:$0xff] %v2115_v10  ;;  %v6933_v63 = vadd.f32 %v2028_v6, %v6757_v13  ;;  %v4334_v10 = vor.u32 %v4507_v60, %v4331_v26 }
 0x670   :  { %2503 = vmatmul.bf16.gmra.mxu3 %v2395_v11 }
 0x671   :  { %v2221_v28 = vmul.f32 1.442695, %v2178_v8  ;;  %3911 = vst [vmem:[%s7788_s25 + $0xc0] sm:$0xff] %v6933_v63  ;;  %2067 = vmatmul.bf16.gmra.mxu1 %v6712_v40  ;;  %2156 = vmatmul.bf16.gmra.mxu2 %v6712_v40  ;;  %v4814_v33 = vpop.eup %4813 }
 0x672   :  { %v2337_v49 = vmul.f32 %v4814_v33, %v4553_v46  ;;  %3203 = vmatpush.bf16.msrb.mxu2 %v4334_v10  ;;  %v4508_v33 = vld [vmem:[%s7790_s19 + $0x44] sm:$0xf0] }
 0x673   :  { %4815 = vpow2.f32 %v2221_v28 }
 0x674   :  { %v2117_v25 = vpop.f32.mrf.mxu2  ;;  %v2369_v12 = vadd.f32 %v2337_v49, %v2024_v56 }
 0x675   :  { %v2118_v17 = vadd.f32 %v2117_v25, %v6768_v53 }
 0x676   :  { %v2030_v40 = vpop.f32.mrf.mxu1 }
 0x677   :  { %v2179_v20 = vmul.f32 0.5, %v2118_v17  ;;  %3912 = vst [vmem:[%s7788_s25 + $0xc8] sm:$0xff] %v2118_v17  ;;  %v2031_v21 = vadd.f32 %v2030_v40, %v6757_v13 }
 0x679   :  { %v4816_v4 = vpop.eup %4815  ;;  %3913 = vst [vmem:[%s7788_s25 + $0xd0] sm:$0xff] %v2031_v21  ;;  %v2223_v50 = vmul.f32 1.442695, %v2179_v20  ;;  %v4330_v20 = vor.u32 %v4508_v33, %v4329_v55 }
 0x67a   :  { %v2338_v57 = vmul.f32 %v4816_v4, %v4554_v48 }
 0x67b   :  { %4817 = vpow2.f32 %v2223_v50  ;;  %3114 = vmatpush.bf16.msrb.mxu1 %v4330_v20 }
 0x67c   :  { %v2119_v58 = vpop.f32.mrf.mxu2  ;;  %v2370_v1 = vadd.f32 %v2338_v57, %v2026_v42 }
 0x67d   :  { %v2120_v2 = vadd.f32 %v2119_v58, %v6768_v53 }
 0x67e   :  { %v2033_v24 = vpop.f32.mrf.mxu1  ;;  %v2396_v47 = vpack.c.bf16 %v2370_v1, %v2369_v12  ;;  %v4565_v12 = vunpack.c.l.bf16 %v4730_v7 }
 0x67f   :  { %v2180_v51 = vmul.f32 0.5, %v2120_v2  ;;  %3914 = vst [vmem:[%s7788_s25 + $0xd8] sm:$0xff] %v2120_v2  ;;  %v2034_v62 = vadd.f32 %v2033_v24, %v6757_v13  ;;  %v4566_v24 = vunpack.c.h.bf16 %v4730_v7  ;;  %v4732_v7 = vld [vmem:[%s7789_s12 + $0x50] sm:$0xff]  }
 0x680   :  { %2508 = vmatmul.bf16.gmra.mxu3 %v2396_v47 }
 0x681   :  { %v2225_v19 = vmul.f32 1.442695, %v2180_v51  ;;  %3915 = vst [vmem:[%s7788_s25 + $0xe0] sm:$0xff] %v2034_v62  ;;  %2072 = vmatmul.bf16.gmra.mxu1 %v6714_v41  ;;  %2161 = vmatmul.bf16.gmra.mxu2 %v6714_v41  ;;  %v4818_v0 = vpop.eup %4817 }
 0x682   :  { %v2339_v41 = vmul.f32 %v4818_v0, %v4557_v5 }
 0x683   :  { %4819 = vpow2.f32 %v2225_v19 }
 0x684   :  { %v2122_v22 = vpop.f32.mrf.mxu2  ;;  %v2371_v29 = vadd.f32 %v2339_v41, %v6933_v63  ;;  %v4562_v63 = vunpack.c.h.bf16 %v4729_v35 }
 0x685   :  { %v2123_v61 = vadd.f32 %v2122_v22, %v6768_v53 }
 0x686   :  { %v2035_v3 = vpop.f32.mrf.mxu1 }
 0x687   :  { %v2181_v52 = vmul.f32 0.5, %v2123_v61  ;;  %3916 = vst [vmem:[%s7788_s25 + $0xe8] sm:$0xff] %v2123_v61  ;;  %v2036_v56 = vadd.f32 %v2035_v3, %v6757_v13 }
 0x689   :  { %v4820_v32 = vpop.eup %4819  ;;  %3917 = vst [vmem:[%s7788_s25 + $0xf0] sm:$0xff] %v2036_v56  ;;  %v2227_v59 = vmul.f32 1.442695, %v2181_v52 }
 0x68a   :  { %v2340_v27 = vmul.f32 %v4820_v32, %v4558_v44  ;;  %v4731_v32 = vld [vmem:[%s7789_s12 + $0x48] sm:$0xff]  }
 0x68b   :  { %4821 = vpow2.f32 %v2227_v59  ;;  %v4569_v23 = vunpack.c.l.bf16 %v4731_v32 }
 0x68c   :  { %v2124_v54 = vpop.f32.mrf.mxu2  ;;  %v2372_v30 = vadd.f32 %v2340_v27, %v2031_v21 }
 0x68d   :  { %v2125_v34 = vadd.f32 %v2124_v54, %v6768_v53  ;;  %v4505_v54 = vld [vmem:[%s7790_s19 + $0x34] sm:$0xf] }
 0x68e   :  { %v2038_v18 = vpop.f32.mrf.mxu1  ;;  %v2397_v42 = vpack.c.bf16 %v2372_v30, %v2371_v29  ;;  %v4323_v29 = vld [vmem:[%s7790_s19 + $0x38] sm:$0xf0] }
 0x68f   :  { %v2182_v36 = vmul.f32 0.5, %v2125_v34  ;;  %3918 = vst [vmem:[%s7788_s25 + $0xf8] sm:$0xff] %v2125_v34  ;;  %v2039_v15 = vadd.f32 %v2038_v18, %v6757_v13  ;;  %v7062_v34 = vld [vmem:[%s7791_s14] ss:$0 sm:$0xff] }
 0x690   :  { %2513 = vmatmul.bf16.gmra.mxu3 %v2397_v42 }
 0x691   :  { %v2229_v31 = vmul.f32 1.442695, %v2182_v36  ;;  %3919 = vst [vmem:[%s7788_s25 + $0x100] sm:$0xff] %v2039_v15  ;;  %v4822_v6 = vpop.eup %4821  ;;  %v4326_v36 = vor.u32 %v4505_v54, %v4323_v29 }
 0x692   :  { %v2341_v43 = vmul.f32 %v4822_v6, %v4561_v14  ;;  %v4596_v14 = vld [vmem:[%s7792_s15] sm:$0xff]  }
 0x693   :  { %4823 = vpow2.f32 %v2229_v31  ;;  %v4570_v31 = vunpack.c.h.bf16 %v4731_v32  ;;  %3204 = vmatpush.bf16.msrb.mxu2 %v4326_v36  ;;  %v4522_v32 = vld [vmem:[%s7794_s22 + $0x38] sm:$0xff] }
 0x694   :  { %v2127_v37 = vpop.f32.mrf.mxu2  ;;  %v2373_v40 = vadd.f32 %v2341_v43, %v2034_v62  ;;  %v4321_v43 = vld [vmem:[%s7790_s19 + $0x30] sm:$0xf]  ;;  %3677 = vmatpush.bf16.msrb.mxu3 %v4522_v32 }
 0x695   :  { %v2128_v11 = vadd.f32 %v2127_v37, %v6768_v53 }
 0x696   :  { %v2040_v8 = vpop.f32.mrf.mxu1 }
 0x697   :  { %v2183_v28 = vmul.f32 0.5, %v2128_v11  ;;  %3920 = vst [vmem:[%s7788_s25 + $0x108] sm:$0xff] %v2128_v11  ;;  %v2041_v9 = vadd.f32 %v2040_v8, %v6757_v13  ;;  %v4597_v11 = vunpack.c.l.bf16 %v4596_v14 }
 0x699   :  { %v4824_v38 = vpop.eup %4823  ;;  %3921 = vst [vmem:[%s7788_s25 + $0x110] sm:$0xff] %v2041_v9  ;;  %v2231_v46 = vmul.f32 1.442695, %v2183_v28  ;;  %v4598_v28 = vunpack.c.h.bf16 %v4596_v14 }
 0x69a   :  { %v2342_v25 = vmul.f32 %v4824_v38, %v4562_v63  ;;  %v4506_v38 = vld [vmem:[%s7790_s19 + $0x34] sm:$0xf0] }
 0x69b   :  { %4825 = vpow2.f32 %v2231_v46 }
 0x69c   :  { %v2129_v17 = vpop.f32.mrf.mxu2  ;;  %v2374_v48 = vadd.f32 %v2342_v25, %v2036_v56 }
 0x69d   :  { %v2130_v21 = vadd.f32 %v2129_v17, %v6768_v53  ;;  %v4322_v17 = vor.u32 %v4506_v38, %v4321_v43 }
 0x69e   :  { %v2043_v49 = vpop.f32.mrf.mxu1  ;;  %v2398_v4 = vpack.c.bf16 %v2374_v48, %v2373_v40 }
 0x69f   :  { %v2184_v57 = vmul.f32 0.5, %v2130_v21  ;;  %3922 = vst [vmem:[%s7788_s25 + $0x118] sm:$0xff] %v2130_v21  ;;  %v2044_v50 = vadd.f32 %v2043_v49, %v6757_v13  ;;  %3115 = vmatpush.bf16.msrb.mxu1 %v4322_v17  ;;  %v4739_v17 = vld [vmem:[%s7792_s15 + $0x10] sm:$0xff]  }
 0x6a0   :  { %2518 = vmatmul.bf16.gmra.mxu3 %v2398_v4 }
 0x6a1   :  { %v2233_v16 = vmul.f32 1.442695, %v2184_v57  ;;  %3923 = vst [vmem:[%s7788_s25 + $0x120] sm:$0xff] %v2044_v50  ;;  %v4826_v1 = vpop.eup %4825 }
 0x6a2   :  { %v2343_v62 = vmul.f32 %v4826_v1, %v4565_v12 }
 0x6a3   :  { %4827 = vpow2.f32 %v2233_v16 }
 0x6a4   :  { %v2132_v58 = vpop.f32.mrf.mxu2  ;;  %v2375_v0 = vadd.f32 %v2343_v62, %v2039_v15 }
 0x6a5   :  { %v2133_v45 = vadd.f32 %v2132_v58, %v6768_v53 }
 0x6a6   :  { %v2045_v2 = vpop.f32.mrf.mxu1 }
 0x6a7   :  { %v2185_v47 = vmul.f32 0.5, %v2133_v45  ;;  %3924 = vst [vmem:[%s7788_s25 + $0x128] sm:$0xff] %v2133_v45  ;;  %v2046_v51 = vadd.f32 %v2045_v2, %v6757_v13  ;;  %v4573_v45 = vunpack.c.l.bf16 %v4732_v7 }
 0x6a9   :  { %v4828_v19 = vpop.eup %4827  ;;  %3925 = vst [vmem:[%s7788_s25 + $0x130] sm:$0xff] %v2046_v51  ;;  %v2235_v39 = vmul.f32 1.442695, %v2185_v47 }
 0x6aa   :  { %v2344_v22 = vmul.f32 %v4828_v19, %v4566_v24 }
 0x6ab   :  { %4829 = vpow2.f32 %v2235_v39 }
 0x6ac   :  { %v2134_v5 = vpop.f32.mrf.mxu2  ;;  %v2376_v61 = vadd.f32 %v2344_v22, %v2041_v9  ;;  %v4738_v22 = vld [vmem:[%s7792_s15 + $0x8] sm:$0xff]  }
 0x6ad   :  { %v2135_v3 = vadd.f32 %v2134_v5, %v6768_v53 }
 0x6ae   :  { %v2048_v44 = vpop.f32.mrf.mxu1  ;;  %v2399_v52 = vpack.c.bf16 %v2376_v61, %v2375_v0 }
 0x6af   :  { %v2186_v56 = vmul.f32 0.5, %v2135_v3  ;;  %3926 = vst [vmem:[%s7788_s25 + $0x138] sm:$0xff] %v2135_v3  ;;  %v7044_v41 = vadd.f32 %v2048_v44, %v6757_v13  ;;  %v4601_v44 = vunpack.c.l.bf16 %v4738_v22 }
 0x6b0   :  { %2523 = vmatmul.bf16.gmra.mxu3 %v2399_v52 }
 0x6b1   :  { %v2237_v27 = vmul.f32 1.442695, %v2186_v56  ;;  %3927 = vst [vmem:[%s7788_s25 + $0x140] sm:$0xff] %v7044_v41  ;;  %v4830_v30 = vpop.eup %4829  ;;  %v4602_v56 = vunpack.c.h.bf16 %v4738_v22 }
 0x6b2   :  { %v2345_v26 = vmul.f32 %v4830_v30, %v4569_v23 }
 0x6b3   :  { %4831 = vpow2.f32 %v2237_v27  ;;  %v2484_v59 = vpop.f32.mrf.mxu3 }
 0x6b4   :  { %v2137_v18 = vpop.f32.mrf.mxu2  ;;  %v2485_v37 = vadd.f32 %v7062_v34, %v2484_v59  ;;  %v2377_v9 = vadd.f32 %v2345_v26, %v2044_v50 }
 0x6b5   :  { %v2138_v42 = vadd.f32 %v2137_v18, %v6768_v53 }
 0x6b6   :  { %v2050_v15 = vpop.f32.mrf.mxu1  ;;  %v2564_v25 = vmax.f32 %v2485_v37, 0.0 }
 0x6b7   :  { %v2187_v35 = vmul.f32 0.5, %v2138_v42  ;;  %3928 = vst [vmem:[%s7788_s25 + $0x148] sm:$0xff] %v2138_v42  ;;  %v7069_v60 = vadd.f32 %v2050_v15, %v6757_v13 }
 0x6b8   :  { %v2660_v57 = vmul.f32 %v4597_v11, %v2564_v25  ;;  %v4315_v11 = vld [vmem:[%s7790_s19 + $0x28] sm:$0xf0] }
 0x6b9   :  { %v4832_v10 = vpop.eup %4831  ;;  %3929 = vst [vmem:[%s7788_s25 + $0x150] sm:$0xff] %v7069_v60  ;;  %v2239_v8 = vmul.f32 1.442695, %v2187_v35 }
 0x6ba   :  { %v2346_v6 = vmul.f32 %v4832_v10, %v4570_v31 }
 0x6bb   :  { %v2486_v63 = vpop.f32.mrf.mxu3  ;;  %4833 = vpow2.f32 %v2239_v8 }
 0x6bc   :  { %v2487_v46 = vadd.f32 %v7062_v34, %v2486_v63  ;;  %v2139_v55 = vpop.f32.mrf.mxu2  ;;  %v2378_v33 = vadd.f32 %v2346_v6, %v2046_v51  ;;  %v4574_v51 = vunpack.c.h.bf16 %v4732_v7  ;;  %v4503_v6 = vld [vmem:[%s7790_s19 + $0x24] sm:$0xf]  ;;  %v4504_v7 = vld [vmem:[%s7790_s19 + $0x24] sm:$0xf0] }
 0x6bd   :  { %v2140_v40 = vadd.f32 %v2139_v55, %v6768_v53 }
 0x6be   :  { %v2565_v48 = vmax.f32 %v2487_v46, 0.0  ;;  %v2053_v20 = vpop.f32.mrf.mxu1  ;;  %v2400_v21 = vpack.c.bf16 %v2378_v33, %v2377_v9  ;;  %v4318_v9 = vor.u32 %v4503_v6, %v4315_v11 }
 0x6bf   :  { %v2188_v49 = vmul.f32 0.5, %v2140_v40  ;;  %3930 = vst [vmem:[%s7788_s25 + $0x158] sm:$0xff] %v2140_v40  ;;  %v7091_v4 = vadd.f32 %v2053_v20, %v6757_v13  ;;  %v4605_v20 = vunpack.c.l.bf16 %v4739_v17 }
 0x6c0   :  { %v2661_v50 = vmul.f32 %v4598_v28, %v2565_v48  ;;  %2528 = vmatmul.bf16.gmra.mxu3 %v2400_v21  ;;  %3205 = vmatpush.bf16.msrb.mxu2 %v4318_v9 }
 0x6c1   :  { %v2241_v16 = vmul.f32 1.442695, %v2188_v49  ;;  %3931 = vst [vmem:[%s7788_s25 + $0x160] sm:$0xff] %v7091_v4  ;;  %v4834_v2 = vpop.eup %4833 }
 0x6c2   :  { %v2692_v58 = vpack.c.bf16 %v2661_v50, %v2660_v57  ;;  %v2347_v5 = vmul.f32 %v4834_v2, %v4573_v45  ;;  %v4606_v57 = vunpack.c.h.bf16 %v4739_v17 }
 0x6c3   :  { %4835 = vpow2.f32 %v2241_v16  ;;  %v2489_v12 = vpop.f32.mrf.mxu3  ;;  %v4313_v16 = vld [vmem:[%s7790_s19 + $0x20] sm:$0xf] }
 0x6c4   :  { %v2142_v1 = vpop.f32.mrf.mxu2  ;;  %2784 = vmatmul.bf16.vlgmr.msra.gmra.mxu0 %v2692_v58  ;;  %v2490_v39 = vadd.f32 %v7062_v34, %v2489_v12  ;;  %v2379_v54 = vadd.f32 %v2347_v5, %v7044_v41  ;;  %v4733_v41 = vld [vmem:[%s7789_s12 + $0x58] sm:$0xff]   ;;  %v4314_v2 = vor.u32 %v4504_v7, %v4313_v16 }
 0x6c5   :  { %v2143_v24 = vadd.f32 %v2142_v1, %v6768_v53  ;;  %v4577_v10 = vunpack.c.l.bf16 %v4733_v41  ;;  %v4578_v38 = vunpack.c.h.bf16 %v4733_v41 }
 0x6c6   :  { %v2055_v47 = vpop.f32.mrf.mxu1  ;;  %v2566_v27 = vmax.f32 %v2490_v39, 0.0  ;;  %3116 = vmatpush.bf16.msrb.mxu1 %v4314_v2  ;;  %v4741_v2 = vld [vmem:[%s7792_s15 + $0x20] sm:$0xff]  }
 0x6c7   :  { %v2189_v62 = vmul.f32 0.5, %v2143_v24  ;;  %3932 = vst [vmem:[%s7788_s25 + $0x168] sm:$0xff] %v2143_v24  ;;  %v7105_v19 = vadd.f32 %v2055_v47, %v6757_v13 }
 0x6c8   :  { %v2662_v35 = vmul.f32 %v4601_v44, %v2566_v27  ;;  %v7182_v44 = vld [vmem:[%s7794_s22 + $0x78] sm:$0xff] }
 0x6c9   :  { %v4836_v0 = vpop.eup %4835  ;;  %3933 = vst [vmem:[%s7788_s25 + $0x170] sm:$0xff] %v7105_v19  ;;  %v2243_v61 = vmul.f32 1.442695, %v2189_v62  ;;  %3766 = vmatpush.bf16.msrb.mxu0 %v7182_v44 }
 0x6ca   :  { %v2348_v3 = vmul.f32 %v4836_v0, %v4574_v51  ;;  %v4734_v0 = vld [vmem:[%s7789_s12 + $0x60] sm:$0xff]  }
 0x6cb   :  { %v2491_v52 = vpop.f32.mrf.mxu3  ;;  %4837 = vpow2.f32 %v2243_v61 }
 0x6cc   :  { %v2492_v59 = vadd.f32 %v7062_v34, %v2491_v52  ;;  %v2144_v23 = vpop.f32.mrf.mxu2  ;;  %v2380_v29 = vadd.f32 %v2348_v3, %v7069_v60 }
 0x6cd   :  { %v2145_v30 = vadd.f32 %v2144_v23, %v6768_v53  ;;  %v4582_v23 = vunpack.c.h.bf16 %v4734_v0 }
 0x6ce   :  { %v2567_v18 = vmax.f32 %v2492_v59, 0.0  ;;  %v2058_v42 = vpop.f32.mrf.mxu1  ;;  %v2401_v36 = vpack.c.bf16 %v2380_v29, %v2379_v54 }
 0x6cf   :  { %v2190_v15 = vmul.f32 0.5, %v2145_v30  ;;  %3934 = vst [vmem:[%s7788_s25 + $0x178] sm:$0xff] %v2145_v30  ;;  %v7126_v31 = vadd.f32 %v2058_v42, %v6757_v13 }
 0x6d0   :  { %v2663_v26 = vmul.f32 %v4602_v56, %v2567_v18  ;;  %2533 = vmatmul.bf16.gmra.mxu3 %v2401_v36  ;;  %v4581_v56 = vunpack.c.l.bf16 %v4734_v0  ;;  %v4740_v18 = vld [vmem:[%s7792_s15 + $0x18] sm:$0xff]  }
 0x6d1   :  { %v2245_v60 = vmul.f32 1.442695, %v2190_v15  ;;  %3935 = vst [vmem:[%s7788_s25 + $0x180] sm:$0xff] %v7126_v31  ;;  %v4838_v8 = vpop.eup %4837 }
 0x6d2   :  { %v2693_v37 = vpack.c.bf16 %v2663_v26, %v2662_v35  ;;  %v2349_v55 = vmul.f32 %v4838_v8, %v4577_v10  ;;  %v4609_v35 = vunpack.c.l.bf16 %v4740_v18 }
 0x6d3   :  { %4839 = vpow2.f32 %v2245_v60  ;;  %v2494_v14 = vpop.f32.mrf.mxu3  ;;  %v4610_v60 = vunpack.c.h.bf16 %v4740_v18 }
 0x6d4   :  { %v2147_v63 = vpop.f32.mrf.mxu2  ;;  %2789 = vmatmul.bf16.gmra.mxu0 %v2693_v37  ;;  %v2495_v33 = vadd.f32 %v7062_v34, %v2494_v14  ;;  %v2381_v50 = vadd.f32 %v2349_v55, %v7091_v4  ;;  %v4521_v37 = vld [vmem:[%s7794_s22 + $0x30] sm:$0xff] }
 0x6d5   :  { %v2148_v28 = vadd.f32 %v2147_v63, %v6768_v53  ;;  %3678 = vmatpush.bf16.msrb.mxu3 %v4521_v37 }
 0x6d6   :  { %v2060_v43 = vpop.f32.mrf.mxu1  ;;  %v2568_v58 = vmax.f32 %v2495_v33, 0.0 }
 0x6d7   :  { %v2191_v25 = vmul.f32 0.5, %v2148_v28  ;;  %3936 = vst [vmem:[%s7788_s25 + $0x188] sm:$0xff] %v2148_v28  ;;  %v7146_v46 = vadd.f32 %v2060_v43, %v6757_v13 }
 0x6d8   :  { %v2664_v22 = vmul.f32 %v4605_v20, %v2568_v58  ;;  %v4307_v20 = vld [vmem:[%s7790_s19 + $0x18] sm:$0xf0] }
 0x6d9   :  { %v4840_v40 = vpop.eup %4839  ;;  %3937 = vst [vmem:[%s7788_s25 + $0x190] sm:$0xff] %v7146_v46  ;;  %v2247_v21 = vmul.f32 1.442695, %v2191_v25 }
 0x6da   :  { %v2350_v48 = vmul.f32 %v4840_v40, %v4578_v38 }
 0x6db   :  { %v2496_v49 = vpop.f32.mrf.mxu3  ;;  %4841 = vpow2.f32 %v2247_v21 }
 0x6dc   :  { %v2497_v12 = vadd.f32 %v7062_v34, %v2496_v49  ;;  %v2149_v1 = vpop.f32.mrf.mxu2  ;;  %v2382_v45 = vadd.f32 %v2350_v48, %v7105_v19  ;;  %v4501_v48 = vld [vmem:[%s7790_s19 + $0x14] sm:$0xf] }
 0x6dd   :  { %v2150_v24 = vadd.f32 %v2149_v1, %v6768_v53  ;;  %v4310_v16 = vor.u32 %v4501_v48, %v4307_v20 }
 0x6de   :  { %v2569_v47 = vmax.f32 %v2497_v12, 0.0  ;;  %v2063_v51 = vpop.f32.mrf.mxu1  ;;  %v2402_v4 = vpack.c.bf16 %v2382_v45, %v2381_v50 }
 0x6df   :  { %v2192_v62 = vmul.f32 0.5, %v2150_v24  ;;  %3938 = vst [vmem:[%s7788_s25 + $0x198] sm:$0xff] %v2150_v24  ;;  %v7170_v39 = vadd.f32 %v2063_v51, %v6757_v13  ;;  %3206 = vmatpush.bf16.msrb.mxu2 %v4310_v16  ;;  %v4502_v51 = vld [vmem:[%s7790_s19 + $0x14] sm:$0xf0] }
 0x6e0   :  { %v2665_v5 = vmul.f32 %v4606_v57, %v2569_v47  ;;  %2538 = vmatmul.bf16.gmra.mxu3 %v2402_v4  ;;  %v4305_v47 = vld [vmem:[%s7790_s19 + $0x10] sm:$0xf] }
 0x6e1   :  { %v2249_v19 = vmul.f32 1.442695, %v2192_v62  ;;  %3939 = vst [vmem:[%s7788_s25 + $0x1a0] sm:$0xff] %v7170_v39  ;;  %v4842_v32 = vpop.eup %4841  ;;  %v4306_v62 = vor.u32 %v4502_v51, %v4305_v47 }
 0x6e2   :  { %v2694_v61 = vpack.c.bf16 %v2665_v5, %v2664_v22  ;;  %v2351_v42 = vmul.f32 %v4842_v32, %v4581_v56  ;;  %v4613_v5 = vunpack.c.l.bf16 %v4741_v2 }
 0x6e3   :  { %4843 = vpow2.f32 %v2249_v19  ;;  %v2499_v3 = vpop.f32.mrf.mxu3  ;;  %3117 = vmatpush.bf16.msrb.mxu1 %v4306_v62 }
 0x6e4   :  { %v2152_v52 = vpop.f32.mrf.mxu2  ;;  %2794 = vmatmul.bf16.gmra.mxu0 %v2694_v61  ;;  %v2500_v30 = vadd.f32 %v7062_v34, %v2499_v3  ;;  %v2383_v11 = vadd.f32 %v2351_v42, %v7126_v31  ;;  %v4614_v61 = vunpack.c.h.bf16 %v4741_v2 }
 0x6e5   :  { %v2153_v27 = vadd.f32 %v2152_v52, %v6768_v53 }
 0x6e6   :  { %v2065_v59 = vpop.f32.mrf.mxu1  ;;  %v2570_v14 = vmax.f32 %v2500_v30, 0.0 }
 0x6e7   :  { %v2193_v54 = vmul.f32 0.5, %v2153_v27  ;;  %3940 = vst [vmem:[%s7788_s25 + $0x1a8] sm:$0xff] %v2153_v27  ;;  %v7190_v29 = vadd.f32 %v2065_v59, %v6757_v13 }
 0x6e8   :  { %v2666_v55 = vmul.f32 %v4609_v35, %v2570_v14  ;;  %v4736_v35 = vld [vmem:[%s7789_s12 + $0x70] sm:$0xff]  }
 0x6e9   :  { %v4844_v36 = vpop.eup %4843  ;;  %3941 = vst [vmem:[%s7788_s25 + $0x1b0] sm:$0xff] %v7190_v29  ;;  %v2251_v26 = vmul.f32 1.442695, %v2193_v54  ;;  %v4589_v37 = vunpack.c.l.bf16 %v4736_v35 }
 0x6ea   :  { %v2352_v15 = vmul.f32 %v4844_v36, %v4582_v23 }
 0x6eb   :  { %v2501_v41 = vpop.f32.mrf.mxu3  ;;  %4845 = vpow2.f32 %v2251_v26 }
 0x6ec   :  { %v2502_v10 = vadd.f32 %v7062_v34, %v2501_v41  ;;  %v2154_v6 = vpop.f32.mrf.mxu2  ;;  %v2384_v8 = vadd.f32 %v2352_v15, %v7146_v46  ;;  %v4735_v46 = vld [vmem:[%s7789_s12 + $0x68] sm:$0xff]  }
 0x6ed   :  { %v2155_v63 = vadd.f32 %v2154_v6, %v6768_v53  ;;  %v4585_v49 = vunpack.c.l.bf16 %v4735_v46  ;;  %v4586_v58 = vunpack.c.h.bf16 %v4735_v46 }
 0x6ee   :  { %v2571_v28 = vmax.f32 %v2502_v10, 0.0  ;;  %v2068_v9 = vpop.f32.mrf.mxu1  ;;  %v2403_v43 = vpack.c.bf16 %v2384_v8, %v2383_v11  ;;  %v4590_v11 = vunpack.c.h.bf16 %v4736_v35 }
 0x6ef   :  { %v2194_v38 = vmul.f32 0.5, %v2155_v63  ;;  %3942 = vst [vmem:[%s7788_s25 + $0x1b8] sm:$0xff] %v2155_v63  ;;  %v7211_v25 = vadd.f32 %v2068_v9, %v6757_v13  ;;  %v4742_v9 = vld [vmem:[%s7792_s15 + $0x28] sm:$0xff]  }
 0x6f0   :  { %v2667_v33 = vmul.f32 %v4610_v60, %v2571_v28  ;;  %2543 = vmatmul.bf16.gmra.mxu3 %v2403_v43 }
 0x6f1   :  { %v2253_v31 = vmul.f32 1.442695, %v2194_v38  ;;  %3943 = vst [vmem:[%s7788_s25 + $0x1c0] sm:$0xff] %v7211_v25  ;;  %v4846_v57 = vpop.eup %4845  ;;  %v4520_v38 = vld [vmem:[%s7794_s22 + $0x28] sm:$0xff] }
 0x6f2   :  { %v2695_v17 = vpack.c.bf16 %v2667_v33, %v2666_v55  ;;  %v2353_v24 = vmul.f32 %v4846_v57, %v4585_v49  ;;  %3679 = vmatpush.bf16.msrb.mxu3 %v4520_v38 }
 0x6f3   :  { %4847 = vpow2.f32 %v2253_v31  ;;  %v2504_v40 = vpop.f32.mrf.mxu3  ;;  %v4617_v31 = vunpack.c.l.bf16 %v4742_v9 }
 0x6f4   :  { %v2157_v21 = vpop.f32.mrf.mxu2  ;;  %2799 = vmatmul.bf16.gmra.mxu0 %v2695_v17  ;;  %v2505_v45 = vadd.f32 %v7062_v34, %v2504_v40  ;;  %v2385_v32 = vadd.f32 %v2353_v24, %v7170_v39  ;;  %v4529_v39 = vld [vmem:[%s7794_s22 + $0x70] sm:$0xff]  ;;  %v4618_v17 = vunpack.c.h.bf16 %v4742_v9 }
 0x6f5   :  { %v2158_v50 = vadd.f32 %v2157_v21, %v6768_v53  ;;  %3767 = vmatpush.bf16.msrb.mxu0 %v4529_v39 }
 0x6f6   :  { %v2070_v7 = vpop.f32.mrf.mxu1  ;;  %v2572_v3 = vmax.f32 %v2505_v45, 0.0  ;;  %v4499_v45 = vld [vmem:[%s7790_s19 + $0x4] sm:$0xf] }
 0x6f7   :  { %v2195_v12 = vmul.f32 0.5, %v2158_v50  ;;  %3944 = vst [vmem:[%s7788_s25 + $0x1c8] sm:$0xff] %v2158_v50  ;;  %v7231_v1 = vadd.f32 %v2070_v7, %v6757_v13 }
 0x6f8   :  { %v2668_v36 = vmul.f32 %v4613_v5, %v2572_v3  ;;  %v4743_v5 = vld [vmem:[%s7792_s15 + $0x30] sm:$0xff]  }
 0x6f9   :  { %v4848_v4 = vpop.eup %4847  ;;  %3945 = vst [vmem:[%s7788_s25 + $0x1d0] sm:$0xff] %v7231_v1  ;;  %v2255_v19 = vmul.f32 1.442695, %v2195_v12 }
 0x6fa   :  { %v2354_v22 = vmul.f32 %v4848_v4, %v4586_v58 }
 0x6fb   :  { %v2506_v0 = vpop.f32.mrf.mxu3  ;;  %4849 = vpow2.f32 %v2255_v19 }
 0x6fc   :  { %v2507_v52 = vadd.f32 %v7062_v34, %v2506_v0  ;;  %v2159_v56 = vpop.f32.mrf.mxu2  ;;  %v2386_v27 = vadd.f32 %v2354_v22, %v7190_v29  ;;  %v4297_v0 = vld [vmem:[%s7790_s19] sm:$0xf] }
 0x6fd   :  { %v2160_v59 = vadd.f32 %v2159_v56, %v6768_v53  ;;  %v4621_v56 = vunpack.c.l.bf16 %v4743_v5 }
 0x6fe   :  { %v2573_v23 = vmax.f32 %v2507_v52, 0.0  ;;  %v2073_v54 = vpop.f32.mrf.mxu1  ;;  %v2404_v30 = vpack.c.bf16 %v2386_v27, %v2385_v32  ;;  %v4622_v27 = vunpack.c.h.bf16 %v4743_v5 }
 0x6ff   :  { %v2196_v18 = vmul.f32 0.5, %v2160_v59  ;;  %3946 = vst [vmem:[%s7788_s25 + $0x1d8] sm:$0xff] %v2160_v59  ;;  %v7255_v42 = vadd.f32 %v2073_v54, %v6757_v13 }
 0x700   :  { %v2669_v15 = vmul.f32 %v4614_v61, %v2573_v23  ;;  %2548 = vmatmul.bf16.gmra.mxu3 %v2404_v30  ;;  %v4500_v61 = vld [vmem:[%s7790_s19 + $0x4] sm:$0xf0] }
 0x701   :  { %v2257_v29 = vmul.f32 1.442695, %v2196_v18  ;;  %3947 = vst [vmem:[%s7788_s25 + $0x1e0] sm:$0xff] %v7255_v42  ;;  %v4850_v14 = vpop.eup %4849 }
 0x702   :  { %v2696_v26 = vpack.c.bf16 %v2669_v15, %v2668_v36  ;;  %v2355_v43 = vmul.f32 %v4850_v14, %v4589_v37 }
 0x703   :  { %4851 = vpow2.f32 %v2257_v29  ;;  %v2509_v41 = vpop.f32.mrf.mxu3 }
 0x704   :  { %v2162_v60 = vpop.f32.mrf.mxu2  ;;  %2804 = vmatmul.bf16.gmra.mxu0 %v2696_v26  ;;  %v2510_v28 = vadd.f32 %v7062_v34, %v2509_v41  ;;  %v2387_v21 = vadd.f32 %v2355_v43, %v7211_v25  ;;  %v4299_v25 = vld [vmem:[%s7790_s19 + $0x8] sm:$0xf0] }
 0x705   :  { %v2163_v10 = vadd.f32 %v2162_v60, %v6768_v53  ;;  %v4302_v2 = vor.u32 %v4499_v45, %v4299_v25  ;;  %v4744_v60 = vld [vmem:[%s7792_s15 + $0x38] sm:$0xff]   ;;  %v4746_v45 = vld [vmem:[%s7792_s15 + $0x48] sm:$0xff]  }
 0x706   :  { %v2075_v6 = vpop.f32.mrf.mxu1  ;;  %v2574_v40 = vmax.f32 %v2510_v28, 0.0  ;;  %v4518_v25 = vld [vmem:[%s7794_s22 + $0x18] sm:$0xff] }
 0x707   :  { %v2197_v8 = vmul.f32 0.5, %v2163_v10  ;;  %3948 = vst [vmem:[%s7788_s25 + $0x1e8] sm:$0xff] %v2163_v10  ;;  %v2076_v63 = vadd.f32 %v2075_v6, %v6757_v13  ;;  %3207 = vmatpush.bf16.msrb.mxu2 %v4302_v2  ;;  %v4625_v10 = vunpack.c.l.bf16 %v4744_v60 }
 0x708   :  { %v2670_v58 = vmul.f32 %v4617_v31, %v2574_v40 }
 0x709   :  { %v4852_v55 = vpop.eup %4851  ;;  %3949 = vst [vmem:[%s7788_s25 + $0x1f0] sm:$0xff] %v2076_v63  ;;  %v2259_v13 = vmul.f32 1.442695, %v2197_v8 }
 0x70a   :  { %v2356_v33 = vmul.f32 %v4852_v55, %v4590_v11  ;;  %v4626_v11 = vunpack.c.h.bf16 %v4744_v60  ;;  %v4745_v55 = vld [vmem:[%s7792_s15 + $0x40] sm:$0xff]  }
 0x70b   :  { %v2511_v46 = vpop.f32.mrf.mxu3  ;;  %4853 = vpow2.f32 %v2259_v13  ;;  %4774 = vmatpush.bf16.msra.mxu2 %v7182_v44  ;;  %v4298_v44 = vor.u32 %v4500_v61, %v4297_v0  ;;  %v4629_v13 = vunpack.c.l.bf16 %v4745_v55 }
 0x70c   :  { %v2512_v48 = vadd.f32 %v7062_v34, %v2511_v46  ;;  %v2164_v20 = vpop.f32.mrf.mxu2  ;;  %v2388_v49 = vadd.f32 %v2356_v33, %v7231_v1  ;;  %v4737_v1 = vld [vmem:[%s7789_s12 + $0x78] sm:$0xff]  }
 0x70d   :  { %v2165_v57 = vadd.f32 %v2164_v20, %v6768_v53  ;;  %v4593_v51 = vunpack.c.l.bf16 %v4737_v1  ;;  %v4594_v62 = vunpack.c.h.bf16 %v4737_v1  ;;  %3118 = vmatpush.bf16.msrb.mxu1 %v4298_v44 }
 0x70e   :  { %v2575_v50 = vmax.f32 %v2512_v48, 0.0  ;;  %v2405_v16 = vpack.c.bf16 %v2388_v49, %v2387_v21  ;;  %v4527_v21 = vld [vmem:[%s7794_s22 + $0x60] sm:$0xff] }
 0x70f   :  { %v2198_v7 = vmul.f32 0.5, %v2165_v57  ;;  %3950 = vst [vmem:[%s7788_s25 + $0x1f8] sm:$0xff] %v2165_v57  ;;  %4775 = vmatpush.bf16.msra.mxu2 %v4529_v39  ;;  %v4528_v39 = vld [vmem:[%s7794_s22 + $0x68] sm:$0xff]  ;;  %v7333_v57 = vld [vmem:[%s7793_s17] ss:$0 sm:$0xff] }
 0x710   :  { %v2671_v12 = vmul.f32 %v4618_v17, %v2575_v50  ;;  %2553 = vmatmul.bf16.gmra.mxu3 %v2405_v16  ;;  %3768 = vmatpush.bf16.msrb.mxu0 %v4528_v39  ;;  %v4630_v17 = vunpack.c.h.bf16 %v4745_v55 }
 0x711   :  { %v2261_v53 = vmul.f32 1.442695, %v2198_v7  ;;  %v4854_v4 = vpop.eup %4853 }
 0x712   :  { %v2697_v24 = vpack.c.bf16 %v2671_v12, %v2670_v58  ;;  %v2357_v19 = vmul.f32 %v4854_v4, %v4593_v51  ;;  %v4660_v58 = vld [vmem:[%s7795_s18] sm:$0xff]   ;;  %v4633_v51 = vunpack.c.l.bf16 %v4746_v45 }
 0x713   :  { %4855 = vpow2.f32 %v2261_v53  ;;  %v2514_v47 = vpop.f32.mrf.mxu3  ;;  %4776 = vmatpush.bf16.msra.mxu2 %v4528_v39  ;;  %v4661_v2 = vunpack.c.l.bf16 %v4660_v58 }
 0x714   :  { %2809 = vmatmul.bf16.gmra.mxu0 %v2697_v24  ;;  %v2515_v22 = vadd.f32 %v7062_v34, %v2514_v47  ;;  %v2389_v54 = vadd.f32 %v2357_v19, %v7255_v42  ;;  %v4519_v42 = vld [vmem:[%s7794_s22 + $0x20] sm:$0xff]  ;;  %v4662_v47 = vunpack.c.h.bf16 %v4660_v58  ;;  %v4634_v19 = vunpack.c.h.bf16 %v4746_v45 }
 0x715   :  { %3680 = vmatpush.bf16.msrb.mxu3 %v4519_v42  ;;  %3769 = vmatpush.bf16.msrb.mxu0 %v4527_v21 }
 0x716   :  { %v2576_v59 = vmax.f32 %v2515_v22, 0.0 }
 0x717   :  { %4777 = vmatpush.bf16.msra.mxu2 %v4527_v21 }
 0x718   :  { %v2672_v15 = vmul.f32 %v4621_v56, %v2576_v59 }
 0x719   :  { %v4856_v3 = vpop.eup %4855  ;;  %3681 = vmatpush.bf16.msrb.mxu3 %v4518_v25 }
 0x71a   :  { %v2358_v52 = vmul.f32 %v4856_v3, %v4594_v62 }
 0x71b   :  { %v2516_v32 = vpop.f32.mrf.mxu3 }
 0x71c   :  { %v2517_v23 = vadd.f32 %v7062_v34, %v2516_v32  ;;  %v2390_v30 = vadd.f32 %v2358_v52, %v2076_v63 }
 0x71e   :  { %v2577_v18 = vmax.f32 %v2517_v23, 0.0  ;;  %v2406_v36 = vpack.c.bf16 %v2390_v30, %v2389_v54  ;;  %v4753_v54 = vld [vmem:[%s7795_s18 + $0x8] sm:$0xff]  }
 0x720   :  { %v2673_v29 = vmul.f32 %v4622_v27, %v2577_v18  ;;  %2558 = vmatmul.bf16.gmra.mxu3 %v2406_v36  ;;  %v4747_v18 = vld [vmem:[%s7792_s15 + $0x50] sm:$0xff]  }
 0x722   :  { %v2698_v35 = vpack.c.bf16 %v2673_v29, %v2672_v15  ;;  %v4665_v29 = vunpack.c.l.bf16 %v4753_v54 }
 0x723   :  { %v2519_v26 = vpop.f32.mrf.mxu3 }
 0x724   :  { %2814 = vmatmul.bf16.gmra.mxu0 %v2698_v35  ;;  %v2520_v41 = vadd.f32 %v7062_v34, %v2519_v26  ;;  %v4666_v35 = vunpack.c.h.bf16 %v4753_v54  ;;  %v4637_v26 = vunpack.c.l.bf16 %v4747_v18 }
 0x726   :  { %v2578_v14 = vmax.f32 %v2520_v41, 0.0 }
 0x728   :  { %v2674_v63 = vmul.f32 %v4625_v10, %v2578_v14  ;;  %v4638_v14 = vunpack.c.h.bf16 %v4747_v18 }
 0x72b   :  { %v2521_v37 = vpop.f32.mrf.mxu3 }
 0x72c   :  { %v2522_v6 = vadd.f32 %v7062_v34, %v2521_v37 }
 0x72e   :  { %v2579_v8 = vmax.f32 %v2522_v6, 0.0 }
 0x730   :  { %v2675_v28 = vmul.f32 %v4626_v11, %v2579_v8 }
 0x732   :  { %v2699_v9 = vpack.c.bf16 %v2675_v28, %v2674_v63 }
 0x733   :  { %v2524_v43 = vpop.f32.mrf.mxu3 }
 0x734   :  { %2819 = vmatmul.bf16.gmra.mxu0 %v2699_v9  ;;  %v2525_v38 = vadd.f32 %v7062_v34, %v2524_v43  ;;  %v4526_v9 = vld [vmem:[%s7794_s22 + $0x58] sm:$0xff] }
 0x735   :  { %3770 = vmatpush.bf16.msrb.mxu0 %v4526_v9  ;;  %4778 = vmatpush.bf16.msra.mxu2 %v4526_v9 }
 0x736   :  { %v2580_v31 = vmax.f32 %v2525_v38, 0.0 }
 0x738   :  { %v2676_v48 = vmul.f32 %v4629_v13, %v2580_v31  ;;  %v4754_v31 = vld [vmem:[%s7795_s18 + $0x10] sm:$0xff]  }
 0x73b   :  { %v2526_v33 = vpop.f32.mrf.mxu3 }
 0x73c   :  { %v2527_v46 = vadd.f32 %v7062_v34, %v2526_v33 }
 0x73e   :  { %v2581_v40 = vmax.f32 %v2527_v46, 0.0  ;;  %v4748_v46 = vld [vmem:[%s7792_s15 + $0x58] sm:$0xff]  }
 0x73f   :  { %v4642_v45 = vunpack.c.h.bf16 %v4748_v46 }
 0x740   :  { %v2677_v20 = vmul.f32 %v4630_v17, %v2581_v40  ;;  %v4517_v17 = vld [vmem:[%s7794_s22 + $0x10] sm:$0xff] }
 0x741   :  { %v2785_v49 = vpop.f32.mrf.mxu0  ;;  %3682 = vmatpush.bf16.msrb.mxu3 %v4517_v17 }
 0x742   :  { %v2700_v50 = vpack.c.bf16 %v2677_v20, %v2676_v48  ;;  %v2786_v7 = vadd.f32 %v7333_v57, %v2785_v49  ;;  %v4669_v20 = vunpack.c.l.bf16 %v4754_v31  ;;  %v4670_v49 = vunpack.c.h.bf16 %v4754_v31 }
 0x743   :  { %v2529_v16 = vpop.f32.mrf.mxu3 }
 0x744   :  { %2824 = vmatmul.bf16.gmra.mxu0 %v2700_v50  ;;  %v2530_v12 = vadd.f32 %v7062_v34, %v2529_v16  ;;  %v2865_v1 = vmax.f32 %v2786_v7, 0.0  ;;  %v4641_v50 = vunpack.c.l.bf16 %v4748_v46 }
 0x746   :  { %v2582_v62 = vmax.f32 %v2530_v12, 0.0  ;;  %v2961_v0 = vmul.f32 %v4661_v2, %v2865_v1 }
 0x748   :  { %v2678_v44 = vmul.f32 %v4633_v51, %v2582_v62 }
 0x749   :  { %v2787_v53 = vpop.f32.mrf.mxu0 }
 0x74a   :  { %v2788_v24 = vadd.f32 %v7333_v57, %v2787_v53 }
 0x74b   :  { %v2531_v4 = vpop.f32.mrf.mxu3 }
 0x74c   :  { %v2866_v22 = vmax.f32 %v2788_v24, 0.0  ;;  %v2532_v5 = vadd.f32 %v7062_v34, %v2531_v4 }
 0x74e   :  { %v2962_v61 = vmul.f32 %v4662_v47, %v2866_v22  ;;  %v2583_v3 = vmax.f32 %v2532_v5, 0.0  ;;  %v4755_v5 = vld [vmem:[%s7795_s18 + $0x18] sm:$0xff]  }
 0x750   :  { %v2993_v52 = vpack.c.bf16 %v2962_v61, %v2961_v0  ;;  %v2679_v56 = vmul.f32 %v4634_v19, %v2583_v3  ;;  %v4749_v0 = vld [vmem:[%s7792_s15 + $0x60] sm:$0xff]  }
 0x751   :  { %v2790_v32 = vpop.f32.mrf.mxu0 }
 0x752   :  { %3119 = vmatmul.bf16.vlgmr.msrb.gmra.mxu1 %v2993_v52  ;;  %3208 = vmatmul.bf16.vlgmr.msrb.gmra.mxu2 %v2993_v52  ;;  %v2701_v27 = vpack.c.bf16 %v2679_v56, %v2678_v44  ;;  %v2791_v23 = vadd.f32 %v7333_v57, %v2790_v32  ;;  %v4673_v44 = vunpack.c.l.bf16 %v4755_v5  ;;  %v4674_v56 = vunpack.c.h.bf16 %v4755_v5  ;;  %v4857_v5 = vld [vmem:[%s7791_s14] ss:$0 sm:$0xff] }
 0x753   :  { %v2534_v59 = vpop.f32.mrf.mxu3  ;;  %v4645_v32 = vunpack.c.l.bf16 %v4749_v0 }
 0x754   :  { %2829 = vmatmul.bf16.gmra.mxu0 %v2701_v27  ;;  %v2535_v30 = vadd.f32 %v7062_v34, %v2534_v59  ;;  %v2867_v15 = vmax.f32 %v2791_v23, 0.0 }
 0x756   :  { %v2584_v42 = vmax.f32 %v2535_v30, 0.0  ;;  %v2963_v10 = vmul.f32 %v4665_v29, %v2867_v15  ;;  %v4646_v30 = vunpack.c.h.bf16 %v4749_v0 }
 0x758   :  { %v2680_v8 = vmul.f32 %v4637_v26, %v2584_v42  ;;  %v4525_v26 = vld [vmem:[%s7794_s22 + $0x50] sm:$0xff] }
 0x759   :  { %v2792_v36 = vpop.f32.mrf.mxu0  ;;  %3771 = vmatpush.bf16.msrb.mxu0 %v4525_v26  ;;  %4779 = vmatpush.bf16.msra.mxu2 %v4525_v26 }
 0x75a   :  { %v2793_v39 = vadd.f32 %v7333_v57, %v2792_v36 }
 0x75b   :  { %v2536_v41 = vpop.f32.mrf.mxu3 }
 0x75c   :  { %v2868_v60 = vmax.f32 %v2793_v39, 0.0  ;;  %v2537_v37 = vadd.f32 %v7062_v34, %v2536_v41 }
 0x75e   :  { %v2964_v6 = vmul.f32 %v4666_v35, %v2868_v60  ;;  %v2585_v11 = vmax.f32 %v2537_v37, 0.0 }
 0x760   :  { %v2681_v63 = vmul.f32 %v4638_v14, %v2585_v11  ;;  %v2994_v28 = vpack.c.bf16 %v2964_v6, %v2963_v10  ;;  %v4756_v14 = vld [vmem:[%s7795_s18 + $0x20] sm:$0xff]   ;;  %v4750_v6 = vld [vmem:[%s7792_s15 + $0x68] sm:$0xff]  }
 0x761   :  { %v2795_v43 = vpop.f32.mrf.mxu0  ;;  %v4516_v11 = vld [vmem:[%s7794_s22 + $0x8] sm:$0xff]  ;;  %v4650_v46 = vunpack.c.h.bf16 %v4750_v6 }
 0x762   :  { %3124 = vmatmul.bf16.gmra.mxu1 %v2994_v28  ;;  %3213 = vmatmul.bf16.gmra.mxu2 %v2994_v28  ;;  %v2702_v38 = vpack.c.bf16 %v2681_v63, %v2680_v8  ;;  %v2796_v33 = vadd.f32 %v7333_v57, %v2795_v43  ;;  %v4677_v28 = vunpack.c.l.bf16 %v4756_v14  ;;  %v4678_v43 = vunpack.c.h.bf16 %v4756_v14 }
 0x763   :  { %v2539_v55 = vpop.f32.mrf.mxu3  ;;  %3683 = vmatpush.bf16.msrb.mxu3 %v4516_v11 }
 0x764   :  { %2834 = vmatmul.bf16.gmra.mxu0 %v2702_v38  ;;  %v2540_v13 = vadd.f32 %v7062_v34, %v2539_v55  ;;  %v2869_v48 = vmax.f32 %v2796_v33, 0.0  ;;  %v4649_v38 = vunpack.c.l.bf16 %v4750_v6 }
 0x766   :  { %v2586_v7 = vmax.f32 %v2540_v13, 0.0  ;;  %v2965_v25 = vmul.f32 %v4669_v20, %v2869_v48 }
 0x768   :  { %v2682_v2 = vmul.f32 %v4641_v50, %v2586_v7 }
 0x769   :  { %v2797_v40 = vpop.f32.mrf.mxu0 }
 0x76a   :  { %v2798_v21 = vadd.f32 %v7333_v57, %v2797_v40 }
 0x76b   :  { %v2541_v16 = vpop.f32.mrf.mxu3 }
 0x76c   :  { %v2870_v58 = vmax.f32 %v2798_v21, 0.0  ;;  %v2542_v12 = vadd.f32 %v7062_v34, %v2541_v16 }
 0x76e   :  { %v2966_v53 = vmul.f32 %v4670_v49, %v2870_v58  ;;  %v2587_v1 = vmax.f32 %v2542_v12, 0.0  ;;  %v4757_v12 = vld [vmem:[%s7795_s18 + $0x28] sm:$0xff]  }
 0x770   :  { %v2683_v24 = vmul.f32 %v4642_v45, %v2587_v1  ;;  %v2995_v47 = vpack.c.bf16 %v2966_v53, %v2965_v25  ;;  %v4751_v25 = vld [vmem:[%s7792_s15 + $0x70] sm:$0xff]  }
 0x771   :  { %v2800_v51 = vpop.f32.mrf.mxu0 }
 0x772   :  { %3129 = vmatmul.bf16.gmra.mxu1 %v2995_v47  ;;  %3218 = vmatmul.bf16.gmra.mxu2 %v2995_v47  ;;  %v2703_v4 = vpack.c.bf16 %v2683_v24, %v2682_v2  ;;  %v2801_v22 = vadd.f32 %v7333_v57, %v2800_v51  ;;  %v4681_v2 = vunpack.c.l.bf16 %v4757_v12  ;;  %v4682_v47 = vunpack.c.h.bf16 %v4757_v12  ;;  %v4760_v12 = vld [vmem:[%s7795_s18 + $0x40] sm:$0xff]  }
 0x773   :  { %v2544_v62 = vpop.f32.mrf.mxu3  ;;  %v4653_v51 = vunpack.c.l.bf16 %v4751_v25 }
 0x774   :  { %2839 = vmatmul.bf16.gmra.mxu0 %v2703_v4  ;;  %v2545_v19 = vadd.f32 %v7062_v34, %v2544_v62  ;;  %v2871_v3 = vmax.f32 %v2801_v22, 0.0 }
 0x776   :  { %v2588_v59 = vmax.f32 %v2545_v19, 0.0  ;;  %v2967_v18 = vmul.f32 %v4673_v44, %v2871_v3  ;;  %v4524_v44 = vld [vmem:[%s7794_s22 + $0x48] sm:$0xff] }
 0x777   :  { %3772 = vmatpush.bf16.msrb.mxu0 %v4524_v44  ;;  %4780 = vmatpush.bf16.msra.mxu2 %v4524_v44  ;;  %v3354_v44 = vld [vmem:[%s7797_s21 + $0x8] sm:$0xff] }
 0x778   :  { %v2684_v29 = vmul.f32 %v4645_v32, %v2588_v59 }
 0x779   :  { %v2802_v61 = vpop.f32.mrf.mxu0 }
 0x77a   :  { %v2803_v52 = vadd.f32 %v7333_v57, %v2802_v61 }
 0x77b   :  { %v2546_v27 = vpop.f32.mrf.mxu3 }
 0x77c   :  { %v2872_v23 = vmax.f32 %v2803_v52, 0.0  ;;  %v2547_v54 = vadd.f32 %v7062_v34, %v2546_v27 }
 0x77e   :  { %v2968_v36 = vmul.f32 %v4674_v56, %v2872_v23  ;;  %v2589_v15 = vmax.f32 %v2547_v54, 0.0 }
 0x780   :  { %v2685_v39 = vmul.f32 %v4646_v30, %v2589_v15  ;;  %v2996_v35 = vpack.c.bf16 %v2968_v36, %v2967_v18  ;;  %v4515_v30 = vld [vmem:[%s7794_s22] sm:$0xff]  ;;  %v4758_v18 = vld [vmem:[%s7795_s18 + $0x30] sm:$0xff]   ;;  %v4752_v15 = vld [vmem:[%s7792_s15 + $0x78] sm:$0xff]  }
 0x781   :  { %v2805_v41 = vpop.f32.mrf.mxu0  ;;  %3684 = vmatpush.bf16.msrb.mxu3 %v4515_v30  ;;  %v4658_v6 = vunpack.c.h.bf16 %v4752_v15 }
 0x782   :  { %3134 = vmatmul.bf16.gmra.mxu1 %v2996_v35  ;;  %3223 = vmatmul.bf16.gmra.mxu2 %v2996_v35  ;;  %v2704_v42 = vpack.c.bf16 %v2685_v39, %v2684_v29  ;;  %v2806_v37 = vadd.f32 %v7333_v57, %v2805_v41  ;;  %v4685_v35 = vunpack.c.l.bf16 %v4758_v18  ;;  %v4686_v41 = vunpack.c.h.bf16 %v4758_v18 }
 0x783   :  { %v2549_v60 = vpop.f32.mrf.mxu3 }
 0x784   :  { %2844 = vmatmul.bf16.gmra.mxu0 %v2704_v42  ;;  %v2550_v10 = vadd.f32 %v7062_v34, %v2549_v60  ;;  %v2873_v63 = vmax.f32 %v2806_v37, 0.0  ;;  %v4657_v42 = vunpack.c.l.bf16 %v4752_v15 }
 0x786   :  { %v2590_v33 = vmax.f32 %v2550_v10, 0.0  ;;  %v2969_v17 = vmul.f32 %v4677_v28, %v2873_v63 }
 0x788   :  { %v2686_v20 = vmul.f32 %v4649_v38, %v2590_v33 }
 0x789   :  { %v2807_v8 = vpop.f32.mrf.mxu0 }
 0x78a   :  { %v2808_v9 = vadd.f32 %v7333_v57, %v2807_v8 }
 0x78b   :  { %v2551_v55 = vpop.f32.mrf.mxu3 }
 0x78c   :  { %v2874_v31 = vmax.f32 %v2808_v9, 0.0  ;;  %v2552_v13 = vadd.f32 %v7062_v34, %v2551_v55 }
 0x78e   :  { %v2970_v40 = vmul.f32 %v4678_v43, %v2874_v31  ;;  %v2591_v48 = vmax.f32 %v2552_v13, 0.0  ;;  %v4759_v31 = vld [vmem:[%s7795_s18 + $0x38] sm:$0xff]  }
 0x790   :  { %v2687_v21 = vmul.f32 %v4650_v46, %v2591_v48  ;;  %v2997_v49 = vpack.c.bf16 %v2970_v40, %v2969_v17  ;;  %v4689_v17 = vunpack.c.l.bf16 %v4759_v31  ;;  %v4690_v48 = vunpack.c.h.bf16 %v4759_v31 }
 0x791   :  { %v2810_v50 = vpop.f32.mrf.mxu0 }
 0x792   :  { %3139 = vmatmul.bf16.gmra.mxu1 %v2997_v49  ;;  %3228 = vmatmul.bf16.gmra.mxu2 %v2997_v49  ;;  %v2705_v16 = vpack.c.bf16 %v2687_v21, %v2686_v20  ;;  %v2811_v58 = vadd.f32 %v7333_v57, %v2810_v50  ;;  %v4523_v50 = vld [vmem:[%s7794_s22 + $0x40] sm:$0xff] }
 0x793   :  { %v2554_v7 = vpop.f32.mrf.mxu3  ;;  %3773 = vmatpush.bf16.msrb.mxu0 %v4523_v50  ;;  %4781 = vmatpush.bf16.msra.mxu2 %v4523_v50 }
 0x794   :  { %2849 = vmatmul.bf16.gmra.mxu0 %v2705_v16  ;;  %v2555_v45 = vadd.f32 %v7062_v34, %v2554_v7  ;;  %v2875_v1 = vmax.f32 %v2811_v58, 0.0  ;;  %v4654_v34 = vunpack.c.h.bf16 %v4751_v25 }
 0x796   :  { %v2592_v62 = vmax.f32 %v2555_v45, 0.0  ;;  %v2971_v0 = vmul.f32 %v4681_v2, %v2875_v1  ;;  %v4694_v2 = vunpack.c.h.bf16 %v4760_v12 }
 0x798   :  { %v2688_v52 = vmul.f32 %v4653_v51, %v2592_v62 }
 0x799   :  { %v2812_v53 = vpop.f32.mrf.mxu0 }
 0x79a   :  { %v2813_v24 = vadd.f32 %v7333_v57, %v2812_v53  ;;  %v4693_v53 = vunpack.c.l.bf16 %v4760_v12 }
 0x79b   :  { %v2556_v4 = vpop.f32.mrf.mxu3 }
 0x79c   :  { %v2876_v22 = vmax.f32 %v2813_v24, 0.0  ;;  %v2557_v19 = vadd.f32 %v4857_v5, %v2556_v4 }
 0x79e   :  { %v2972_v61 = vmul.f32 %v4682_v47, %v2876_v22  ;;  %v2593_v3 = vmax.f32 %v2557_v19, 0.0  ;;  %v3025_v47 = vld [vmem:[%s7796_s20] sm:$0x3] }
 0x79f   :  { %v7442_v22 = vperm.slane %v3025_v47, 0 }
 0x7a0   :  { %v2689_v56 = vmul.f32 %v4654_v34, %v2593_v3  ;;  %v2998_v32 = vpack.c.bf16 %v2972_v61, %v2971_v0  ;;  %v3353_v0 = vld [vmem:[%s7797_s21] sm:$0xff] }
 0x7a1   :  { %v2815_v27 = vpop.f32.mrf.mxu0 }
 0x7a2   :  { %3144 = vmatmul.bf16.gmra.mxu1 %v2998_v32  ;;  %3233 = vmatmul.bf16.gmra.mxu2 %v2998_v32  ;;  %v2706_v59 = vpack.c.bf16 %v2689_v56, %v2688_v52  ;;  %v2816_v54 = vadd.f32 %v7333_v57, %v2815_v27  ;;  %v4761_v52 = vld [vmem:[%s7795_s18 + $0x48] sm:$0xff]   ;;  %v7455_v56 = vperm.slane %v3025_v47, 1 }
 0x7a3   :  { %v2559_v23 = vpop.f32.mrf.mxu3  ;;  %v4697_v18 = vunpack.c.l.bf16 %v4761_v52 }
 0x7a4   :  { %2854 = vmatmul.bf16.gmra.mxu0 %v2706_v59  ;;  %v2560_v36 = vadd.f32 %v4857_v5, %v2559_v23  ;;  %v2877_v39 = vmax.f32 %v2816_v54, 0.0  ;;  %v3385_v59 = vunpack.c.l.bf16 %v3353_v0  ;;  %v3387_v54 = vunpack.c.l.bf16 %v3354_v44 }
 0x7a6   :  { %v2594_v37 = vmax.f32 %v2560_v36, 0.0  ;;  %v2973_v11 = vmul.f32 %v4685_v35, %v2877_v39  ;;  %v4698_v35 = vunpack.c.h.bf16 %v4761_v52 }
 0x7a8   :  { %v2690_v28 = vmul.f32 %v4657_v42, %v2594_v37  ;;  %v3386_v37 = vunpack.c.h.bf16 %v3353_v0 }
 0x7a9   :  { %v2817_v29 = vpop.f32.mrf.mxu0 }
 0x7aa   :  { %v2818_v26 = vadd.f32 %v7333_v57, %v2817_v29 }
 0x7ab   :  { %v2561_v60 = vpop.f32.mrf.mxu3 }
 0x7ac   :  { %v2878_v14 = vmax.f32 %v2818_v26, 0.0  ;;  %v2562_v10 = vadd.f32 %v4857_v5, %v2561_v60 }
 0x7ae   :  { %v2974_v8 = vmul.f32 %v4686_v41, %v2878_v14  ;;  %v2595_v63 = vmax.f32 %v2562_v10, 0.0  ;;  %v3388_v10 = vunpack.c.h.bf16 %v3354_v44 }
 0x7b0   :  { %v2691_v9 = vmul.f32 %v4658_v6, %v2595_v63  ;;  %v2999_v43 = vpack.c.bf16 %v2974_v8, %v2973_v11 }
 0x7b1   :  { %v2820_v38 = vpop.f32.mrf.mxu0 }
 0x7b2   :  { %3149 = vmatmul.bf16.gmra.mxu1 %v2999_v43  ;;  %3238 = vmatmul.bf16.gmra.mxu2 %v2999_v43  ;;  %v2707_v55 = vpack.c.bf16 %v2691_v9, %v2690_v28  ;;  %v2821_v33 = vadd.f32 %v7333_v57, %v2820_v38 }
 0x7b4   :  { %2859 = vmatmul.bf16.gmra.mxu0 %v2707_v55  ;;  %v2879_v46 = vmax.f32 %v2821_v33, 0.0 }
 0x7b6   :  { %v2975_v21 = vmul.f32 %v4689_v17, %v2879_v46  ;;  %v3355_v46 = vld [vmem:[%s7797_s21 + $0x10] sm:$0xff] }
 0x7b7   :  { %v3389_v50 = vunpack.c.l.bf16 %v3355_v46 }
 0x7b9   :  { %v2822_v13 = vpop.f32.mrf.mxu0 }
 0x7ba   :  { %v2823_v40 = vadd.f32 %v7333_v57, %v2822_v13 }
 0x7bc   :  { %v2880_v20 = vmax.f32 %v2823_v40, 0.0 }
 0x7be   :  { %v2976_v49 = vmul.f32 %v4690_v48, %v2880_v20  ;;  %v3356_v48 = vld [vmem:[%s7797_s21 + $0x18] sm:$0xff]  ;;  %v4762_v20 = vld [vmem:[%s7795_s18 + $0x50] sm:$0xff]  }
 0x7bf   :  { %v4701_v12 = vunpack.c.l.bf16 %v4762_v20 }
 0x7c0   :  { %v3000_v16 = vpack.c.bf16 %v2976_v49, %v2975_v21 }
 0x7c1   :  { %v2825_v7 = vpop.f32.mrf.mxu0 }
 0x7c2   :  { %3154 = vmatmul.bf16.gmra.mxu1 %v3000_v16  ;;  %3243 = vmatmul.bf16.gmra.mxu2 %v3000_v16  ;;  %v2826_v58 = vadd.f32 %v7333_v57, %v2825_v7  ;;  %v3391_v7 = vunpack.c.l.bf16 %v3356_v48 }
 0x7c4   :  { %v2881_v25 = vmax.f32 %v2826_v58, 0.0 }
 0x7c6   :  { %v2977_v51 = vmul.f32 %v4693_v53, %v2881_v25 }
 0x7c9   :  { %v2827_v45 = vpop.f32.mrf.mxu0 }
 0x7ca   :  { %v2828_v1 = vadd.f32 %v7333_v57, %v2827_v45 }
 0x7cc   :  { %v2882_v24 = vmax.f32 %v2828_v1, 0.0 }
 0x7ce   :  { %v2978_v4 = vmul.f32 %v4694_v2, %v2882_v24  ;;  %v4702_v2 = vunpack.c.h.bf16 %v4762_v20 }
 0x7cf   :  { %v3120_v62 = vpop.f32.mrf.mxu1 }
 0x7d0   :  { %v3001_v5 = vpack.c.bf16 %v2978_v4, %v2977_v51  ;;  %v3121_v34 = vadd.f32 %v3120_v62, %v7442_v22  ;;  %v3390_v62 = vunpack.c.h.bf16 %v3355_v46 }
 0x7d1   :  { %v2830_v19 = vpop.f32.mrf.mxu0 }
 0x7d2   :  { %3159 = vmatmul.bf16.gmra.mxu1 %v3001_v5  ;;  %3248 = vmatmul.bf16.gmra.mxu2 %v3001_v5  ;;  %v2831_v61 = vadd.f32 %v7333_v57, %v2830_v19  ;;  %v3289_v27 = vmax.f32 %v3121_v34, 0.0  ;;  %v3392_v19 = vunpack.c.h.bf16 %v3356_v48 }
 0x7d4   :  { %v2883_v30 = vmax.f32 %v2831_v61, 0.0  ;;  %v3449_v26 = vmul.f32 %v3385_v59, %v3289_v27 }
 0x7d5   :  { %v3209_v3 = vpop.f32.mrf.mxu2 }
 0x7d6   :  { %v3210_v15 = vadd.f32 %v3209_v3, %v7455_v56  ;;  %v2979_v60 = vmul.f32 %v4697_v18, %v2883_v30  ;;  %v3357_v18 = vld [vmem:[%s7797_s21 + $0x20] sm:$0xff] }
 0x7d7   :  { %v3122_v32 = vpop.f32.mrf.mxu1 }
 0x7d8   :  { %v3123_v23 = vadd.f32 %v3122_v32, %v7442_v22  ;;  %v3290_v6 = vmax.f32 %v3210_v15, 0.0 }
 0x7d9   :  { %v2832_v36 = vpop.f32.mrf.mxu0 }
 0x7da   :  { %v3291_v29 = vmax.f32 %v3123_v23, 0.0  ;;  %v2833_v39 = vadd.f32 %v7333_v57, %v2832_v36  ;;  %v3450_v55 = vmul.f32 %v3386_v37, %v3290_v6 }
 0x7dc   :  { %v3451_v41 = vmul.f32 %v3387_v54, %v3291_v29  ;;  %v2884_v42 = vmax.f32 %v2833_v39, 0.0  ;;  %v3358_v29 = vld [vmem:[%s7797_s21 + $0x28] sm:$0xff]  ;;  %v4763_v39 = vld [vmem:[%s7795_s18 + $0x58] sm:$0xff]  }
 0x7dd   :  { %v3211_v14 = vpop.f32.mrf.mxu2 }
 0x7de   :  { %v3513_v11 = vpack.c.bf16 %v3451_v41, %v3449_v26  ;;  %v2980_v8 = vmul.f32 %v4698_v35, %v2884_v42  ;;  %v3212_v63 = vadd.f32 %v3211_v14, %v7455_v56  ;;  %v3393_v41 = vunpack.c.l.bf16 %v3357_v18 }
 0x7df   :  { %v3125_v28 = vpop.f32.mrf.mxu1  ;;  %v4705_v14 = vunpack.c.l.bf16 %v4763_v39 }
 0x7e0   :  { %v3292_v9 = vmax.f32 %v3212_v63, 0.0  ;;  %3685 = vmatmul.bf16.vlgmr.msrb.gmra.mxu3 %v3513_v11  ;;  %v3002_v43 = vpack.c.bf16 %v2980_v8, %v2979_v60  ;;  %v3126_v13 = vadd.f32 %v3125_v28, %v7442_v22  ;;  %v3395_v60 = vunpack.c.l.bf16 %v3358_v29 }
 0x7e1   :  { %v2835_v38 = vpop.f32.mrf.mxu0  ;;  %v4706_v63 = vunpack.c.h.bf16 %v4763_v39 }
 0x7e2   :  { %v3452_v33 = vmul.f32 %v3388_v10, %v3292_v9  ;;  %3164 = vmatmul.bf16.gmra.mxu1 %v3002_v43  ;;  %3253 = vmatmul.bf16.gmra.mxu2 %v3002_v43  ;;  %v2836_v17 = vadd.f32 %v7333_v57, %v2835_v38  ;;  %v3293_v49 = vmax.f32 %v3126_v13, 0.0 }
 0x7e4   :  { %v3514_v31 = vpack.c.bf16 %v3452_v33, %v3450_v55  ;;  %v2885_v58 = vmax.f32 %v2836_v17, 0.0  ;;  %v3453_v24 = vmul.f32 %v3389_v50, %v3293_v49  ;;  %v3394_v55 = vunpack.c.h.bf16 %v3357_v18 }
 0x7e5   :  { %v3214_v40 = vpop.f32.mrf.mxu2 }
 0x7e6   :  { %3774 = vmatmul.bf16.vlgmr.msrb.gmra.mxu0 %v3514_v31  ;;  %v3215_v25 = vadd.f32 %v3214_v40, %v7455_v56  ;;  %v2981_v4 = vmul.f32 %v4701_v12, %v2885_v58  ;;  %v3396_v31 = vunpack.c.h.bf16 %v3358_v29  ;;  %v3359_v12 = vld [vmem:[%s7797_s21 + $0x30] sm:$0xff] }
 0x7e7   :  { %v3127_v21 = vpop.f32.mrf.mxu1 }
 0x7e8   :  { %v3128_v16 = vadd.f32 %v3127_v21, %v7442_v22  ;;  %v3294_v34 = vmax.f32 %v3215_v25, 0.0 }
 0x7e9   :  { %v2837_v45 = vpop.f32.mrf.mxu0 }
 0x7ea   :  { %v3295_v53 = vmax.f32 %v3128_v16, 0.0  ;;  %v2838_v1 = vadd.f32 %v7333_v57, %v2837_v45  ;;  %v3454_v59 = vmul.f32 %v3390_v62, %v3294_v34 }
 0x7ec   :  { %v3455_v47 = vmul.f32 %v3391_v7, %v3295_v53  ;;  %v2886_v51 = vmax.f32 %v2838_v1, 0.0  ;;  %v3360_v53 = vld [vmem:[%s7797_s21 + $0x38] sm:$0xff]  ;;  %v4764_v1 = vld [vmem:[%s7795_s18 + $0x60] sm:$0xff]  }
 0x7ed   :  { %v3216_v5 = vpop.f32.mrf.mxu2 }
 0x7ee   :  { %v2982_v0 = vmul.f32 %v4702_v2, %v2886_v51  ;;  %v3217_v61 = vadd.f32 %v3216_v5, %v7455_v56  ;;  %v3515_v3 = vpack.c.bf16 %v3455_v47, %v3453_v24  ;;  %v3397_v47 = vunpack.c.l.bf16 %v3359_v12 }
 0x7ef   :  { %v3130_v44 = vpop.f32.mrf.mxu1  ;;  %v4709_v5 = vunpack.c.l.bf16 %v4764_v1 }
 0x7f0   :  { %v3296_v52 = vmax.f32 %v3217_v61, 0.0  ;;  %3690 = vmatmul.bf16.gmra.mxu3 %v3515_v3  ;;  %v3003_v32 = vpack.c.bf16 %v2982_v0, %v2981_v4  ;;  %v3131_v54 = vadd.f32 %v3130_v44, %v7442_v22  ;;  %v3399_v4 = vunpack.c.l.bf16 %v3360_v53 }
 0x7f1   :  { %v2840_v27 = vpop.f32.mrf.mxu0  ;;  %v4710_v3 = vunpack.c.h.bf16 %v4764_v1 }
 0x7f2   :  { %v3456_v23 = vmul.f32 %v3392_v19, %v3296_v52  ;;  %3169 = vmatmul.bf16.gmra.mxu1 %v3003_v32  ;;  %3258 = vmatmul.bf16.gmra.mxu2 %v3003_v32  ;;  %v2841_v36 = vadd.f32 %v7333_v57, %v2840_v27  ;;  %v3297_v26 = vmax.f32 %v3131_v54, 0.0  ;;  %v3400_v54 = vunpack.c.h.bf16 %v3360_v53 }
 0x7f4   :  { %v3516_v30 = vpack.c.bf16 %v3456_v23, %v3454_v59  ;;  %v2887_v37 = vmax.f32 %v2841_v36, 0.0  ;;  %v3457_v28 = vmul.f32 %v3393_v41, %v3297_v26  ;;  %v3398_v59 = vunpack.c.h.bf16 %v3359_v12 }
 0x7f5   :  { %v3219_v15 = vpop.f32.mrf.mxu2 }
 0x7f6   :  { %3779 = vmatmul.bf16.gmra.mxu0 %v3516_v30  ;;  %v3220_v6 = vadd.f32 %v3219_v15, %v7455_v56  ;;  %v2983_v38 = vmul.f32 %v4705_v14, %v2887_v37  ;;  %v3361_v14 = vld [vmem:[%s7797_s21 + $0x40] sm:$0xff] }
 0x7f7   :  { %v3132_v35 = vpop.f32.mrf.mxu1 }
 0x7f8   :  { %v3133_v42 = vadd.f32 %v3132_v35, %v7442_v22  ;;  %v3298_v13 = vmax.f32 %v3220_v6, 0.0 }
 0x7f9   :  { %v2842_v10 = vpop.f32.mrf.mxu0 }
 0x7fa   :  { %v3299_v11 = vmax.f32 %v3133_v42, 0.0  ;;  %v2843_v8 = vadd.f32 %v7333_v57, %v2842_v10  ;;  %v3458_v50 = vmul.f32 %v3394_v55, %v3298_v13 }
 0x7fc   :  { %v3459_v9 = vmul.f32 %v3395_v60, %v3299_v11  ;;  %v2888_v43 = vmax.f32 %v2843_v8, 0.0  ;;  %v3362_v11 = vld [vmem:[%s7797_s21 + $0x48] sm:$0xff] }
 0x7fd   :  { %v3221_v33 = vpop.f32.mrf.mxu2  ;;  %v4765_v8 = vld [vmem:[%s7795_s18 + $0x68] sm:$0xff]  }
 0x7fe   :  { %v2984_v46 = vmul.f32 %v4706_v63, %v2888_v43  ;;  %v3222_v17 = vadd.f32 %v3221_v33, %v7455_v56  ;;  %v3517_v40 = vpack.c.bf16 %v3459_v9, %v3457_v28  ;;  %v3401_v9 = vunpack.c.l.bf16 %v3361_v14 }
 0x7ff   :  { %v3135_v48 = vpop.f32.mrf.mxu1  ;;  %v4713_v33 = vunpack.c.l.bf16 %v4765_v8 }
 0x800   :  { %v3300_v20 = vmax.f32 %v3222_v17, 0.0  ;;  %3695 = vmatmul.bf16.gmra.mxu3 %v3517_v40  ;;  %v3004_v21 = vpack.c.bf16 %v2984_v46, %v2983_v38  ;;  %v3136_v7 = vadd.f32 %v3135_v48, %v7442_v22  ;;  %v3403_v38 = vunpack.c.l.bf16 %v3362_v11 }
 0x801   :  { %v2845_v49 = vpop.f32.mrf.mxu0  ;;  %v4714_v40 = vunpack.c.h.bf16 %v4765_v8 }
 0x802   :  { %v3460_v16 = vmul.f32 %v3396_v31, %v3300_v20  ;;  %3174 = vmatmul.bf16.gmra.mxu1 %v3004_v21  ;;  %3263 = vmatmul.bf16.gmra.mxu2 %v3004_v21  ;;  %v2846_v45 = vadd.f32 %v7333_v57, %v2845_v49  ;;  %v3301_v24 = vmax.f32 %v3136_v7, 0.0  ;;  %v3404_v7 = vunpack.c.h.bf16 %v3362_v11 }
 0x804   :  { %v3518_v58 = vpack.c.bf16 %v3460_v16, %v3458_v50  ;;  %v2889_v62 = vmax.f32 %v2846_v45, 0.0  ;;  %v3461_v44 = vmul.f32 %v3397_v47, %v3301_v24  ;;  %v3402_v50 = vunpack.c.h.bf16 %v3361_v14 }
 0x805   :  { %v3224_v25 = vpop.f32.mrf.mxu2 }
 0x806   :  { %3784 = vmatmul.bf16.gmra.mxu0 %v3518_v58  ;;  %v3225_v34 = vadd.f32 %v3224_v25, %v7455_v56  ;;  %v2985_v27 = vmul.f32 %v4709_v5, %v2889_v62  ;;  %v3363_v5 = vld [vmem:[%s7797_s21 + $0x50] sm:$0xff] }
 0x807   :  { %v3137_v2 = vpop.f32.mrf.mxu1 }
 0x808   :  { %v3138_v51 = vadd.f32 %v3137_v2, %v7442_v22  ;;  %v3302_v30 = vmax.f32 %v3225_v34, 0.0 }
 0x809   :  { %v2847_v19 = vpop.f32.mrf.mxu0 }
 0x80a   :  { %v3303_v0 = vmax.f32 %v3138_v51, 0.0  ;;  %v2848_v61 = vadd.f32 %v7333_v57, %v2847_v19  ;;  %v3462_v41 = vmul.f32 %v3398_v59, %v3302_v30 }
 0x80c   :  { %v3463_v52 = vmul.f32 %v3399_v4, %v3303_v0  ;;  %v2890_v32 = vmax.f32 %v2848_v61, 0.0  ;;  %v3364_v0 = vld [vmem:[%s7797_s21 + $0x58] sm:$0xff]  ;;  %v4766_v61 = vld [vmem:[%s7795_s18 + $0x70] sm:$0xff]  }
 0x80d   :  { %v3226_v23 = vpop.f32.mrf.mxu2 }
 0x80e   :  { %v2986_v18 = vmul.f32 %v4710_v3, %v2890_v32  ;;  %v3227_v36 = vadd.f32 %v3226_v23, %v7455_v56  ;;  %v3519_v15 = vpack.c.bf16 %v3463_v52, %v3461_v44  ;;  %v3405_v52 = vunpack.c.l.bf16 %v3363_v5 }
 0x80f   :  { %v3140_v29 = vpop.f32.mrf.mxu1  ;;  %v4717_v23 = vunpack.c.l.bf16 %v4766_v61 }
 0x810   :  { %v3304_v39 = vmax.f32 %v3227_v36, 0.0  ;;  %3700 = vmatmul.bf16.gmra.mxu3 %v3519_v15  ;;  %v3005_v35 = vpack.c.bf16 %v2986_v18, %v2985_v27  ;;  %v3141_v60 = vadd.f32 %v3140_v29, %v7442_v22  ;;  %v3407_v27 = vunpack.c.l.bf16 %v3364_v0 }
 0x811   :  { %v2850_v26 = vpop.f32.mrf.mxu0  ;;  %v4718_v15 = vunpack.c.h.bf16 %v4766_v61 }
 0x812   :  { %v3464_v42 = vmul.f32 %v3400_v54, %v3304_v39  ;;  %3179 = vmatmul.bf16.gmra.mxu1 %v3005_v35  ;;  %3268 = vmatmul.bf16.gmra.mxu2 %v3005_v35  ;;  %v2851_v10 = vadd.f32 %v7333_v57, %v2850_v26  ;;  %v3305_v28 = vmax.f32 %v3141_v60, 0.0  ;;  %v3408_v60 = vunpack.c.h.bf16 %v3364_v0 }
 0x814   :  { %v3520_v37 = vpack.c.bf16 %v3464_v42, %v3462_v41  ;;  %v2891_v55 = vmax.f32 %v2851_v10, 0.0  ;;  %v3465_v48 = vmul.f32 %v3401_v9, %v3305_v28  ;;  %v3406_v41 = vunpack.c.h.bf16 %v3363_v5 }
 0x815   :  { %v3229_v6 = vpop.f32.mrf.mxu2 }
 0x816   :  { %3789 = vmatmul.bf16.gmra.mxu0 %v3520_v37  ;;  %v3230_v13 = vadd.f32 %v3229_v6, %v7455_v56  ;;  %v2987_v49 = vmul.f32 %v4713_v33, %v2891_v55  ;;  %v3365_v33 = vld [vmem:[%s7797_s21 + $0x60] sm:$0xff] }
 0x817   :  { %v3142_v63 = vpop.f32.mrf.mxu1 }
 0x818   :  { %v3143_v43 = vadd.f32 %v3142_v63, %v7442_v22  ;;  %v3306_v58 = vmax.f32 %v3230_v13, 0.0 }
 0x819   :  { %v2852_v31 = vpop.f32.mrf.mxu0 }
 0x81a   :  { %v3307_v46 = vmax.f32 %v3143_v43, 0.0  ;;  %v2853_v17 = vadd.f32 %v7333_v57, %v2852_v31  ;;  %v3466_v47 = vmul.f32 %v3402_v50, %v3306_v58 }
 0x81c   :  { %v3467_v20 = vmul.f32 %v3403_v38, %v3307_v46  ;;  %v2892_v21 = vmax.f32 %v2853_v17, 0.0  ;;  %v3366_v46 = vld [vmem:[%s7797_s21 + $0x68] sm:$0xff]  ;;  %v4767_v17 = vld [vmem:[%s7795_s18 + $0x78] sm:$0xff]  }
 0x81d   :  { %v3231_v16 = vpop.f32.mrf.mxu2 }
 0x81e   :  { %v2988_v12 = vmul.f32 %v4714_v40, %v2892_v21  ;;  %v3232_v45 = vadd.f32 %v3231_v16, %v7455_v56  ;;  %v3521_v25 = vpack.c.bf16 %v3467_v20, %v3465_v48  ;;  %v3409_v20 = vunpack.c.l.bf16 %v3365_v33 }
 0x81f   :  { %v3145_v53 = vpop.f32.mrf.mxu1  ;;  %v4721_v16 = vunpack.c.l.bf16 %v4767_v17 }
 0x820   :  { %v3308_v1 = vmax.f32 %v3232_v45, 0.0  ;;  %3705 = vmatmul.bf16.gmra.mxu3 %v3521_v25  ;;  %v3006_v2 = vpack.c.bf16 %v2988_v12, %v2987_v49  ;;  %v3146_v4 = vadd.f32 %v3145_v53, %v7442_v22  ;;  %v3411_v49 = vunpack.c.l.bf16 %v3366_v46 }
 0x821   :  { %v2855_v24 = vpop.f32.mrf.mxu0  ;;  %v4722_v25 = vunpack.c.h.bf16 %v4767_v17 }
 0x822   :  { %v3468_v51 = vmul.f32 %v3404_v7, %v3308_v1  ;;  %3184 = vmatmul.bf16.gmra.mxu1 %v3006_v2  ;;  %3273 = vmatmul.bf16.gmra.mxu2 %v3006_v2  ;;  %v2856_v19 = vadd.f32 %v7333_v57, %v2855_v24  ;;  %v3309_v44 = vmax.f32 %v3146_v4, 0.0  ;;  %v3412_v4 = vunpack.c.h.bf16 %v3366_v46 }
 0x824   :  { %v3522_v62 = vpack.c.bf16 %v3468_v51, %v3466_v47  ;;  %v2893_v59 = vmax.f32 %v2856_v19, 0.0  ;;  %v3469_v29 = vmul.f32 %v3405_v52, %v3309_v44  ;;  %v3410_v47 = vunpack.c.h.bf16 %v3365_v33 }
 0x825   :  { %v3234_v34 = vpop.f32.mrf.mxu2 }
 0x826   :  { %3794 = vmatmul.bf16.gmra.mxu0 %v3522_v62  ;;  %v3235_v30 = vadd.f32 %v3234_v34, %v7455_v56  ;;  %v2989_v26 = vmul.f32 %v4717_v23, %v2893_v59  ;;  %v3368_v23 = vld [vmem:[%s7797_s21 + $0x78] sm:$0xff] }
 0x827   :  { %v3147_v3 = vpop.f32.mrf.mxu1 }
 0x828   :  { %v3148_v32 = vadd.f32 %v3147_v3, %v7442_v22  ;;  %v3310_v37 = vmax.f32 %v3235_v30, 0.0 }
 0x829   :  { %v2857_v54 = vpop.f32.mrf.mxu0 }
 0x82a   :  { %v3311_v18 = vmax.f32 %v3148_v32, 0.0  ;;  %v2858_v36 = vadd.f32 %v7333_v57, %v2857_v54  ;;  %v3470_v9 = vmul.f32 %v3406_v41, %v3310_v37 }
 0x82c   :  { %v3471_v39 = vmul.f32 %v3407_v27, %v3311_v18  ;;  %v2894_v35 = vmax.f32 %v2858_v36, 0.0  ;;  %v3367_v27 = vld [vmem:[%s7797_s21 + $0x70] sm:$0xff] }
 0x82d   :  { %v3236_v42 = vpop.f32.mrf.mxu2  ;;  %v3413_v18 = vunpack.c.l.bf16 %v3367_v27  ;;  %v3414_v41 = vunpack.c.h.bf16 %v3367_v27 }
 0x82e   :  { %v2990_v14 = vmul.f32 %v4718_v15, %v2894_v35  ;;  %v3237_v10 = vadd.f32 %v3236_v42, %v7455_v56  ;;  %v3523_v6 = vpack.c.bf16 %v3471_v39, %v3469_v29  ;;  %v3415_v15 = vunpack.c.l.bf16 %v3368_v23 }
 0x82f   :  { %v3150_v11 = vpop.f32.mrf.mxu1 }
 0x830   :  { %v3312_v8 = vmax.f32 %v3237_v10, 0.0  ;;  %3710 = vmatmul.bf16.gmra.mxu3 %v3523_v6  ;;  %v3007_v63 = vpack.c.bf16 %v2990_v14, %v2989_v26  ;;  %v3151_v38 = vadd.f32 %v3150_v11, %v7442_v22  ;;  %v3416_v14 = vunpack.c.h.bf16 %v3368_v23 }
 0x831   :  { %v2860_v28 = vpop.f32.mrf.mxu0 }
 0x832   :  { %v3472_v43 = vmul.f32 %v3408_v60, %v3312_v8  ;;  %3189 = vmatmul.bf16.gmra.mxu1 %v3007_v63  ;;  %3278 = vmatmul.bf16.gmra.mxu2 %v3007_v63  ;;  %v2861_v31 = vadd.f32 %v7333_v57, %v2860_v28  ;;  %v3313_v48 = vmax.f32 %v3151_v38, 0.0 }
 0x834   :  { %v3524_v55 = vpack.c.bf16 %v3472_v43, %v3470_v9  ;;  %v2895_v50 = vmax.f32 %v2861_v31, 0.0  ;;  %v3473_v53 = vmul.f32 %v3409_v20, %v3313_v48  ;;  %v3369_v43 = vld [vmem:[%s7797_s21 + $0x80] sm:$0xff] }
 0x835   :  { %v3239_v13 = vpop.f32.mrf.mxu2 }
 0x836   :  { %3799 = vmatmul.bf16.gmra.mxu0 %v3524_v55  ;;  %v3240_v58 = vadd.f32 %v3239_v13, %v7455_v56  ;;  %v2991_v24 = vmul.f32 %v4721_v16, %v2895_v50  ;;  %v3370_v55 = vld [vmem:[%s7797_s21 + $0x88] sm:$0xff]  ;;  %v3417_v13 = vunpack.c.l.bf16 %v3369_v43 }
 0x837   :  { %v3152_v40 = vpop.f32.mrf.mxu1  ;;  %v3419_v17 = vunpack.c.l.bf16 %v3370_v55 }
 0x838   :  { %v3153_v21 = vadd.f32 %v3152_v40, %v7442_v22  ;;  %v3314_v62 = vmax.f32 %v3240_v58, 0.0  ;;  %v3420_v58 = vunpack.c.h.bf16 %v3370_v55 }
 0x839   :  { %v2862_v7 = vpop.f32.mrf.mxu0 }
 0x83a   :  { %v3315_v12 = vmax.f32 %v3153_v21, 0.0  ;;  %v2863_v45 = vadd.f32 %v7333_v57, %v2862_v7  ;;  %v3474_v44 = vmul.f32 %v3410_v47, %v3314_v62 }
 0x83c   :  { %v3475_v1 = vmul.f32 %v3411_v49, %v3315_v12  ;;  %v2896_v2 = vmax.f32 %v2863_v45, 0.0  ;;  %v3418_v49 = vunpack.c.h.bf16 %v3369_v43  ;;  %v3374_v43 = vld [vmem:[%s7797_s21 + $0xa8] sm:$0xff] }
 0x83d   :  { %v3241_v51 = vpop.f32.mrf.mxu2 }
 0x83e   :  { %v2992_v5 = vmul.f32 %v4722_v25, %v2896_v2  ;;  %v3242_v19 = vadd.f32 %v3241_v51, %v7455_v56  ;;  %v3525_v34 = vpack.c.bf16 %v3475_v1, %v3473_v53  ;;  %v7574_v53 = vld [vmem:[%s7798_s23] ss:$0 sm:$0xff] }
 0x83f   :  { %v3155_v0 = vpop.f32.mrf.mxu1 }
 0x840   :  { %v3316_v61 = vmax.f32 %v3242_v19, 0.0  ;;  %3715 = vmatmul.bf16.gmra.mxu3 %v3525_v34  ;;  %v3008_v3 = vpack.c.bf16 %v2992_v5, %v2991_v24  ;;  %v3156_v57 = vadd.f32 %v3155_v0, %v7442_v22  ;;  %v3371_v5 = vld [vmem:[%s7797_s21 + $0x90] sm:$0xff]  ;;  %v3372_v34 = vld [vmem:[%s7797_s21 + $0x98] sm:$0xff] }
 0x842   :  { %v3476_v52 = vmul.f32 %v3412_v4, %v3316_v61  ;;  %3194 = vmatmul.bf16.gmra.mxu1 %v3008_v3  ;;  %3283 = vmatmul.bf16.gmra.mxu2 %v3008_v3  ;;  %v3317_v30 = vmax.f32 %v3156_v57, 0.0  ;;  %v3423_v57 = vunpack.c.l.bf16 %v3372_v34 }
 0x844   :  { %v3526_v32 = vpack.c.bf16 %v3476_v52, %v3474_v44  ;;  %v3477_v35 = vmul.f32 %v3413_v18, %v3317_v30  ;;  %v3421_v44 = vunpack.c.l.bf16 %v3371_v5 }
 0x845   :  { %v3244_v59 = vpop.f32.mrf.mxu2 }
 0x846   :  { %3804 = vmatmul.bf16.gmra.mxu0 %v3526_v32  ;;  %v3245_v29 = vadd.f32 %v3244_v59, %v7455_v56 }
 0x847   :  { %v3157_v54 = vpop.f32.mrf.mxu1 }
 0x848   :  { %v3158_v36 = vadd.f32 %v3157_v54, %v7442_v22  ;;  %v3318_v60 = vmax.f32 %v3245_v29, 0.0  ;;  %v3424_v29 = vunpack.c.h.bf16 %v3372_v34 }
 0x84a   :  { %v3319_v39 = vmax.f32 %v3158_v36, 0.0  ;;  %v3478_v8 = vmul.f32 %v3414_v41, %v3318_v60  ;;  %v3422_v36 = vunpack.c.h.bf16 %v3371_v5 }
 0x84c   :  { %v3479_v26 = vmul.f32 %v3415_v15, %v3319_v39 }
 0x84d   :  { %v3246_v42 = vpop.f32.mrf.mxu2 }
 0x84e   :  { %v3247_v37 = vadd.f32 %v3246_v42, %v7455_v56  ;;  %v3527_v10 = vpack.c.bf16 %v3479_v26, %v3477_v35 }
 0x84f   :  { %v3160_v6 = vpop.f32.mrf.mxu1 }
 0x850   :  { %v3320_v11 = vmax.f32 %v3247_v37, 0.0  ;;  %3720 = vmatmul.bf16.gmra.mxu3 %v3527_v10  ;;  %v3161_v28 = vadd.f32 %v3160_v6, %v7442_v22 }
 0x852   :  { %v3480_v63 = vmul.f32 %v3416_v14, %v3320_v11  ;;  %v3321_v31 = vmax.f32 %v3161_v28, 0.0  ;;  %v3373_v28 = vld [vmem:[%s7797_s21 + $0xa0] sm:$0xff] }
 0x854   :  { %v3528_v9 = vpack.c.bf16 %v3480_v63, %v3478_v8  ;;  %v3481_v20 = vmul.f32 %v3417_v13, %v3321_v31  ;;  %v3425_v31 = vunpack.c.l.bf16 %v3373_v28 }
 0x855   :  { %v3249_v38 = vpop.f32.mrf.mxu2 }
 0x856   :  { %3809 = vmatmul.bf16.gmra.mxu0 %v3528_v9  ;;  %v3250_v40 = vadd.f32 %v3249_v38, %v7455_v56 }
 0x857   :  { %v3162_v33 = vpop.f32.mrf.mxu1 }
 0x858   :  { %v3163_v46 = vadd.f32 %v3162_v33, %v7442_v22  ;;  %v3322_v16 = vmax.f32 %v3250_v40, 0.0 }
 0x85a   :  { %v3323_v48 = vmax.f32 %v3163_v46, 0.0  ;;  %v3482_v1 = vmul.f32 %v3418_v49, %v3322_v16  ;;  %v3427_v46 = vunpack.c.l.bf16 %v3374_v43  ;;  %v3426_v16 = vunpack.c.h.bf16 %v3373_v28 }
 0x85c   :  { %v3483_v21 = vmul.f32 %v3419_v17, %v3323_v48 }
 0x85d   :  { %v3251_v50 = vpop.f32.mrf.mxu2 }
 0x85e   :  { %v3252_v7 = vadd.f32 %v3251_v50, %v7455_v56  ;;  %v3529_v12 = vpack.c.bf16 %v3483_v21, %v3481_v20 }
 0x85f   :  { %v3165_v45 = vpop.f32.mrf.mxu1 }
 0x860   :  { %v3324_v25 = vmax.f32 %v3252_v7, 0.0  ;;  %3725 = vmatmul.bf16.gmra.mxu3 %v3529_v12  ;;  %v3166_v51 = vadd.f32 %v3165_v45, %v7442_v22 }
 0x862   :  { %v3484_v2 = vmul.f32 %v3420_v58, %v3324_v25  ;;  %v3325_v3 = vmax.f32 %v3166_v51, 0.0  ;;  %v3428_v58 = vunpack.c.h.bf16 %v3374_v43 }
 0x863   :  { %v3686_v24 = vpop.f32.mrf.mxu3  ;;  %v3775_v47 = vpop.f32.mrf.mxu0 }
 0x864   :  { %v3687_v4 = vadd.f32 %v7574_v53, %v3686_v24  ;;  %v3530_v62 = vpack.c.bf16 %v3484_v2, %v3482_v1  ;;  %v3485_v54 = vmul.f32 %v3421_v44, %v3325_v3  ;;  %v3376_v3 = vld [vmem:[%s7797_s21 + $0xb8] sm:$0xff] }
 0x865   :  { %v3254_v19 = vpop.f32.mrf.mxu2 }
 0x866   :  { %v3776_v0 = vadd.f32 %v3775_v47, %v3687_v4  ;;  %3814 = vmatmul.bf16.gmra.mxu0 %v3530_v62  ;;  %v3255_v32 = vadd.f32 %v3254_v19, %v7455_v56 }
 0x867   :  { %v3167_v61 = vpop.f32.mrf.mxu1 }
 0x868   :  { %3855 = vst [vmem:[%s7799_s24] sm:$0xff] %v3776_v0  ;;  %v3168_v52 = vadd.f32 %v3167_v61, %v7442_v22  ;;  %v3326_v39 = vmax.f32 %v3255_v32, 0.0  ;;  %v3375_v0 = vld [vmem:[%s7797_s21 + $0xb0] sm:$0xff] }
 0x869   :  { %v3429_v32 = vunpack.c.l.bf16 %v3375_v0 }
 0x86a   :  { %v3327_v27 = vmax.f32 %v3168_v52, 0.0  ;;  %v3486_v37 = vmul.f32 %v3422_v36, %v3326_v39  ;;  %v3430_v39 = vunpack.c.h.bf16 %v3375_v0 }
 0x86b   :  { %v3688_v59 = vpop.f32.mrf.mxu3  ;;  %v3777_v23 = vpop.f32.mrf.mxu0 }
 0x86c   :  { %v3487_v30 = vmul.f32 %v3423_v57, %v3327_v27  ;;  %v3689_v18 = vadd.f32 %v7574_v53, %v3688_v59  ;;  %v3431_v59 = vunpack.c.l.bf16 %v3376_v3 }
 0x86d   :  { %v3256_v15 = vpop.f32.mrf.mxu2 }
 0x86e   :  { %v3778_v35 = vadd.f32 %v3777_v23, %v3689_v18  ;;  %v3257_v26 = vadd.f32 %v3256_v15, %v7455_v56  ;;  %v3531_v41 = vpack.c.bf16 %v3487_v30, %v3485_v54 }
 0x86f   :  { %v3170_v42 = vpop.f32.mrf.mxu1 }
 0x870   :  { %3856 = vst [vmem:[%s7799_s24 + $0x8] sm:$0xff] %v3778_v35  ;;  %v3328_v60 = vmax.f32 %v3257_v26, 0.0  ;;  %3730 = vmatmul.bf16.gmra.mxu3 %v3531_v41  ;;  %v3171_v11 = vadd.f32 %v3170_v42, %v7442_v22  ;;  %v3432_v26 = vunpack.c.h.bf16 %v3376_v3 }
 0x872   :  { %v3488_v14 = vmul.f32 %v3424_v29, %v3328_v60  ;;  %v3329_v33 = vmax.f32 %v3171_v11, 0.0 }
 0x873   :  { %v3691_v10 = vpop.f32.mrf.mxu3  ;;  %v3780_v6 = vpop.f32.mrf.mxu0 }
 0x874   :  { %v3692_v8 = vadd.f32 %v7574_v53, %v3691_v10  ;;  %v3532_v63 = vpack.c.bf16 %v3488_v14, %v3486_v37  ;;  %v3489_v21 = vmul.f32 %v3425_v31, %v3329_v33  ;;  %v3378_v33 = vld [vmem:[%s7797_s21 + $0xc8] sm:$0xff] }
 0x875   :  { %v3259_v9 = vpop.f32.mrf.mxu2 }
 0x876   :  { %v3781_v38 = vadd.f32 %v3780_v6, %v3692_v8  ;;  %3819 = vmatmul.bf16.gmra.mxu0 %v3532_v63  ;;  %v3260_v17 = vadd.f32 %v3259_v9, %v7455_v56 }
 0x877   :  { %v3172_v55 = vpop.f32.mrf.mxu1 }
 0x878   :  { %3857 = vst [vmem:[%s7799_s24 + $0x10] sm:$0xff] %v3781_v38  ;;  %v3173_v13 = vadd.f32 %v3172_v55, %v7442_v22  ;;  %v3330_v12 = vmax.f32 %v3260_v17, 0.0  ;;  %v3377_v38 = vld [vmem:[%s7797_s21 + $0xc0] sm:$0xff] }
 0x879   :  { %v3433_v17 = vunpack.c.l.bf16 %v3377_v38 }
 0x87a   :  { %v3331_v40 = vmax.f32 %v3173_v13, 0.0  ;;  %v3490_v47 = vmul.f32 %v3426_v16, %v3330_v12  ;;  %v3434_v12 = vunpack.c.h.bf16 %v3377_v38 }
 0x87b   :  { %v3693_v48 = vpop.f32.mrf.mxu3  ;;  %v3782_v20 = vpop.f32.mrf.mxu0 }
 0x87c   :  { %v3491_v49 = vmul.f32 %v3427_v46, %v3331_v40  ;;  %v3694_v50 = vadd.f32 %v7574_v53, %v3693_v48  ;;  %v3435_v48 = vunpack.c.l.bf16 %v3378_v33 }
 0x87d   :  { %v3261_v7 = vpop.f32.mrf.mxu2 }
 0x87e   :  { %v3783_v45 = vadd.f32 %v3782_v20, %v3694_v50  ;;  %v3262_v25 = vadd.f32 %v3261_v7, %v7455_v56  ;;  %v3533_v1 = vpack.c.bf16 %v3491_v49, %v3489_v21 }
 0x87f   :  { %v3175_v2 = vpop.f32.mrf.mxu1 }
 0x880   :  { %3858 = vst [vmem:[%s7799_s24 + $0x18] sm:$0xff] %v3783_v45  ;;  %v3332_v24 = vmax.f32 %v3262_v25, 0.0  ;;  %3735 = vmatmul.bf16.gmra.mxu3 %v3533_v1  ;;  %v3176_v5 = vadd.f32 %v3175_v2, %v7442_v22  ;;  %v3436_v25 = vunpack.c.h.bf16 %v3378_v33 }
 0x882   :  { %v3492_v51 = vmul.f32 %v3428_v58, %v3332_v24  ;;  %v3333_v57 = vmax.f32 %v3176_v5, 0.0 }
 0x883   :  { %v3696_v4 = vpop.f32.mrf.mxu3  ;;  %v3785_v62 = vpop.f32.mrf.mxu0 }
 0x884   :  { %v3697_v19 = vadd.f32 %v7574_v53, %v3696_v4  ;;  %v3534_v34 = vpack.c.bf16 %v3492_v51, %v3490_v47  ;;  %v3493_v36 = vmul.f32 %v3429_v32, %v3333_v57  ;;  %v3380_v57 = vld [vmem:[%s7797_s21 + $0xd8] sm:$0xff] }
 0x885   :  { %v3264_v61 = vpop.f32.mrf.mxu2 }
 0x886   :  { %v3786_v44 = vadd.f32 %v3785_v62, %v3697_v19  ;;  %3824 = vmatmul.bf16.gmra.mxu0 %v3534_v34  ;;  %v3265_v23 = vadd.f32 %v3264_v61, %v7455_v56 }
 0x887   :  { %v3177_v52 = vpop.f32.mrf.mxu1 }
 0x888   :  { %3859 = vst [vmem:[%s7799_s24 + $0x20] sm:$0xff] %v3786_v44  ;;  %v3178_v27 = vadd.f32 %v3177_v52, %v7442_v22  ;;  %v3334_v41 = vmax.f32 %v3265_v23, 0.0  ;;  %v3379_v44 = vld [vmem:[%s7797_s21 + $0xd0] sm:$0xff] }
 0x889   :  { %v3437_v23 = vunpack.c.l.bf16 %v3379_v44 }
 0x88a   :  { %v3335_v54 = vmax.f32 %v3178_v27, 0.0  ;;  %v3494_v6 = vmul.f32 %v3430_v39, %v3334_v41  ;;  %v3438_v41 = vunpack.c.h.bf16 %v3379_v44 }
 0x88b   :  { %v3698_v30 = vpop.f32.mrf.mxu3  ;;  %v3787_v18 = vpop.f32.mrf.mxu0 }
 0x88c   :  { %v3495_v15 = vmul.f32 %v3431_v59, %v3335_v54  ;;  %v3699_v29 = vadd.f32 %v7574_v53, %v3698_v30  ;;  %v3439_v30 = vunpack.c.l.bf16 %v3380_v57 }
 0x88d   :  { %v3266_v35 = vpop.f32.mrf.mxu2 }
 0x88e   :  { %v3788_v42 = vadd.f32 %v3787_v18, %v3699_v29  ;;  %v3267_v60 = vadd.f32 %v3266_v35, %v7455_v56  ;;  %v3535_v37 = vpack.c.bf16 %v3495_v15, %v3493_v36 }
 0x88f   :  { %v3180_v14 = vpop.f32.mrf.mxu1 }
 0x890   :  { %3860 = vst [vmem:[%s7799_s24 + $0x28] sm:$0xff] %v3788_v42  ;;  %v3336_v10 = vmax.f32 %v3267_v60, 0.0  ;;  %3740 = vmatmul.bf16.gmra.mxu3 %v3535_v37  ;;  %v3181_v28 = vadd.f32 %v3180_v14, %v7442_v22  ;;  %v3440_v60 = vunpack.c.h.bf16 %v3380_v57 }
 0x892   :  { %v3496_v11 = vmul.f32 %v3432_v26, %v3336_v10  ;;  %v3337_v46 = vmax.f32 %v3181_v28, 0.0 }
 0x893   :  { %v3701_v8 = vpop.f32.mrf.mxu3  ;;  %v3790_v63 = vpop.f32.mrf.mxu0 }
 0x894   :  { %v3702_v9 = vadd.f32 %v7574_v53, %v3701_v8  ;;  %v3536_v43 = vpack.c.bf16 %v3496_v11, %v3494_v6  ;;  %v3497_v16 = vmul.f32 %v3433_v17, %v3337_v46  ;;  %v3382_v46 = vld [vmem:[%s7797_s21 + $0xe8] sm:$0xff] }
 0x895   :  { %v3269_v55 = vpop.f32.mrf.mxu2 }
 0x896   :  { %v3791_v31 = vadd.f32 %v3790_v63, %v3702_v9  ;;  %3829 = vmatmul.bf16.gmra.mxu0 %v3536_v43  ;;  %v3270_v20 = vadd.f32 %v3269_v55, %v7455_v56 }
 0x897   :  { %v3182_v13 = vpop.f32.mrf.mxu1 }
 0x898   :  { %3861 = vst [vmem:[%s7799_s24 + $0x30] sm:$0xff] %v3791_v31  ;;  %v3183_v40 = vadd.f32 %v3182_v13, %v7442_v22  ;;  %v3338_v1 = vmax.f32 %v3270_v20, 0.0  ;;  %v3381_v31 = vld [vmem:[%s7797_s21 + $0xe0] sm:$0xff] }
 0x899   :  { %v3441_v20 = vunpack.c.l.bf16 %v3381_v31 }
 0x89a   :  { %v3339_v21 = vmax.f32 %v3183_v40, 0.0  ;;  %v3498_v62 = vmul.f32 %v3434_v12, %v3338_v1  ;;  %v3442_v1 = vunpack.c.h.bf16 %v3381_v31 }
 0x89b   :  { %v3703_v49 = vpop.f32.mrf.mxu3  ;;  %v3792_v50 = vpop.f32.mrf.mxu0 }
 0x89c   :  { %v3499_v7 = vmul.f32 %v3435_v48, %v3339_v21  ;;  %v3704_v58 = vadd.f32 %v7574_v53, %v3703_v49  ;;  %v3443_v49 = vunpack.c.l.bf16 %v3382_v46 }
 0x89d   :  { %v3271_v45 = vpop.f32.mrf.mxu2 }
 0x89e   :  { %v3793_v2 = vadd.f32 %v3792_v50, %v3704_v58  ;;  %v3272_v24 = vadd.f32 %v3271_v45, %v7455_v56  ;;  %v3537_v47 = vpack.c.bf16 %v3499_v7, %v3497_v16 }
 0x89f   :  { %v3185_v51 = vpop.f32.mrf.mxu1 }
 0x8a0   :  { %3862 = vst [vmem:[%s7799_s24 + $0x38] sm:$0xff] %v3793_v2  ;;  %v3340_v4 = vmax.f32 %v3272_v24, 0.0  ;;  %3745 = vmatmul.bf16.gmra.mxu3 %v3537_v47  ;;  %v3186_v0 = vadd.f32 %v3185_v51, %v7442_v22  ;;  %v3444_v24 = vunpack.c.h.bf16 %v3382_v46 }
 0x8a2   :  { %v3500_v5 = vmul.f32 %v3436_v25, %v3340_v4  ;;  %v3341_v59 = vmax.f32 %v3186_v0, 0.0 }
 0x8a3   :  { %v3706_v19 = vpop.f32.mrf.mxu3  ;;  %v3795_v34 = vpop.f32.mrf.mxu0 }
 0x8a4   :  { %v3707_v61 = vadd.f32 %v7574_v53, %v3706_v19  ;;  %v3538_v3 = vpack.c.bf16 %v3500_v5, %v3498_v62  ;;  %v3501_v39 = vmul.f32 %v3437_v23, %v3341_v59  ;;  %v3384_v59 = vld [vmem:[%s7797_s21 + $0xf8] sm:$0xff] }
 0x8a5   :  { %v3274_v52 = vpop.f32.mrf.mxu2 }
 0x8a6   :  { %v3796_v32 = vadd.f32 %v3795_v34, %v3707_v61  ;;  %3834 = vmatmul.bf16.gmra.mxu0 %v3538_v3  ;;  %v3275_v18 = vadd.f32 %v3274_v52, %v7455_v56 }
 0x8a7   :  { %v3187_v27 = vpop.f32.mrf.mxu1 }
 0x8a8   :  { %3863 = vst [vmem:[%s7799_s24 + $0x40] sm:$0xff] %v3796_v32  ;;  %v3188_v54 = vadd.f32 %v3187_v27, %v7442_v22  ;;  %v3342_v37 = vmax.f32 %v3275_v18, 0.0  ;;  %v3383_v32 = vld [vmem:[%s7797_s21 + $0xf0] sm:$0xff] }
 0x8a9   :  { %v3445_v18 = vunpack.c.l.bf16 %v3383_v32 }
 0x8aa   :  { %v3343_v36 = vmax.f32 %v3188_v54, 0.0  ;;  %v3502_v63 = vmul.f32 %v3438_v41, %v3342_v37  ;;  %v3446_v37 = vunpack.c.h.bf16 %v3383_v32 }
 0x8ab   :  { %v3708_v15 = vpop.f32.mrf.mxu3  ;;  %v3797_v29 = vpop.f32.mrf.mxu0 }
 0x8ac   :  { %v3503_v35 = vmul.f32 %v3439_v30, %v3343_v36  ;;  %v3709_v26 = vadd.f32 %v7574_v53, %v3708_v15  ;;  %v3447_v15 = vunpack.c.l.bf16 %v3384_v59 }
 0x8ad   :  { %v3276_v42 = vpop.f32.mrf.mxu2 }
 0x8ae   :  { %v3798_v14 = vadd.f32 %v3797_v29, %v3709_v26  ;;  %v3277_v10 = vadd.f32 %v3276_v42, %v7455_v56  ;;  %v3539_v6 = vpack.c.bf16 %v3503_v35, %v3501_v39 }
 0x8af   :  { %v3190_v11 = vpop.f32.mrf.mxu1 }
 0x8b0   :  { %3864 = vst [vmem:[%s7799_s24 + $0x48] sm:$0xff] %v3798_v14  ;;  %v3344_v8 = vmax.f32 %v3277_v10, 0.0  ;;  %3750 = vmatmul.bf16.gmra.mxu3 %v3539_v6  ;;  %v3191_v38 = vadd.f32 %v3190_v11, %v7442_v22  ;;  %v3448_v10 = vunpack.c.h.bf16 %v3384_v59 }
 0x8b2   :  { %v3504_v28 = vmul.f32 %v3440_v60, %v3344_v8  ;;  %v3345_v48 = vmax.f32 %v3191_v38, 0.0 }
 0x8b3   :  { %v3711_v9 = vpop.f32.mrf.mxu3  ;;  %v3800_v43 = vpop.f32.mrf.mxu0 }
 0x8b4   :  { %v3712_v55 = vadd.f32 %v7574_v53, %v3711_v9  ;;  %v3540_v33 = vpack.c.bf16 %v3504_v28, %v3502_v63  ;;  %v3505_v12 = vmul.f32 %v3441_v20, %v3345_v48 }
 0x8b5   :  { %v3279_v13 = vpop.f32.mrf.mxu2 }
 0x8b6   :  { %v3801_v17 = vadd.f32 %v3800_v43, %v3712_v55  ;;  %3839 = vmatmul.bf16.gmra.mxu0 %v3540_v33  ;;  %v3280_v50 = vadd.f32 %v3279_v13, %v7455_v56 }
 0x8b7   :  { %v3192_v40 = vpop.f32.mrf.mxu1 }
 0x8b8   :  { %3865 = vst [vmem:[%s7799_s24 + $0x50] sm:$0xff] %v3801_v17  ;;  %v3193_v21 = vadd.f32 %v3192_v40, %v7442_v22  ;;  %v3346_v47 = vmax.f32 %v3280_v50, 0.0 }
 0x8ba   :  { %v3347_v16 = vmax.f32 %v3193_v21, 0.0  ;;  %v3506_v34 = vmul.f32 %v3442_v1, %v3346_v47 }
 0x8bb   :  { %v3713_v7 = vpop.f32.mrf.mxu3  ;;  %v3802_v58 = vpop.f32.mrf.mxu0 }
 0x8bc   :  { %v3507_v45 = vmul.f32 %v3443_v49, %v3347_v16  ;;  %v3714_v25 = vadd.f32 %v7574_v53, %v3713_v7 }
 0x8bd   :  { %v3281_v2 = vpop.f32.mrf.mxu2 }
 0x8be   :  { %v3803_v51 = vadd.f32 %v3802_v58, %v3714_v25  ;;  %v3282_v4 = vadd.f32 %v3281_v2, %v7455_v56  ;;  %v3541_v62 = vpack.c.bf16 %v3507_v45, %v3505_v12 }
 0x8bf   :  { %v3195_v5 = vpop.f32.mrf.mxu1 }
 0x8c0   :  { %3866 = vst [vmem:[%s7799_s24 + $0x58] sm:$0xff] %v3803_v51  ;;  %v3348_v19 = vmax.f32 %v3282_v4, 0.0  ;;  %3755 = vmatmul.bf16.gmra.mxu3 %v3541_v62  ;;  %v3196_v44 = vadd.f32 %v3195_v5, %v7442_v22 }
 0x8c2   :  { %v3508_v0 = vmul.f32 %v3444_v24, %v3348_v19  ;;  %v3349_v30 = vmax.f32 %v3196_v44, 0.0 }
 0x8c3   :  { %v3716_v61 = vpop.f32.mrf.mxu3  ;;  %v3805_v3 = vpop.f32.mrf.mxu0 }
 0x8c4   :  { %v3717_v52 = vadd.f32 %v7574_v53, %v3716_v61  ;;  %v3542_v57 = vpack.c.bf16 %v3508_v0, %v3506_v34  ;;  %v3509_v41 = vmul.f32 %v3445_v18, %v3349_v30 }
 0x8c5   :  { %v3284_v27 = vpop.f32.mrf.mxu2 }
 0x8c6   :  { %v3806_v23 = vadd.f32 %v3805_v3, %v3717_v52  ;;  %3844 = vmatmul.bf16.gmra.mxu0 %v3542_v57  ;;  %v3285_v29 = vadd.f32 %v3284_v27, %v7455_v56 }
 0x8c7   :  { %v3197_v54 = vpop.f32.mrf.mxu1 }
 0x8c8   :  { %3867 = vst [vmem:[%s7799_s24 + $0x60] sm:$0xff] %v3806_v23  ;;  %v3198_v36 = vadd.f32 %v3197_v54, %v7442_v22  ;;  %v3350_v6 = vmax.f32 %v3285_v29, 0.0 }
 0x8ca   :  { %v3351_v39 = vmax.f32 %v3198_v36, 0.0  ;;  %v3510_v28 = vmul.f32 %v3446_v37, %v3350_v6 }
 0x8cb   :  { %v3718_v35 = vpop.f32.mrf.mxu3  ;;  %v3807_v26 = vpop.f32.mrf.mxu0 }
 0x8cc   :  { %v3511_v42 = vmul.f32 %v3447_v15, %v3351_v39  ;;  %v3719_v60 = vadd.f32 %v7574_v53, %v3718_v35 }
 0x8cd   :  { %v3286_v14 = vpop.f32.mrf.mxu2 }
 0x8ce   :  { %v3808_v11 = vadd.f32 %v3807_v26, %v3719_v60  ;;  %v3287_v8 = vadd.f32 %v3286_v14, %v7455_v56  ;;  %v3543_v63 = vpack.c.bf16 %v3511_v42, %v3509_v41 }
 0x8d0   :  { %3868 = vst [vmem:[%s7799_s24 + $0x68] sm:$0xff] %v3808_v11  ;;  %v3352_v22 = vmax.f32 %v3287_v8, 0.0  ;;  %3760 = vmatmul.bf16.gmra.mxu3 %v3543_v63 }
 0x8d2   :  { %v3512_v9 = vmul.f32 %v3448_v10, %v3352_v22 }
 0x8d3   :  { %v3721_v43 = vpop.f32.mrf.mxu3  ;;  %v3810_v38 = vpop.f32.mrf.mxu0 }
 0x8d4   :  { %v3544_v55 = vpack.c.bf16 %v3512_v9, %v3510_v28  ;;  %v3722_v33 = vadd.f32 %v7574_v53, %v3721_v43 }
 0x8d6   :  { %v3811_v31 = vadd.f32 %v3810_v38, %v3722_v33  ;;  %3849 = vmatmul.bf16.vlgmr.msra.gmra.mxu2 %v3544_v55 }
 0x8d8   :  { %3869 = vst [vmem:[%s7799_s24 + $0x70] sm:$0xff] %v3811_v31 }
 0x8db   :  { %v3723_v56 = vpop.f32.mrf.mxu3  ;;  %v3812_v13 = vpop.f32.mrf.mxu0 }
 0x8dc   :  { %v3724_v46 = vadd.f32 %v7574_v53, %v3723_v56 }
 0x8de   :  { %v3813_v17 = vadd.f32 %v3812_v13, %v3724_v46 }
 0x8e0   :  { %3870 = vst [vmem:[%s7799_s24 + $0x78] sm:$0xff] %v3813_v17 }
 0x8e3   :  { %v3726_v40 = vpop.f32.mrf.mxu3  ;;  %v3815_v48 = vpop.f32.mrf.mxu0 }
 0x8e4   :  { %v3727_v20 = vadd.f32 %v7574_v53, %v3726_v40 }
 0x8e6   :  { %v3816_v21 = vadd.f32 %v3815_v48, %v3727_v20 }
 0x8e8   :  { %3871 = vst [vmem:[%s7799_s24 + $0x80] sm:$0xff] %v3816_v21 }
 0x8eb   :  { %v3728_v49 = vpop.f32.mrf.mxu3  ;;  %v3817_v50 = vpop.f32.mrf.mxu0 }
 0x8ec   :  { %v3729_v16 = vadd.f32 %v7574_v53, %v3728_v49 }
 0x8ee   :  { %v3818_v7 = vadd.f32 %v3817_v50, %v3729_v16 }
 0x8f0   :  { %3872 = vst [vmem:[%s7799_s24 + $0x88] sm:$0xff] %v3818_v7 }
 0x8f3   :  { %v3731_v58 = vpop.f32.mrf.mxu3  ;;  %v3820_v12 = vpop.f32.mrf.mxu0 }
 0x8f4   :  { %v3732_v45 = vadd.f32 %v7574_v53, %v3731_v58 }
 0x8f6   :  { %v3821_v25 = vadd.f32 %v3820_v12, %v3732_v45 }
 0x8f8   :  { %3873 = vst [vmem:[%s7799_s24 + $0x90] sm:$0xff] %v3821_v25 }
 0x8fb   :  { %v3733_v1 = vpop.f32.mrf.mxu3  ;;  %v3822_v2 = vpop.f32.mrf.mxu0 }
 0x8fc   :  { %v3734_v24 = vadd.f32 %v7574_v53, %v3733_v1 }
 0x8fe   :  { %v3823_v47 = vadd.f32 %v3822_v2, %v3734_v24 }
 0x900   :  { %3874 = vst [vmem:[%s7799_s24 + $0x98] sm:$0xff] %v3823_v47 }
 0x903   :  { %v3736_v51 = vpop.f32.mrf.mxu3  ;;  %v3825_v4 = vpop.f32.mrf.mxu0 }
 0x904   :  { %v3737_v62 = vadd.f32 %v7574_v53, %v3736_v51 }
 0x906   :  { %v3826_v5 = vadd.f32 %v3825_v4, %v3737_v62 }
 0x908   :  { %3875 = vst [vmem:[%s7799_s24 + $0xa0] sm:$0xff] %v3826_v5 }
 0x90b   :  { %v3738_v19 = vpop.f32.mrf.mxu3  ;;  %v3827_v34 = vpop.f32.mrf.mxu0 }
 0x90c   :  { %v3739_v0 = vadd.f32 %v7574_v53, %v3738_v19 }
 0x90e   :  { %v3828_v61 = vadd.f32 %v3827_v34, %v3739_v0 }
 0x910   :  { %3876 = vst [vmem:[%s7799_s24 + $0xa8] sm:$0xff] %v3828_v61 }
 0x913   :  { %v3741_v3 = vpop.f32.mrf.mxu3  ;;  %v3830_v44 = vpop.f32.mrf.mxu0 }
 0x914   :  { %v3742_v52 = vadd.f32 %v7574_v53, %v3741_v3 }
 0x916   :  { %v3831_v57 = vadd.f32 %v3830_v44, %v3742_v52 }
 0x918   :  { %3877 = vst [vmem:[%s7799_s24 + $0xb0] sm:$0xff] %v3831_v57 }
 0x91b   :  { %v3743_v32 = vpop.f32.mrf.mxu3  ;;  %v3832_v27 = vpop.f32.mrf.mxu0 }
 0x91c   :  { %v3744_v59 = vadd.f32 %v7574_v53, %v3743_v32 }
 0x91e   :  { %v3833_v23 = vadd.f32 %v3832_v27, %v3744_v59 }
 0x920   :  { %3878 = vst [vmem:[%s7799_s24 + $0xb8] sm:$0xff] %v3833_v23 }
 0x923   :  { %v3746_v54 = vpop.f32.mrf.mxu3  ;;  %v3835_v30 = vpop.f32.mrf.mxu0 }
 0x924   :  { %v3747_v18 = vadd.f32 %v7574_v53, %v3746_v54 }
 0x926   :  { %v3836_v36 = vadd.f32 %v3835_v30, %v3747_v18 }
 0x928   :  { %3879 = vst [vmem:[%s7799_s24 + $0xc0] sm:$0xff] %v3836_v36 }
 0x92b   :  { %v3748_v15 = vpop.f32.mrf.mxu3  ;;  %v3837_v29 = vpop.f32.mrf.mxu0 }
 0x92c   :  { %v3749_v39 = vadd.f32 %v7574_v53, %v3748_v15 }
 0x92e   :  { %v3838_v35 = vadd.f32 %v3837_v29, %v3749_v39 }
 0x930   :  { %3880 = vst [vmem:[%s7799_s24 + $0xc8] sm:$0xff] %v3838_v35 }
 0x933   :  { %v3751_v26 = vpop.f32.mrf.mxu3  ;;  %v3840_v41 = vpop.f32.mrf.mxu0 }
 0x934   :  { %v3752_v42 = vadd.f32 %v7574_v53, %v3751_v26 }
 0x936   :  { %v3841_v60 = vadd.f32 %v3840_v41, %v3752_v42 }
 0x938   :  { %3881 = vst [vmem:[%s7799_s24 + $0xd0] sm:$0xff] %v3841_v60 }
 0x93b   :  { %v3753_v37 = vpop.f32.mrf.mxu3  ;;  %v3842_v14 = vpop.f32.mrf.mxu0 }
 0x93c   :  { %v3754_v10 = vadd.f32 %v7574_v53, %v3753_v37 }
 0x93e   :  { %v3843_v6 = vadd.f32 %v3842_v14, %v3754_v10 }
 0x940   :  { %3882 = vst [vmem:[%s7799_s24 + $0xd8] sm:$0xff] %v3843_v6 }
 0x943   :  { %v3756_v11 = vpop.f32.mrf.mxu3  ;;  %v3845_v8 = vpop.f32.mrf.mxu0 }
 0x944   :  { %v3757_v63 = vadd.f32 %v7574_v53, %v3756_v11 }
 0x946   :  { %v3846_v22 = vadd.f32 %v3845_v8, %v3757_v63 }
 0x948   :  { %3883 = vst [vmem:[%s7799_s24 + $0xe0] sm:$0xff] %v3846_v22 }
 0x94b   :  { %v3758_v28 = vpop.f32.mrf.mxu3  ;;  %v3847_v43 = vpop.f32.mrf.mxu0 }
 0x94c   :  { %v3759_v9 = vadd.f32 %v7574_v53, %v3758_v28 }
 0x94e   :  { %v3848_v38 = vadd.f32 %v3847_v43, %v3759_v9 }
 0x950   :  { %3884 = vst [vmem:[%s7799_s24 + $0xe8] sm:$0xff] %v3848_v38 }
 0x953   :  { %v3761_v55 = vpop.f32.mrf.mxu3 }
 0x954   :  { %v3762_v33 = vadd.f32 %v7574_v53, %v3761_v55 }
 0x959   :  { %v3850_v31 = vpop.f32.mrf.mxu2 }
 0x95a   :  { %v3851_v56 = vadd.f32 %v3850_v31, %v3762_v33 }
 0x95b   :  { %v3763_v13 = vpop.f32.mrf.mxu3 }
 0x95c   :  { %3885 = vst [vmem:[%s7799_s24 + $0xf0] sm:$0xff] %v3851_v56  ;;  %v3764_v46 = vadd.f32 %v7574_v53, %v3763_v13 }
 0x961   :  { %v3852_v17 = vpop.f32.mrf.mxu2 }
 0x962   :  { %v3853_v40 = vadd.f32 %v3852_v17, %v3764_v46 }
 0x964   :  { %3886 = vst [vmem:[%s7799_s24 + $0xf8] sm:$0xff] %v3853_v40 }

</bundles_post_ra>
